<compile_context>
chip_gen: v7x
topology: tpu7x:2x2x1
jax: 0.10.0
libtpu: 0.0.40
codegen_flags: <defaults>
</compile_context>

<pallas_src>
import jax
import jax.numpy as jnp
from jax.experimental import pallas as pl
from jax.experimental.pallas import tpu as pltpu

EPS = 1e-5


# ---------------------------------------------------------------- helpers

def _vmem_limit_bytes():
    try:
        cap = pltpu.get_tpu_info().vmem_capacity_bytes
    except Exception:
        cap = 128 * 1024 * 1024
    # 96 MiB on v5e/v6e (128 MiB physical), ~48 MiB on v7x (64 MiB physical).
    return int(min(96 * 1024 * 1024, cap * 3 // 4))


def _compiler_params():
    return pltpu.CompilerParams(
        dimension_semantics=("parallel",),
        vmem_limit_bytes=_vmem_limit_bytes(),
    )


def _row_tile(m, target):
    """Row tile for the flattened (M, C) streaming stages.

    Prefers the largest multiple-of-8 divisor of m <= target (no partial block);
    otherwise falls back to a multiple-of-8 tile with a masked partial last
    block (never a whole-array block).  Returns (tile, has_partial_last_block).
    """
    if m <= max(8, target):
        return m, False
    t = (min(target, m) // 8) * 8
    for cand in range(t, 7, -8):
        if m % cand == 0:
            return cand, False
    return t, True


def _masked_rows(total_rows, tile_rows, needs_mask):
    if not needs_mask:
        return None
    valid = total_rows - pl.program_id(0) * tile_rows
    rows = jax.lax.broadcasted_iota(jnp.int32, (tile_rows, 1), 0)
    return rows < valid


def _store_stats(st_ref, z, mask=None):
    # st_ref block: (1, 2, C); row 0 = sum, row 1 = sum of squares (f32).
    if mask is not None:
        z = jnp.where(mask, z, 0.0)
    st_ref[:, 0:1, :] = jnp.sum(z, axis=0, keepdims=True)[None]
    st_ref[:, 1:2, :] = jnp.sum(z * z, axis=0, keepdims=True)[None]


def _fold_bn(stat_partial, count, gamma, beta):
    """Reduce per-tile (sum, sumsq) partials; fold BN into a per-channel affine."""
    s = jnp.sum(stat_partial.astype(jnp.float32), axis=0)      # (2, C)
    mean = s[0] / count
    var = s[1] / count - mean * mean
    inv = jax.lax.rsqrt(jnp.maximum(var, 0.0) + EPS)
    scale = gamma.reshape(-1) * inv
    shift = beta.reshape(-1) - mean * scale
    return scale.reshape(1, -1), shift.reshape(1, -1)


# ---------------------------------------------------------------- kernels

def _make_stage1_kernel(fuse_proj, m_total, tm, partial, mdt):
    """1x1 conv (row-tile matmul) + BN partial sums; optionally the fused
    stride-1 projection-shortcut 1x1 conv (reuses the resident x tile)."""
    def _dot_store(xa, w_ref, z_ref, st_ref, mask):
        z = jnp.dot(xa, w_ref[...], preferred_element_type=jnp.float32)
        z_ref[...] = z.astype(z_ref.dtype)
        _store_stats(st_ref, z, mask)

    if fuse_proj:
        def kernel(x_ref, w1_ref, wsc_ref, z1_ref, st1_ref, zsc_ref, stsc_ref):
            mask = _masked_rows(m_total, tm, partial)
            xa = x_ref[...].astype(mdt)
            _dot_store(xa, w1_ref, z1_ref, st1_ref, mask)
            _dot_store(xa, wsc_ref, zsc_ref, stsc_ref, mask)
    else:
        def kernel(x_ref, w1_ref, z1_ref, st1_ref):
            mask = _masked_rows(m_total, tm, partial)
            _dot_store(x_ref[...].astype(mdt), w1_ref, z1_ref, st1_ref, mask)
    return kernel


def _make_stage3_kernel(m_total, tm, partial, mdt):
    """bn2-affine + ReLU fused with the 1x1 expansion conv + bn3 partial sums."""
    def kernel(z2_ref, s_ref, b_ref, w_ref, z3_ref, st_ref):
        mask = _masked_rows(m_total, tm, partial)
        a = jnp.maximum(
            z2_ref[...].astype(jnp.float32) * s_ref[...] + b_ref[...], 0.0)
        z3 = jnp.dot(a.astype(mdt), w_ref[...], preferred_element_type=jnp.float32)
        z3_ref[...] = z3.astype(z3_ref.dtype)
        _store_stats(st_ref, z3, mask)
    return kernel


def _make_conv3x3_kernel(H, W, stride, mdt):
    """Per-image kernel: bn1-affine + ReLU, 1-px zero halo in VMEM, 3x3 conv
    (stride, pad=1) as three K=3C matmuls (im2col over kw) accumulating in f32,
    plus per-image BN partial sums."""
    Ho = (H - 1) // stride + 1
    Wo = (W - 1) // stride + 1

    def _h(kh):
        return slice(kh, kh + Ho) if stride == 1 else pl.ds(kh, Ho, stride)

    def _w(kw):
        return slice(kw, kw + Wo) if stride == 1 else pl.ds(kw, Wo, stride)

    def kernel(z1_ref, w2_ref, s1_ref, b1_ref, z2_ref, st2_ref, pad_ref):
        C = z1_ref.shape[-1]
        Cout = w2_ref.shape[-1]
        # bn1 (folded affine) + ReLU in f32, cast once into the matmul-dtype halo.
        a1 = jnp.maximum(
            z1_ref[...].astype(jnp.float32) * s1_ref[...] + b1_ref[...], 0.0)
        # Zero only the 1-px border; the interior is fully overwritten each step
        # (not gated on program_id, so it stays correct if the grid is sharded).
        pad_ref[0:1, :, :] = jnp.zeros((1, W + 2, C), mdt)
        pad_ref[H + 1:H + 2, :, :] = jnp.zeros((1, W + 2, C), mdt)
        pad_ref[:, 0:1, :] = jnp.zeros((H + 2, 1, C), mdt)
        pad_ref[:, W + 1:W + 2, :] = jnp.zeros((H + 2, 1, C), mdt)
        pad_ref[1:H + 1, 1:W + 1, :] = a1.reshape(H, W, C).astype(mdt)

        acc = jnp.zeros((Ho * Wo, Cout), jnp.float32)
        for kh in range(3):
            # im2col over kw: one (Ho*Wo, 3C) x (3C, Cout) matmul per kh.
            patch = jnp.concatenate(
                [pad_ref[_h(kh), _w(kw), :] for kw in range(3)], axis=-1)
            acc = acc + jnp.dot(patch.reshape(Ho * Wo, 3 * C), w2_ref[kh],
                                preferred_element_type=jnp.float32)
        z2_ref[...] = acc[None].astype(z2_ref.dtype)
        _store_stats(st2_ref, acc)
    return kernel


def _make_proj_stride_kernel(H, W, stride, mdt):
    """Strided (stride>1) projection shortcut: 1x1 conv read directly (and
    strided) from the NHWC input image, plus BN partial sums."""
    Ho = (H - 1) // stride + 1
    Wo = (W - 1) // stride + 1

    def kernel(x_ref, wsc_ref, zsc_ref, st_ref):
        Cin = x_ref.shape[-1]
        xs = x_ref[0:1, pl.ds(0, Ho, stride), pl.ds(0, Wo, stride), :]
        zsc = jnp.dot(xs.reshape(Ho * Wo, Cin).astype(mdt), wsc_ref[...],
                      preferred_element_type=jnp.float32)
        zsc_ref[...] = zsc[None].astype(zsc_ref.dtype)
        _store_stats(st_ref, zsc)
    return kernel


def _final_proj_kernel(z3_ref, zsc_ref, s3_ref, b3_ref, ssc_ref, bsc_ref, o_ref):
    main = z3_ref[...].astype(jnp.float32) * s3_ref[...] + b3_ref[...]
    sc = zsc_ref[...].astype(jnp.float32) * ssc_ref[...] + bsc_ref[...]
    # sum_stacked2(stack([main, shortcut], 0)) == elementwise add; then ReLU.
    o_ref[...] = jnp.maximum(main + sc, 0.0).astype(o_ref.dtype)


def _final_identity_kernel(z3_ref, x_ref, s3_ref, b3_ref, o_ref):
    main = z3_ref[...].astype(jnp.float32) * s3_ref[...] + b3_ref[...]
    o_ref[...] = jnp.maximum(main + x_ref[...], 0.0).astype(o_ref.dtype)


# ---------------------------------------------------------------- wrapper

def bottleneck_forward(x_nchw, params, stride=1, row_tile=1024,
                       matmul_dtype=jnp.bfloat16, store_dtype=jnp.bfloat16):
    """Forward pass of Bottleneck_kuangliu_c (training-mode BatchNorm)."""
    N, Cin, H, W = x_nchw.shape
    planes = params['w1'].shape[1]
    cout = 4 * planes
    proj = (stride != 1) or (Cin != cout)
    if proj:
        assert 'wsc' in params, "projection shortcut parameters missing"
    Ho = (H - 1) // stride + 1
    Wo = (W - 1) // stride + 1
    HW, HoWo = H * W, Ho * Wo
    M, Mo = N * HW, N * HoWo

    cparams = _compiler_params()
    f32 = jnp.float32
    mdt, sdt = matmul_dtype, store_dtype

    # TODO(synk): fuse the NCHW<->NHWC transposes into stage 1 / stage 4 (or take
    # NHWC at the module boundary) to avoid two extra full HBM passes.
    x = jnp.transpose(x_nchw, (0, 2, 3, 1)).astype(f32)          # NCHW -> NHWC
    x2d = x.reshape(M, Cin)

    w1 = params['w1'].astype(mdt)                                # (Cin, planes)
    w2 = params['w2'].reshape(3, 3 * planes, planes).astype(mdt)  # (3, 3C, C)
    w3 = params['w3'].astype(mdt)                                # (planes, cout)

    # ---- stage 1: 1x1 conv (+ fused stride-1 projection) + bn1 partials -------
    tm1, part1 = _row_tile(M, row_tile)
    g1 = pl.cdiv(M, tm1)
    fuse_proj = proj and stride == 1
    if fuse_proj:
        wsc = params['wsc'].astype(mdt)
        z1, st1, zsc_flat, stsc = pl.pallas_call(
            _make_stage1_kernel(True, M, tm1, part1, mdt),
            grid=(g1,),
            in_specs=[pl.BlockSpec((tm1, Cin), lambda i: (i, 0)),
                      pl.BlockSpec((Cin, planes), lambda i: (0, 0)),
                      pl.BlockSpec((Cin, cout), lambda i: (0, 0))],
            out_specs=[pl.BlockSpec((tm1, planes), lambda i: (i, 0)),
                       pl.BlockSpec((1, 2, planes), lambda i: (i, 0, 0)),
                       pl.BlockSpec((tm1, cout), lambda i: (i, 0)),
                       pl.BlockSpec((1, 2, cout), lambda i: (i, 0, 0))],
            out_shape=[jax.ShapeDtypeStruct((M, planes), sdt),
                       jax.ShapeDtypeStruct((g1, 2, planes), f32),
                       jax.ShapeDtypeStruct((M, cout), sdt),
                       jax.ShapeDtypeStruct((g1, 2, cout), f32)],
            compiler_params=cparams,
        )(x2d, w1, wsc)
    else:
        z1, st1 = pl.pallas_call(
            _make_stage1_kernel(False, M, tm1, part1, mdt),
            grid=(g1,),
            in_specs=[pl.BlockSpec((tm1, Cin), lambda i: (i, 0)),
                      pl.BlockSpec((Cin, planes), lambda i: (0, 0))],
            out_specs=[pl.BlockSpec((tm1, planes), lambda i: (i, 0)),
                       pl.BlockSpec((1, 2, planes), lambda i: (i, 0, 0))],
            out_shape=[jax.ShapeDtypeStruct((M, planes), sdt),
                       jax.ShapeDtypeStruct((g1, 2, planes), f32)],
            compiler_params=cparams,
        )(x2d, w1)
    scale1, shift1 = _fold_bn(st1, M, params['g1'], params['b1'])

    # ---- stage 2: bn1+ReLU fused into per-image 3x3 conv (K=3C im2col dots) ----
    # TODO(synk): band-tile each image (grid=(N, n_bands), 2-row halo) for deeper
    # pipelining / megacore balance when N is small.
    z2, st2 = pl.pallas_call(
        _make_conv3x3_kernel(H, W, stride, mdt),
        grid=(N,),
        in_specs=[pl.BlockSpec((HW, planes), lambda n: (n, 0)),
                  pl.BlockSpec((3, 3 * planes, planes), lambda n: (0, 0, 0)),
                  pl.BlockSpec((1, planes), lambda n: (0, 0)),
                  pl.BlockSpec((1, planes), lambda n: (0, 0))],
        out_specs=[pl.BlockSpec((1, HoWo, planes), lambda n: (n, 0, 0)),
                   pl.BlockSpec((1, 2, planes), lambda n: (n, 0, 0))],
        out_shape=[jax.ShapeDtypeStruct((N, HoWo, planes), sdt),
                   jax.ShapeDtypeStruct((N, 2, planes), f32)],
        scratch_shapes=[pltpu.VMEM((H + 2, W + 2, planes), mdt)],
        compiler_params=cparams,
    )(z1, w2, scale1, shift1)
    scale2, shift2 = _fold_bn(st2, Mo, params['g2'], params['b2'])

    # ---- strided projection shortcut (proj & stride>1) -------------------------
    if proj and stride != 1:
        wsc = params['wsc'].astype(mdt)
        zsc, stsc = pl.pallas_call(
            _make_proj_stride_kernel(H, W, stride, mdt),
            grid=(N,),
            in_specs=[pl.BlockSpec((1, H, W, Cin), lambda n: (n, 0, 0, 0)),
                      pl.BlockSpec((Cin, cout), lambda n: (0, 0))],
            out_specs=[pl.BlockSpec((1, HoWo, cout), lambda n: (n, 0, 0)),
                       pl.BlockSpec((1, 2, cout), lambda n: (n, 0, 0))],
            out_shape=[jax.ShapeDtypeStruct((N, HoWo, cout), sdt),
                       jax.ShapeDtypeStruct((N, 2, cout), f32)],
            compiler_params=cparams,
        )(x, wsc)
        zsc_flat = zsc.reshape(Mo, cout)
    if proj:
        scale_sc, shift_sc = _fold_bn(stsc, Mo, params['gsc'], params['bsc'])

    # ---- stage 3: bn2+ReLU fused, 1x1 expansion conv + bn3 partials ------------
    tm3, part3 = _row_tile(Mo, row_tile)
    g3 = pl.cdiv(Mo, tm3)
    z2f = z2.reshape(Mo, planes)
    z3, st3 = pl.pallas_call(
        _make_stage3_kernel(Mo, tm3, part3, mdt),
        grid=(g3,),
        in_specs=[pl.BlockSpec((tm3, planes), lambda i: (i, 0)),
                  pl.BlockSpec((1, planes), lambda i: (0, 0)),
                  pl.BlockSpec((1, planes), lambda i: (0, 0)),
                  pl.BlockSpec((planes, cout), lambda i: (0, 0))],
        out_specs=[pl.BlockSpec((tm3, cout), lambda i: (i, 0)),
                   pl.BlockSpec((1, 2, cout), lambda i: (i, 0, 0))],
        out_shape=[jax.ShapeDtypeStruct((Mo, cout), sdt),
                   jax.ShapeDtypeStruct((g3, 2, cout), f32)],
        compiler_params=cparams,
    )(z2f, scale2, shift2, w3)
    scale3, shift3 = _fold_bn(st3, Mo, params['g3'], params['b3'])

    # ---- stage 4: bn3 + shortcut + add + ReLU ----------------------------------
    tm4, _ = _row_tile(Mo, row_tile)
    g4 = pl.cdiv(Mo, tm4)
    row_spec = pl.BlockSpec((tm4, cout), lambda i: (i, 0))
    vec_spec = pl.BlockSpec((1, cout), lambda i: (0, 0))
    if proj:
        out = pl.pallas_call(
            _final_proj_kernel,
            grid=(g4,),
            in_specs=[pl.BlockSpec((tm4, cout), lambda i: (i, 0)),
                      pl.BlockSpec((tm4, cout), lambda i: (i, 0)),
                      vec_spec, vec_spec, vec_spec, vec_spec],
            out_specs=row_spec,
            out_shape=jax.ShapeDtypeStruct((Mo, cout), f32),
            compiler_params=cparams,
        )(z3, zsc_flat, scale3, shift3, scale_sc, shift_sc)
    else:
        # identity shortcut: stride == 1 and Cin == cout, so x2d is (Mo, cout)
        out = pl.pallas_call(
            _final_identity_kernel,
            grid=(g4,),
            in_specs=[pl.BlockSpec((tm4, cout), lambda i: (i, 0)),
                      pl.BlockSpec((tm4, cout), lambda i: (i, 0)),
                      vec_spec, vec_spec],
            out_specs=row_spec,
            out_shape=jax.ShapeDtypeStruct((Mo, cout), f32),
            compiler_params=cparams,
        )(z3, x2d, scale3, shift3)

    out = out.reshape(N, Ho, Wo, cout)
    return jnp.transpose(out, (0, 3, 1, 2))                      # NHWC -> NCHW


# ---------------------------------------------------------------- params / reference

def init_params(key, in_planes, planes, stride=1):
    cout = 4 * planes
    proj = (stride != 1) or (in_planes != cout)
    ks = jax.random.split(key, 12)

    def conv_w(k, co, ci, kh, kw):
        # PyTorch conv weight layout: (Cout, Cin, kh, kw)
        return 0.1 * jax.random.normal(k, (co, ci, kh, kw), jnp.float32)

    w1 = conv_w(ks[0], planes, in_planes, 1, 1)
    w2 = conv_w(ks[1], planes, planes, 3, 3)
    w3 = conv_w(ks[2], cout, planes, 1, 1)

    def bn(kg, kb, c):
        g = 1.0 + 0.1 * jax.random.normal(kg, (c,), jnp.float32)
        b = 0.1 * jax.random.normal(kb, (c,), jnp.float32)
        return g, b

    g1, b1 = bn(ks[4], ks[5], planes)
    g2, b2 = bn(ks[6], ks[7], planes)
    g3, b3 = bn(ks[8], ks[9], cout)

    p = dict(
        # kernel-side layouts: 1x1 conv -> (Cin, Cout) matmul; 3x3 conv -> HWIO
        w1=w1[:, :, 0, 0].T,
        w2=jnp.transpose(w2, (2, 3, 1, 0)),
        w3=w3[:, :, 0, 0].T,
        g1=g1, b1=b1, g2=g2, b2=b2, g3=g3, b3=b3,
        # HWIO copies for the pure-JAX reference check
        w1_hwio=jnp.transpose(w1, (2, 3, 1, 0)),
        w2_hwio=jnp.transpose(w2, (2, 3, 1, 0)),
        w3_hwio=jnp.transpose(w3, (2, 3, 1, 0)),
    )
    if proj:
        wsc = conv_w(ks[3], cout, in_planes, 1, 1)
        gsc, bsc = bn(ks[10], ks[11], cout)
        p.update(wsc=wsc[:, :, 0, 0].T, gsc=gsc, bsc=bsc,
                 wsc_hwio=jnp.transpose(wsc, (2, 3, 1, 0)))
    return p


def reference_forward(x_nchw, p, stride=1):
    """Pure-JAX reference (f32, highest precision), used only for validation."""
    x = jnp.transpose(x_nchw, (0, 2, 3, 1)).astype(jnp.float32)

    def bn(z, g, b):
        m = jnp.mean(z, axis=(0, 1, 2), keepdims=True)
        v = jnp.mean((z - m) ** 2, axis=(0, 1, 2), keepdims=True)
        return (z - m) * jax.lax.rsqrt(v + EPS) * g.reshape(1, 1, 1, -1) \
            + b.reshape(1, 1, 1, -1)

    def conv(z, w, s, pad):
        return jax.lax.conv_general_dilated(
            z, w, (s, s), pad, dimension_numbers=('NHWC', 'HWIO', 'NHWC'),
            precision=jax.lax.Precision.HIGHEST)

    out = jax.nn.relu(bn(conv(x, p['w1_hwio'], 1, 'VALID'), p['g1'], p['b1']))
    out = jax.nn.relu(bn(conv(out, p['w2_hwio'], stride, [(1, 1), (1, 1)]),
                         p['g2'], p['b2']))
    out = bn(conv(out, p['w3_hwio'], 1, 'VALID'), p['g3'], p['b3'])
    if 'wsc_hwio' in p:
        sc = bn(conv(x, p['wsc_hwio'], stride, 'VALID'), p['gsc'], p['bsc'])
    else:
        sc = x
    return jnp.transpose(jax.nn.relu(out + sc), (0, 3, 1, 2))


# ---------------------------------------------------------------- test

def _check(y, y_ref, atol, rtol, tag):
    err = float(jnp.max(jnp.abs(y - y_ref)))
    assert bool(jnp.allclose(y, y_ref, atol=atol, rtol=rtol)), (tag, err)


if __name__ == "__main__":
    base_key = jax.random.PRNGKey(0)
    fwd = jax.jit(bottleneck_forward,
                  static_argnames=("stride", "row_tile", "matmul_dtype",
                                   "store_dtype"))

    # (in_planes, planes, stride): projection, strided projection, identity shortcut
    configs = [(4, 4, 1), (4, 4, 2), (16, 4, 1)]
    for idx, (in_planes, planes, stride) in enumerate(configs):
        kx, kp = jax.random.split(jax.random.fold_in(base_key, idx))
        x = jax.random.normal(kx, (2, in_planes, 16, 16), jnp.float32)   # NCHW
        params = init_params(kp, in_planes, planes, stride)
        y_ref = jax.block_until_ready(reference_forward(x, params, stride=stride))
        ho = (16 - 1) // stride + 1

        # f32 validation path (exactness of the structure).
        y32 = jax.block_until_ready(
            fwd(x, params, stride=stride, row_tile=128,
                matmul_dtype=jnp.float32, store_dtype=jnp.float32))
        assert y32.shape == (2, 4 * planes, ho, ho), (y32.shape, stride)
        _check(y32, y_ref, 2e-3, 2e-3, ("f32", idx))

        # Default (bf16 matmul + bf16 intermediate storage) path.
        ybf = jax.block_until_ready(fwd(x, params, stride=stride, row_tile=128))
        assert ybf.shape == (2, 4 * planes, ho, ho), (ybf.shape, stride)
        _check(ybf, y_ref, 8e-2, 4e-2, ("bf16", idx))

    print("KERNEL_OK")
</pallas_src>

<mosaic_0001>
module attributes {stable_mosaic.version = 11 : i64} {
  func.func @kernel(%arg0: i32, %arg1: memref<128x4xf32, #tpu.memory_space<vmem>>, %arg2: memref<4x4xf32, #tpu.memory_space<vmem>>, %arg3: memref<4x16xf32, #tpu.memory_space<vmem>>, %arg4: memref<128x4xf32, #tpu.memory_space<vmem>>, %arg5: memref<1x2x4xf32, #tpu.memory_space<vmem>>, %arg6: memref<128x16xf32, #tpu.memory_space<vmem>>, %arg7: memref<1x2x16xf32, #tpu.memory_space<vmem>>) attributes {dimension_semantics = [#tpu.dimension_semantics<parallel>], iteration_bounds = array<i64: 4>, scalar_prefetch = 0 : i64, scratch_operands = 0 : i64, tpu.core_type = #tpu.core_type<tc>, window_params = [{transform_indices = @transform_0, window_bounds = array<i64: 128, 4>}, {pipeline_mode = #tpu.pipeline_mode<synchronous>, transform_indices = @transform_1, window_bounds = array<i64: 4, 4>}, {pipeline_mode = #tpu.pipeline_mode<synchronous>, transform_indices = @transform_2, window_bounds = array<i64: 4, 16>}, {transform_indices = @transform_3, window_bounds = array<i64: 128, 4>}, {transform_indices = @transform_4, window_bounds = array<i64: 1, 2, 4>}, {transform_indices = @transform_5, window_bounds = array<i64: 128, 16>}, {transform_indices = @transform_6, window_bounds = array<i64: 1, 2, 16>}]} {
    %c0 = arith.constant 0 : index
    %c0_0 = arith.constant 0 : index
    %0 = vector.load %arg1[%c0, %c0_0] : memref<128x4xf32, #tpu.memory_space<vmem>>, vector<128x4xf32>
    %c0_1 = arith.constant 0 : index
    %c0_2 = arith.constant 0 : index
    %1 = vector.load %arg2[%c0_1, %c0_2] : memref<4x4xf32, #tpu.memory_space<vmem>>, vector<4x4xf32>
    %cst = arith.constant dense<0.000000e+00> : vector<128x4xf32>
    %2 = tpu.matmul %0, %1, %cst {dimension_numbers = #tpu.dot_dimension_numbers<[1], [0], [0], [1], [0, 0, 1, 1], [], []>} : vector<128x4xf32>, vector<4x4xf32>, vector<128x4xf32> -> vector<128x4xf32>
    %c0_3 = arith.constant 0 : index
    %c0_4 = arith.constant 0 : index
    %3 = vector.load %arg4[%c0_3, %c0_4] : memref<128x4xf32, #tpu.memory_space<vmem>>, vector<128x4xf32>
    tpu.vector_store %arg4[%c0_3, %c0_4], %2 {strides = array<i32>} : memref<128x4xf32, #tpu.memory_space<vmem>>, vector<128x4xf32>,
    %cst_5 = arith.constant dense<0.000000e+00> : vector<4xf32>
    %4 = vector.multi_reduction <add>, %2, %cst_5 [0] : vector<128x4xf32> to vector<4xf32>
    %5 = vector.shape_cast %4 : vector<4xf32> to vector<1x4xf32>
    %6 = vector.shape_cast %5 : vector<1x4xf32> to vector<1x1x4xf32>
    %c0_6 = arith.constant 0 : index
    %c0_7 = arith.constant 0 : index
    %c0_8 = arith.constant 0 : index
    %7 = vector.load %arg5[%c0_6, %c0_7, %c0_8] : memref<1x2x4xf32, #tpu.memory_space<vmem>>, vector<1x1x4xf32>
    tpu.vector_store %arg5[%c0_6, %c0_7, %c0_8], %6 {strides = array<i32>} : memref<1x2x4xf32, #tpu.memory_space<vmem>>, vector<1x1x4xf32>,
    %8 = arith.mulf %2, %2 : vector<128x4xf32>
    %cst_9 = arith.constant dense<0.000000e+00> : vector<4xf32>
    %9 = vector.multi_reduction <add>, %8, %cst_9 [0] : vector<128x4xf32> to vector<4xf32>
    %10 = vector.shape_cast %9 : vector<4xf32> to vector<1x4xf32>
    %11 = vector.shape_cast %10 : vector<1x4xf32> to vector<1x1x4xf32>
    %c0_10 = arith.constant 0 : index
    %c1 = arith.constant 1 : index
    %c0_11 = arith.constant 0 : index
    %12 = vector.load %arg5[%c0_10, %c1, %c0_11] : memref<1x2x4xf32, #tpu.memory_space<vmem>>, vector<1x1x4xf32>
    tpu.vector_store %arg5[%c0_10, %c1, %c0_11], %11 {strides = array<i32>} : memref<1x2x4xf32, #tpu.memory_space<vmem>>, vector<1x1x4xf32>,
    %c0_12 = arith.constant 0 : index
    %c0_13 = arith.constant 0 : index
    %13 = vector.load %arg3[%c0_12, %c0_13] : memref<4x16xf32, #tpu.memory_space<vmem>>, vector<4x16xf32>
    %cst_14 = arith.constant dense<0.000000e+00> : vector<128x16xf32>
    %14 = tpu.matmul %0, %13, %cst_14 {dimension_numbers = #tpu.dot_dimension_numbers<[1], [0], [0], [1], [0, 0, 1, 1], [], []>} : vector<128x4xf32>, vector<4x16xf32>, vector<128x16xf32> -> vector<128x16xf32>
    %c0_15 = arith.constant 0 : index
    %c0_16 = arith.constant 0 : index
    %15 = vector.load %arg6[%c0_15, %c0_16] : memref<128x16xf32, #tpu.memory_space<vmem>>, vector<128x16xf32>
    tpu.vector_store %arg6[%c0_15, %c0_16], %14 {strides = array<i32>} : memref<128x16xf32, #tpu.memory_space<vmem>>, vector<128x16xf32>,
    %cst_17 = arith.constant dense<0.000000e+00> : vector<16xf32>
    %16 = vector.multi_reduction <add>, %14, %cst_17 [0] : vector<128x16xf32> to vector<16xf32>
    %17 = vector.shape_cast %16 : vector<16xf32> to vector<1x16xf32>
    %18 = vector.shape_cast %17 : vector<1x16xf32> to vector<1x1x16xf32>
    %c0_18 = arith.constant 0 : index
    %c0_19 = arith.constant 0 : index
    %c0_20 = arith.constant 0 : index
    %19 = vector.load %arg7[%c0_18, %c0_19, %c0_20] : memref<1x2x16xf32, #tpu.memory_space<vmem>>, vector<1x1x16xf32>
    tpu.vector_store %arg7[%c0_18, %c0_19, %c0_20], %18 {strides = array<i32>} : memref<1x2x16xf32, #tpu.memory_space<vmem>>, vector<1x1x16xf32>,
    %20 = arith.mulf %14, %14 : vector<128x16xf32>
    %cst_21 = arith.constant dense<0.000000e+00> : vector<16xf32>
    %21 = vector.multi_reduction <add>, %20, %cst_21 [0] : vector<128x16xf32> to vector<16xf32>
    %22 = vector.shape_cast %21 : vector<16xf32> to vector<1x16xf32>
    %23 = vector.shape_cast %22 : vector<1x16xf32> to vector<1x1x16xf32>
    %c0_22 = arith.constant 0 : index
    %c1_23 = arith.constant 1 : index
    %c0_24 = arith.constant 0 : index
    %24 = vector.load %arg7[%c0_22, %c1_23, %c0_24] : memref<1x2x16xf32, #tpu.memory_space<vmem>>, vector<1x1x16xf32>
    tpu.vector_store %arg7[%c0_22, %c1_23, %c0_24], %23 {strides = array<i32>} : memref<1x2x16xf32, #tpu.memory_space<vmem>>, vector<1x1x16xf32>,
    return
  }
  func.func @transform_0(%arg0: i32) -> (i32, i32) {
    %c0_i32 = arith.constant 0 : i32
    %c0_i32_0 = arith.constant 0 : i32
    return %arg0, %c0_i32 : i32, i32
  }
  func.func @transform_1(%arg0: i32) -> (i32, i32) {
    %c0_i32 = arith.constant 0 : i32
    %c0_i32_0 = arith.constant 0 : i32
    %c0_i32_1 = arith.constant 0 : i32
    return %c0_i32, %c0_i32_0 : i32, i32
  }
  func.func @transform_2(%arg0: i32) -> (i32, i32) {
    %c0_i32 = arith.constant 0 : i32
    %c0_i32_0 = arith.constant 0 : i32
    %c0_i32_1 = arith.constant 0 : i32
    return %c0_i32, %c0_i32_0 : i32, i32
  }
  func.func @transform_3(%arg0: i32) -> (i32, i32) {
    %c0_i32 = arith.constant 0 : i32
    %c0_i32_0 = arith.constant 0 : i32
    return %arg0, %c0_i32 : i32, i32
  }
  func.func @transform_4(%arg0: i32) -> (i32, i32, i32) {
    %c0_i32 = arith.constant 0 : i32
    %c0_i32_0 = arith.constant 0 : i32
    %c0_i32_1 = arith.constant 0 : i32
    return %arg0, %c0_i32, %c0_i32_0 : i32, i32, i32
  }
  func.func @transform_5(%arg0: i32) -> (i32, i32) {
    %c0_i32 = arith.constant 0 : i32
    %c0_i32_0 = arith.constant 0 : i32
    return %arg0, %c0_i32 : i32, i32
  }
  func.func @transform_6(%arg0: i32) -> (i32, i32, i32) {
    %c0_i32 = arith.constant 0 : i32
    %c0_i32_0 = arith.constant 0 : i32
    %c0_i32_1 = arith.constant 0 : i32
    return %arg0, %c0_i32, %c0_i32_0 : i32, i32, i32
  }
}

module attributes {stable_mosaic.version = 11 : i64} {
  func.func @kernel(%arg0: i32, %arg1: memref<128x4xf32, #tpu.memory_space<vmem>>, %arg2: memref<1x4xf32, #tpu.memory_space<vmem>>, %arg3: memref<1x4xf32, #tpu.memory_space<vmem>>, %arg4: memref<4x16xf32, #tpu.memory_space<vmem>>, %arg5: memref<128x16xf32, #tpu.memory_space<vmem>>, %arg6: memref<1x2x16xf32, #tpu.memory_space<vmem>>) attributes {dimension_semantics = [#tpu.dimension_semantics<parallel>], iteration_bounds = array<i64: 4>, scalar_prefetch = 0 : i64, scratch_operands = 0 : i64, tpu.core_type = #tpu.core_type<tc>, window_params = [{transform_indices = @transform_0, window_bounds = array<i64: 128, 4>}, {pipeline_mode = #tpu.pipeline_mode<synchronous>, transform_indices = @transform_1, window_bounds = array<i64: 1, 4>}, {pipeline_mode = #tpu.pipeline_mode<synchronous>, transform_indices = @transform_2, window_bounds = array<i64: 1, 4>}, {pipeline_mode = #tpu.pipeline_mode<synchronous>, transform_indices = @transform_3, window_bounds = array<i64: 4, 16>}, {transform_indices = @transform_4, window_bounds = array<i64: 128, 16>}, {transform_indices = @transform_5, window_bounds = array<i64: 1, 2, 16>}]} {
    %c0 = arith.constant 0 : index
    %c0_0 = arith.constant 0 : index
    %0 = vector.load %arg1[%c0, %c0_0] : memref<128x4xf32, #tpu.memory_space<vmem>>, vector<128x4xf32>
    %c0_1 = arith.constant 0 : index
    %c0_2 = arith.constant 0 : index
    %1 = vector.load %arg2[%c0_1, %c0_2] : memref<1x4xf32, #tpu.memory_space<vmem>>, vector<1x4xf32>
    %2 = vector.broadcast %1 : vector<1x4xf32> to vector<128x4xf32>
    %3 = arith.mulf %0, %2 : vector<128x4xf32>
    %c0_3 = arith.constant 0 : index
    %c0_4 = arith.constant 0 : index
    %4 = vector.load %arg3[%c0_3, %c0_4] : memref<1x4xf32, #tpu.memory_space<vmem>>, vector<1x4xf32>
    %5 = vector.broadcast %4 : vector<1x4xf32> to vector<128x4xf32>
    %6 = arith.addf %3, %5 : vector<128x4xf32>
    %cst = arith.constant 0.000000e+00 : f32
    %7 = vector.broadcast %cst : f32 to vector<128x4xf32>
    %8 = arith.maximumf %6, %7 : vector<128x4xf32>
    %c0_5 = arith.constant 0 : index
    %c0_6 = arith.constant 0 : index
    %9 = vector.load %arg4[%c0_5, %c0_6] : memref<4x16xf32, #tpu.memory_space<vmem>>, vector<4x16xf32>
    %cst_7 = arith.constant dense<0.000000e+00> : vector<128x16xf32>
    %10 = tpu.matmul %8, %9, %cst_7 {dimension_numbers = #tpu.dot_dimension_numbers<[1], [0], [0], [1], [0, 0, 1, 1], [], []>} : vector<128x4xf32>, vector<4x16xf32>, vector<128x16xf32> -> vector<128x16xf32>
    %c0_8 = arith.constant 0 : index
    %c0_9 = arith.constant 0 : index
    %11 = vector.load %arg5[%c0_8, %c0_9] : memref<128x16xf32, #tpu.memory_space<vmem>>, vector<128x16xf32>
    tpu.vector_store %arg5[%c0_8, %c0_9], %10 {strides = array<i32>} : memref<128x16xf32, #tpu.memory_space<vmem>>, vector<128x16xf32>,
    %cst_10 = arith.constant dense<0.000000e+00> : vector<16xf32>
    %12 = vector.multi_reduction <add>, %10, %cst_10 [0] : vector<128x16xf32> to vector<16xf32>
    %13 = vector.shape_cast %12 : vector<16xf32> to vector<1x16xf32>
    %14 = vector.shape_cast %13 : vector<1x16xf32> to vector<1x1x16xf32>
    %c0_11 = arith.constant 0 : index
    %c0_12 = arith.constant 0 : index
    %c0_13 = arith.constant 0 : index
    %15 = vector.load %arg6[%c0_11, %c0_12, %c0_13] : memref<1x2x16xf32, #tpu.memory_space<vmem>>, vector<1x1x16xf32>
    tpu.vector_store %arg6[%c0_11, %c0_12, %c0_13], %14 {strides = array<i32>} : memref<1x2x16xf32, #tpu.memory_space<vmem>>, vector<1x1x16xf32>,
    %16 = arith.mulf %10, %10 : vector<128x16xf32>
    %cst_14 = arith.constant dense<0.000000e+00> : vector<16xf32>
    %17 = vector.multi_reduction <add>, %16, %cst_14 [0] : vector<128x16xf32> to vector<16xf32>
    %18 = vector.shape_cast %17 : vector<16xf32> to vector<1x16xf32>
    %19 = vector.shape_cast %18 : vector<1x16xf32> to vector<1x1x16xf32>
    %c0_15 = arith.constant 0 : index
    %c1 = arith.constant 1 : index
    %c0_16 = arith.constant 0 : index
    %20 = vector.load %arg6[%c0_15, %c1, %c0_16] : memref<1x2x16xf32, #tpu.memory_space<vmem>>, vector<1x1x16xf32>
    tpu.vector_store %arg6[%c0_15, %c1, %c0_16], %19 {strides = array<i32>} : memref<1x2x16xf32, #tpu.memory_space<vmem>>, vector<1x1x16xf32>,
    return
  }
  func.func @transform_0(%arg0: i32) -> (i32, i32) {
    %c0_i32 = arith.constant 0 : i32
    %c0_i32_0 = arith.constant 0 : i32
    return %arg0, %c0_i32 : i32, i32
  }
  func.func @transform_1(%arg0: i32) -> (i32, i32) {
    %c0_i32 = arith.constant 0 : i32
    %c0_i32_0 = arith.constant 0 : i32
    %c0_i32_1 = arith.constant 0 : i32
    return %c0_i32, %c0_i32_0 : i32, i32
  }
  func.func @transform_2(%arg0: i32) -> (i32, i32) {
    %c0_i32 = arith.constant 0 : i32
    %c0_i32_0 = arith.constant 0 : i32
    %c0_i32_1 = arith.constant 0 : i32
    return %c0_i32, %c0_i32_0 : i32, i32
  }
  func.func @transform_3(%arg0: i32) -> (i32, i32) {
    %c0_i32 = arith.constant 0 : i32
    %c0_i32_0 = arith.constant 0 : i32
    %c0_i32_1 = arith.constant 0 : i32
    return %c0_i32, %c0_i32_0 : i32, i32
  }
  func.func @transform_4(%arg0: i32) -> (i32, i32) {
    %c0_i32 = arith.constant 0 : i32
    %c0_i32_0 = arith.constant 0 : i32
    return %arg0, %c0_i32 : i32, i32
  }
  func.func @transform_5(%arg0: i32) -> (i32, i32, i32) {
    %c0_i32 = arith.constant 0 : i32
    %c0_i32_0 = arith.constant 0 : i32
    %c0_i32_1 = arith.constant 0 : i32
    return %arg0, %c0_i32, %c0_i32_0 : i32, i32, i32
  }
}

module attributes {stable_mosaic.version = 11 : i64} {
  func.func @kernel(%arg0: i32, %arg1: memref<256x4xf32, #tpu.memory_space<vmem>>, %arg2: memref<3x12x4xf32, #tpu.memory_space<vmem>>, %arg3: memref<1x4xf32, #tpu.memory_space<vmem>>, %arg4: memref<1x4xf32, #tpu.memory_space<vmem>>, %arg5: memref<1x256x4xf32, #tpu.memory_space<vmem>>, %arg6: memref<1x2x4xf32, #tpu.memory_space<vmem>>, %arg7: memref<18x18x4xf32, #tpu.memory_space<vmem>>) attributes {dimension_semantics = [#tpu.dimension_semantics<parallel>], iteration_bounds = array<i64: 2>, scalar_prefetch = 0 : i64, scratch_operands = 1 : i64, tpu.core_type = #tpu.core_type<tc>, window_params = [{transform_indices = @transform_0, window_bounds = array<i64: 256, 4>}, {pipeline_mode = #tpu.pipeline_mode<synchronous>, transform_indices = @transform_1, window_bounds = array<i64: 3, 12, 4>}, {pipeline_mode = #tpu.pipeline_mode<synchronous>, transform_indices = @transform_2, window_bounds = array<i64: 1, 4>}, {pipeline_mode = #tpu.pipeline_mode<synchronous>, transform_indices = @transform_3, window_bounds = array<i64: 1, 4>}, {transform_indices = @transform_4, window_bounds = array<i64: 1, 256, 4>}, {transform_indices = @transform_5, window_bounds = array<i64: 1, 2, 4>}]} {
    %c0 = arith.constant 0 : index
    %c0_0 = arith.constant 0 : index
    %0 = vector.load %arg1[%c0, %c0_0] : memref<256x4xf32, #tpu.memory_space<vmem>>, vector<256x4xf32>
    %c0_1 = arith.constant 0 : index
    %c0_2 = arith.constant 0 : index
    %1 = vector.load %arg3[%c0_1, %c0_2] : memref<1x4xf32, #tpu.memory_space<vmem>>, vector<1x4xf32>
    %2 = vector.broadcast %1 : vector<1x4xf32> to vector<256x4xf32>
    %3 = arith.mulf %0, %2 : vector<256x4xf32>
    %c0_3 = arith.constant 0 : index
    %c0_4 = arith.constant 0 : index
    %4 = vector.load %arg4[%c0_3, %c0_4] : memref<1x4xf32, #tpu.memory_space<vmem>>, vector<1x4xf32>
    %5 = vector.broadcast %4 : vector<1x4xf32> to vector<256x4xf32>
    %6 = arith.addf %3, %5 : vector<256x4xf32>
    %cst = arith.constant 0.000000e+00 : f32
    %7 = vector.broadcast %cst : f32 to vector<256x4xf32>
    %8 = arith.maximumf %6, %7 : vector<256x4xf32>
    %cst_5 = arith.constant 0.000000e+00 : f32
    %9 = vector.broadcast %cst_5 : f32 to vector<1x18x4xf32>
    %c0_6 = arith.constant 0 : index
    %c0_7 = arith.constant 0 : index
    %c0_8 = arith.constant 0 : index
    %10 = vector.load %arg7[%c0_6, %c0_7, %c0_8] : memref<18x18x4xf32, #tpu.memory_space<vmem>>, vector<1x18x4xf32>
    tpu.vector_store %arg7[%c0_6, %c0_7, %c0_8], %9 {strides = array<i32>} : memref<18x18x4xf32, #tpu.memory_space<vmem>>, vector<1x18x4xf32>,
    %cst_9 = arith.constant 0.000000e+00 : f32
    %11 = vector.broadcast %cst_9 : f32 to vector<1x18x4xf32>
    %c17 = arith.constant 17 : index
    %c0_10 = arith.constant 0 : index
    %c0_11 = arith.constant 0 : index
    %12 = vector.load %arg7[%c17, %c0_10, %c0_11] : memref<18x18x4xf32, #tpu.memory_space<vmem>>, vector<1x18x4xf32>
    tpu.vector_store %arg7[%c17, %c0_10, %c0_11], %11 {strides = array<i32>} : memref<18x18x4xf32, #tpu.memory_space<vmem>>, vector<1x18x4xf32>,
    %cst_12 = arith.constant 0.000000e+00 : f32
    %13 = vector.broadcast %cst_12 : f32 to vector<18x1x4xf32>
    %c0_13 = arith.constant 0 : index
    %c0_14 = arith.constant 0 : index
    %c0_15 = arith.constant 0 : index
    %14 = vector.load %arg7[%c0_13, %c0_14, %c0_15] : memref<18x18x4xf32, #tpu.memory_space<vmem>>, vector<18x1x4xf32>
    tpu.vector_store %arg7[%c0_13, %c0_14, %c0_15], %13 {strides = array<i32>} : memref<18x18x4xf32, #tpu.memory_space<vmem>>, vector<18x1x4xf32>,
    %cst_16 = arith.constant 0.000000e+00 : f32
    %15 = vector.broadcast %cst_16 : f32 to vector<18x1x4xf32>
    %c0_17 = arith.constant 0 : index
    %c17_18 = arith.constant 17 : index
    %c0_19 = arith.constant 0 : index
    %16 = vector.load %arg7[%c0_17, %c17_18, %c0_19] : memref<18x18x4xf32, #tpu.memory_space<vmem>>, vector<18x1x4xf32>
    tpu.vector_store %arg7[%c0_17, %c17_18, %c0_19], %15 {strides = array<i32>} : memref<18x18x4xf32, #tpu.memory_space<vmem>>, vector<18x1x4xf32>,
    %17 = vector.shape_cast %8 : vector<256x4xf32> to vector<16x16x4xf32>
    %c1 = arith.constant 1 : index
    %c1_20 = arith.constant 1 : index
    %c0_21 = arith.constant 0 : index
    %18 = vector.load %arg7[%c1, %c1_20, %c0_21] : memref<18x18x4xf32, #tpu.memory_space<vmem>>, vector<16x16x4xf32>
    tpu.vector_store %arg7[%c1, %c1_20, %c0_21], %17 {strides = array<i32>} : memref<18x18x4xf32, #tpu.memory_space<vmem>>, vector<16x16x4xf32>,
    %cst_22 = arith.constant 0.000000e+00 : f32
    %19 = vector.broadcast %cst_22 : f32 to vector<256x4xf32>
    %c0_23 = arith.constant 0 : index
    %c0_24 = arith.constant 0 : index
    %c0_25 = arith.constant 0 : index
    %20 = vector.load %arg7[%c0_23, %c0_24, %c0_25] : memref<18x18x4xf32, #tpu.memory_space<vmem>>, vector<16x16x4xf32>
    %c0_26 = arith.constant 0 : index
    %c1_27 = arith.constant 1 : index
    %c0_28 = arith.constant 0 : index
    %21 = vector.load %arg7[%c0_26, %c1_27, %c0_28] : memref<18x18x4xf32, #tpu.memory_space<vmem>>, vector<16x16x4xf32>
    %c0_29 = arith.constant 0 : index
    %c2 = arith.constant 2 : index
    %c0_30 = arith.constant 0 : index
    %22 = vector.load %arg7[%c0_29, %c2, %c0_30] : memref<18x18x4xf32, #tpu.memory_space<vmem>>, vector<16x16x4xf32>
    %23 = tpu.concatenate %20, %21, %22 in 2 : vector<16x16x4xf32>, vector<16x16x4xf32>, vector<16x16x4xf32> -> vector<16x16x12xf32>
    %24 = vector.shape_cast %23 : vector<16x16x12xf32> to vector<256x12xf32>
    %c0_31 = arith.constant 0 : index
    %c0_32 = arith.constant 0 : index
    %c0_33 = arith.constant 0 : index
    %25 = vector.load %arg2[%c0_31, %c0_32, %c0_33] : memref<3x12x4xf32, #tpu.memory_space<vmem>>, vector<1x12x4xf32>
    %26 = vector.shape_cast %25 : vector<1x12x4xf32> to vector<12x4xf32>
    %cst_34 = arith.constant dense<0.000000e+00> : vector<256x4xf32>
    %27 = tpu.matmul %24, %26, %cst_34 {dimension_numbers = #tpu.dot_dimension_numbers<[1], [0], [0], [1], [0, 0, 1, 1], [], []>} : vector<256x12xf32>, vector<12x4xf32>, vector<256x4xf32> -> vector<256x4xf32>
    %28 = arith.addf %19, %27 : vector<256x4xf32>
    %c1_35 = arith.constant 1 : index
    %c0_36 = arith.constant 0 : index
    %c0_37 = arith.constant 0 : index
    %29 = vector.load %arg7[%c1_35, %c0_36, %c0_37] : memref<18x18x4xf32, #tpu.memory_space<vmem>>, vector<16x16x4xf32>
    %c1_38 = arith.constant 1 : index
    %c1_39 = arith.constant 1 : index
    %c0_40 = arith.constant 0 : index
    %30 = vector.load %arg7[%c1_38, %c1_39, %c0_40] : memref<18x18x4xf32, #tpu.memory_space<vmem>>, vector<16x16x4xf32>
    %c1_41 = arith.constant 1 : index
    %c2_42 = arith.constant 2 : index
    %c0_43 = arith.constant 0 : index
    %31 = vector.load %arg7[%c1_41, %c2_42, %c0_43] : memref<18x18x4xf32, #tpu.memory_space<vmem>>, vector<16x16x4xf32>
    %32 = tpu.concatenate %29, %30, %31 in 2 : vector<16x16x4xf32>, vector<16x16x4xf32>, vector<16x16x4xf32> -> vector<16x16x12xf32>
    %33 = vector.shape_cast %32 : vector<16x16x12xf32> to vector<256x12xf32>
    %c1_44 = arith.constant 1 : index
    %c0_45 = arith.constant 0 : index
    %c0_46 = arith.constant 0 : index
    %34 = vector.load %arg2[%c1_44, %c0_45, %c0_46] : memref<3x12x4xf32, #tpu.memory_space<vmem>>, vector<1x12x4xf32>
    %35 = vector.shape_cast %34 : vector<1x12x4xf32> to vector<12x4xf32>
    %cst_47 = arith.constant dense<0.000000e+00> : vector<256x4xf32>
    %36 = tpu.matmul %33, %35, %cst_47 {dimension_numbers = #tpu.dot_dimension_numbers<[1], [0], [0], [1], [0, 0, 1, 1], [], []>} : vector<256x12xf32>, vector<12x4xf32>, vector<256x4xf32> -> vector<256x4xf32>
    %37 = arith.addf %28, %36 : vector<256x4xf32>
    %c2_48 = arith.constant 2 : index
    %c0_49 = arith.constant 0 : index
    %c0_50 = arith.constant 0 : index
    %38 = vector.load %arg7[%c2_48, %c0_49, %c0_50] : memref<18x18x4xf32, #tpu.memory_space<vmem>>, vector<16x16x4xf32>
    %c2_51 = arith.constant 2 : index
    %c1_52 = arith.constant 1 : index
    %c0_53 = arith.constant 0 : index
    %39 = vector.load %arg7[%c2_51, %c1_52, %c0_53] : memref<18x18x4xf32, #tpu.memory_space<vmem>>, vector<16x16x4xf32>
    %c2_54 = arith.constant 2 : index
    %c2_55 = arith.constant 2 : index
    %c0_56 = arith.constant 0 : index
    %40 = vector.load %arg7[%c2_54, %c2_55, %c0_56] : memref<18x18x4xf32, #tpu.memory_space<vmem>>, vector<16x16x4xf32>
    %41 = tpu.concatenate %38, %39, %40 in 2 : vector<16x16x4xf32>, vector<16x16x4xf32>, vector<16x16x4xf32> -> vector<16x16x12xf32>
    %42 = vector.shape_cast %41 : vector<16x16x12xf32> to vector<256x12xf32>
    %c2_57 = arith.constant 2 : index
    %c0_58 = arith.constant 0 : index
    %c0_59 = arith.constant 0 : index
    %43 = vector.load %arg2[%c2_57, %c0_58, %c0_59] : memref<3x12x4xf32, #tpu.memory_space<vmem>>, vector<1x12x4xf32>
    %44 = vector.shape_cast %43 : vector<1x12x4xf32> to vector<12x4xf32>
    %cst_60 = arith.constant dense<0.000000e+00> : vector<256x4xf32>
    %45 = tpu.matmul %42, %44, %cst_60 {dimension_numbers = #tpu.dot_dimension_numbers<[1], [0], [0], [1], [0, 0, 1, 1], [], []>} : vector<256x12xf32>, vector<12x4xf32>, vector<256x4xf32> -> vector<256x4xf32>
    %46 = arith.addf %37, %45 : vector<256x4xf32>
    %47 = vector.shape_cast %46 : vector<256x4xf32> to vector<1x256x4xf32>
    %c0_61 = arith.constant 0 : index
    %c0_62 = arith.constant 0 : index
    %c0_63 = arith.constant 0 : index
    %48 = vector.load %arg5[%c0_61, %c0_62, %c0_63] : memref<1x256x4xf32, #tpu.memory_space<vmem>>, vector<1x256x4xf32>
    tpu.vector_store %arg5[%c0_61, %c0_62, %c0_63], %47 {strides = array<i32>} : memref<1x256x4xf32, #tpu.memory_space<vmem>>, vector<1x256x4xf32>,
    %cst_64 = arith.constant dense<0.000000e+00> : vector<4xf32>
    %49 = vector.multi_reduction <add>, %46, %cst_64 [0] : vector<256x4xf32> to vector<4xf32>
    %50 = vector.shape_cast %49 : vector<4xf32> to vector<1x4xf32>
    %51 = vector.shape_cast %50 : vector<1x4xf32> to vector<1x1x4xf32>
    %c0_65 = arith.constant 0 : index
    %c0_66 = arith.constant 0 : index
    %c0_67 = arith.constant 0 : index
    %52 = vector.load %arg6[%c0_65, %c0_66, %c0_67] : memref<1x2x4xf32, #tpu.memory_space<vmem>>, vector<1x1x4xf32>
    tpu.vector_store %arg6[%c0_65, %c0_66, %c0_67], %51 {strides = array<i32>} : memref<1x2x4xf32, #tpu.memory_space<vmem>>, vector<1x1x4xf32>,
    %53 = arith.mulf %46, %46 : vector<256x4xf32>
    %cst_68 = arith.constant dense<0.000000e+00> : vector<4xf32>
    %54 = vector.multi_reduction <add>, %53, %cst_68 [0] : vector<256x4xf32> to vector<4xf32>
    %55 = vector.shape_cast %54 : vector<4xf32> to vector<1x4xf32>
    %56 = vector.shape_cast %55 : vector<1x4xf32> to vector<1x1x4xf32>
    %c0_69 = arith.constant 0 : index
    %c1_70 = arith.constant 1 : index
    %c0_71 = arith.constant 0 : index
    %57 = vector.load %arg6[%c0_69, %c1_70, %c0_71] : memref<1x2x4xf32, #tpu.memory_space<vmem>>, vector<1x1x4xf32>
    tpu.vector_store %arg6[%c0_69, %c1_70, %c0_71], %56 {strides = array<i32>} : memref<1x2x4xf32, #tpu.memory_space<vmem>>, vector<1x1x4xf32>,
    return
  }
  func.func @transform_0(%arg0: i32) -> (i32, i32) {
    %c0_i32 = arith.constant 0 : i32
    %c0_i32_0 = arith.constant 0 : i32
    return %arg0, %c0_i32 : i32, i32
  }
  func.func @transform_1(%arg0: i32) -> (i32, i32, i32) {
    %c0_i32 = arith.constant 0 : i32
    %c0_i32_0 = arith.constant 0 : i32
    %c0_i32_1 = arith.constant 0 : i32
    %c0_i32_2 = arith.constant 0 : i32
    return %c0_i32, %c0_i32_0, %c0_i32_1 : i32, i32, i32
  }
  func.func @transform_2(%arg0: i32) -> (i32, i32) {
    %c0_i32 = arith.constant 0 : i32
    %c0_i32_0 = arith.constant 0 : i32
    %c0_i32_1 = arith.constant 0 : i32
    return %c0_i32, %c0_i32_0 : i32, i32
  }
  func.func @transform_3(%arg0: i32) -> (i32, i32) {
    %c0_i32 = arith.constant 0 : i32
    %c0_i32_0 = arith.constant 0 : i32
    %c0_i32_1 = arith.constant 0 : i32
    return %c0_i32, %c0_i32_0 : i32, i32
  }
  func.func @transform_4(%arg0: i32) -> (i32, i32, i32) {
    %c0_i32 = arith.constant 0 : i32
    %c0_i32_0 = arith.constant 0 : i32
    %c0_i32_1 = arith.constant 0 : i32
    return %arg0, %c0_i32, %c0_i32_0 : i32, i32, i32
  }
  func.func @transform_5(%arg0: i32) -> (i32, i32, i32) {
    %c0_i32 = arith.constant 0 : i32
    %c0_i32_0 = arith.constant 0 : i32
    %c0_i32_1 = arith.constant 0 : i32
    return %arg0, %c0_i32, %c0_i32_0 : i32, i32, i32
  }
}

module attributes {stable_mosaic.version = 11 : i64} {
  func.func @_final_proj_kernel(%arg0: i32, %arg1: memref<128x16xf32, #tpu.memory_space<vmem>>, %arg2: memref<128x16xf32, #tpu.memory_space<vmem>>, %arg3: memref<1x16xf32, #tpu.memory_space<vmem>>, %arg4: memref<1x16xf32, #tpu.memory_space<vmem>>, %arg5: memref<1x16xf32, #tpu.memory_space<vmem>>, %arg6: memref<1x16xf32, #tpu.memory_space<vmem>>, %arg7: memref<128x16xf32, #tpu.memory_space<vmem>>) attributes {dimension_semantics = [#tpu.dimension_semantics<parallel>], iteration_bounds = array<i64: 4>, scalar_prefetch = 0 : i64, scratch_operands = 0 : i64, tpu.core_type = #tpu.core_type<tc>, window_params = [{transform_indices = @transform_0, window_bounds = array<i64: 128, 16>}, {transform_indices = @transform_1, window_bounds = array<i64: 128, 16>}, {pipeline_mode = #tpu.pipeline_mode<synchronous>, transform_indices = @transform_2, window_bounds = array<i64: 1, 16>}, {pipeline_mode = #tpu.pipeline_mode<synchronous>, transform_indices = @transform_3, window_bounds = array<i64: 1, 16>}, {pipeline_mode = #tpu.pipeline_mode<synchronous>, transform_indices = @transform_4, window_bounds = array<i64: 1, 16>}, {pipeline_mode = #tpu.pipeline_mode<synchronous>, transform_indices = @transform_5, window_bounds = array<i64: 1, 16>}, {transform_indices = @transform_6, window_bounds = array<i64: 128, 16>}]} {
    %c0 = arith.constant 0 : index
    %c0_0 = arith.constant 0 : index
    %0 = vector.load %arg1[%c0, %c0_0] : memref<128x16xf32, #tpu.memory_space<vmem>>, vector<128x16xf32>
    %c0_1 = arith.constant 0 : index
    %c0_2 = arith.constant 0 : index
    %1 = vector.load %arg3[%c0_1, %c0_2] : memref<1x16xf32, #tpu.memory_space<vmem>>, vector<1x16xf32>
    %2 = vector.broadcast %1 : vector<1x16xf32> to vector<128x16xf32>
    %3 = arith.mulf %0, %2 : vector<128x16xf32>
    %c0_3 = arith.constant 0 : index
    %c0_4 = arith.constant 0 : index
    %4 = vector.load %arg4[%c0_3, %c0_4] : memref<1x16xf32, #tpu.memory_space<vmem>>, vector<1x16xf32>
    %5 = vector.broadcast %4 : vector<1x16xf32> to vector<128x16xf32>
    %6 = arith.addf %3, %5 : vector<128x16xf32>
    %c0_5 = arith.constant 0 : index
    %c0_6 = arith.constant 0 : index
    %7 = vector.load %arg2[%c0_5, %c0_6] : memref<128x16xf32, #tpu.memory_space<vmem>>, vector<128x16xf32>
    %c0_7 = arith.constant 0 : index
    %c0_8 = arith.constant 0 : index
    %8 = vector.load %arg5[%c0_7, %c0_8] : memref<1x16xf32, #tpu.memory_space<vmem>>, vector<1x16xf32>
    %9 = vector.broadcast %8 : vector<1x16xf32> to vector<128x16xf32>
    %10 = arith.mulf %7, %9 : vector<128x16xf32>
    %c0_9 = arith.constant 0 : index
    %c0_10 = arith.constant 0 : index
    %11 = vector.load %arg6[%c0_9, %c0_10] : memref<1x16xf32, #tpu.memory_space<vmem>>, vector<1x16xf32>
    %12 = vector.broadcast %11 : vector<1x16xf32> to vector<128x16xf32>
    %13 = arith.addf %10, %12 : vector<128x16xf32>
    %14 = arith.addf %6, %13 : vector<128x16xf32>
    %cst = arith.constant 0.000000e+00 : f32
    %15 = vector.broadcast %cst : f32 to vector<128x16xf32>
    %16 = arith.maximumf %14, %15 : vector<128x16xf32>
    %c0_11 = arith.constant 0 : index
    %c0_12 = arith.constant 0 : index
    %17 = vector.load %arg7[%c0_11, %c0_12] : memref<128x16xf32, #tpu.memory_space<vmem>>, vector<128x16xf32>
    tpu.vector_store %arg7[%c0_11, %c0_12], %16 {strides = array<i32>} : memref<128x16xf32, #tpu.memory_space<vmem>>, vector<128x16xf32>,
    return
  }
  func.func @transform_0(%arg0: i32) -> (i32, i32) {
    %c0_i32 = arith.constant 0 : i32
    %c0_i32_0 = arith.constant 0 : i32
    return %arg0, %c0_i32 : i32, i32
  }
  func.func @transform_1(%arg0: i32) -> (i32, i32) {
    %c0_i32 = arith.constant 0 : i32
    %c0_i32_0 = arith.constant 0 : i32
    return %arg0, %c0_i32 : i32, i32
  }
  func.func @transform_2(%arg0: i32) -> (i32, i32) {
    %c0_i32 = arith.constant 0 : i32
    %c0_i32_0 = arith.constant 0 : i32
    %c0_i32_1 = arith.constant 0 : i32
    return %c0_i32, %c0_i32_0 : i32, i32
  }
  func.func @transform_3(%arg0: i32) -> (i32, i32) {
    %c0_i32 = arith.constant 0 : i32
    %c0_i32_0 = arith.constant 0 : i32
    %c0_i32_1 = arith.constant 0 : i32
    return %c0_i32, %c0_i32_0 : i32, i32
  }
  func.func @transform_4(%arg0: i32) -> (i32, i32) {
    %c0_i32 = arith.constant 0 : i32
    %c0_i32_0 = arith.constant 0 : i32
    %c0_i32_1 = arith.constant 0 : i32
    return %c0_i32, %c0_i32_0 : i32, i32
  }
  func.func @transform_5(%arg0: i32) -> (i32, i32) {
    %c0_i32 = arith.constant 0 : i32
    %c0_i32_0 = arith.constant 0 : i32
    %c0_i32_1 = arith.constant 0 : i32
    return %c0_i32, %c0_i32_0 : i32, i32
  }
  func.func @transform_6(%arg0: i32) -> (i32, i32) {
    %c0_i32 = arith.constant 0 : i32
    %c0_i32_0 = arith.constant 0 : i32
    return %arg0, %c0_i32 : i32, i32
  }
}

</mosaic_0001>

<bundles_post_ra>
// kernel: bottleneck_forward.6
= control target key start
LH: loop header
LB: loop body
LE: loop exit
PB: predicated region body
PF: predicated region fallthrough
CT: control target
= control target key end

     0   :  { %11 = vsyncpa [#allocation3], 0  ;;  %s1733_s0 = inlined_call_operand.hbm [shape: f32[512,4], index: 0, kind: input, shape index: {}]   ;;  %s1734_s1 = inlined_call_operand.hbm [shape: f32[1,4], index: 1, kind: input, shape index: {}]   ;;  %s1735_s2 = inlined_call_operand.hbm [shape: f32[1,4], index: 2, kind: input, shape index: {}]   ;;  %s1736_s3 = inlined_call_operand.hbm [shape: f32[4,16], index: 3, kind: input, shape index: {}]   ;;  %s1737_s4 = inlined_call_operand.hbm [shape: f32[512,16], index: 4, kind: output, shape index: {0}]   ;;  %s1738_s5 = inlined_call_operand.hbm [shape: f32[4,2,16], index: 5, kind: output, shape index: {1}]  }
   0x1   :  { %13 = vsyncpa [#allocation3 + $0x1], 0 }
   0x2   :  { %14 = vsyncpa [#allocation6], 0 }
   0x3   :  { %15 = vsyncpa [#allocation9], 0 }
   0x4   :  { %16 = vsyncpa [#allocation4], 0 }
   0x5   :  { %18 = vsyncpa [#allocation4 + $0x1], 0 }
   0x6   :  { %19 = vsyncpa [#allocation12], 0 }
   0x7   :  { %21 = vsyncpa [#allocation12 + $0x1], 0  ;;  %s1284_s18 = smov 0   ;;  %s1286_s19 = smov 0  }
   0x8   :  { %s1288_s20 = smov 0   ;;  %s1290_s21 = smov 0  }
   0x9 LB: > { %s1305_s22 = sadd.s32 4294967295, %s1242_s21   ;;  %s847_s23 = sadd.s32 4294967294, %s1242_s21   ;;  %s1242_s21 = sphi %s1290_s21, %s1760_s21   ;;  %s1238_s20 = sphi %s1288_s20, %s1759_s20   ;;  %s1234_s19 = sphi %s1286_s19, %s1758_s19   ;;  %s1230_s18 = sphi %s1284_s18, %s1757_s18  }
   0xa   : > { %p47_p0 = scmp.ne.s32.totalorder %s1234_s19, %s1230_s18  ;;  %p1739_p1 = scmp.eq.s32.totalorder %s1305_s22, 0 }
   0xb   : > { %p140_p3 = scmp.eq.s32.totalorder %s847_s23, 3  ;;  %p848_p5 = scmp.ge.s32.totalorder %s1242_s21, 1 }
   0xc   : > { %p1314_p4 = por %p1739_p1, %p47_p0  ;;  %p173_p7 = scmp.lt.s32.totalorder %s1242_s21, 5 }
   0xd   : > { %p1319_p6 = por %p140_p3, %p47_p0  ;;  %s1244_s27 = smov [#allocation5]  }
   0xe   : > { %s1742_s24 = scalar_select %p1314_p4, 1, 0 }
   0xf   : > { %s1743_s25 = scalar_select %p1319_p6, 1, 0 }
  0x10   : > { %p1324_p8 = pnand %p848_p5, %p173_p7  ;;  %s186_s28 = sshll.u32 %s1244_s27, 4  ;;  %s187_s28 = int_to_ptr.vmem [resolvable:$true] %s186_s28 }
  0x11   : > { %s1245_s29 = smov [#allocation7]   ;;  %s1246_s7 = smov [#allocation8]  }
  0x12   : > { %s1744_s26 = scalar_select %p1324_p8, 1, 0 }
  0x13   : > { %p954_p9 = pneg %p1324_p8  ;;  %s197_s30 = sshll.u32 %s1245_s29, 4  ;;  %s1336_s30 = int_to_ptr.vmem [resolvable:$true] %s197_s30 }
  0x14   : > { %s208_s8 = sshll.u32 %s1246_s7, 4  ;;  %s1022_s11 = scalar_lea.hbm %s1734_s1, 16  ;;  %s1338_s8 = int_to_ptr.vmem [resolvable:$true] %s208_s8 }
  0x15   : > { %p1332_p10 = pnand %p954_p9, %p1739_p1  ;;  %p1023_p11 = scmp.ne.s32.totalorder %s1734_s1, %s1022_s11 }
  0x16   : > { %p1029_p3 = scmp.lt.u32.totalorder %s1022_s11, %s1734_s1 }
  0x17   : > { %p1348_p12 = pneg %p1332_p10 }
  0x19   : > { %p1025_p13 = pnand %p1348_p12, %p1023_p11 }
  0x1b   : > { %p1026_p0 = pneg %p1025_p13 }
  0x1d   : > { %p1031_p5 = pnand %p1029_p3, %p1026_p0 }
  0x1f   : > { %1034 = shalt.err (!%p1031_p5)
}
  0x20   : > { %s1035_s17 = scalar_lea.vmem %s187_s28, 16  ;;  %s1042_s23 = scalar_lea.vmem %s187_s28, 32 }
  0x21   : > { %p1036_p7 = scmp.ne.s32.totalorder %s187_s28, %s1035_s17  ;;  %p1043_p2 = scmp.lt.s32.totalorder %s187_s28, %s187_s28 }
  0x22   : > { %p1044_p6 = scmp.lt.s32.totalorder %s1042_s23, %s1035_s17 }
  0x23   : > { %p1038_p9 = pnand %p1036_p7, %p1348_p12 }
  0x24   : > { %p1045_p4 = por %p1044_p6, %p1043_p2 }
  0x25   : > { %p1039_p1 = pneg %p1038_p9 }
  0x27   : > { %p1046_p8 = pnand %p1045_p4, %p1039_p1 }
  0x29   : > { %1049 = shalt.err (!%p1046_p8)
}
  0x2a   : > { %957 = dma.hbm_to_vmem [thread:$0]  (!%p1332_p10), %s1734_s1, 16, %s187_s28, [#allocation6]  }
  0x2b   : > { %s1050_s10 = scalar_lea.hbm %s1735_s2, 16 }
  0x2c   : > { %p1051_p11 = scmp.ne.s32.totalorder %s1735_s2, %s1050_s10  ;;  %p1057_p1 = scmp.lt.u32.totalorder %s1050_s10, %s1735_s2 }
  0x2e   : > { %p1053_p13 = pnand %p1051_p11, %p1348_p12 }
  0x30   : > { %p1054_p2 = pneg %p1053_p13 }
  0x32   : > { %p1059_p4 = pnand %p1057_p1, %p1054_p2 }
  0x34   : > { %1062 = shalt.err (!%p1059_p4)
}
  0x35   : > { %s1063_s28 = scalar_lea.vmem %s1336_s30, 16  ;;  %s1070_s16 = scalar_lea.vmem %s1336_s30, 32 }
  0x36   : > { %p1064_p6 = scmp.ne.s32.totalorder %s1336_s30, %s1063_s28  ;;  %p1071_p3 = scmp.lt.s32.totalorder %s1336_s30, %s1336_s30 }
  0x37   : > { %p1072_p5 = scmp.lt.s32.totalorder %s1070_s16, %s1063_s28 }
  0x38   : > { %p1066_p8 = pnand %p1064_p6, %p1348_p12 }
  0x39   : > { %p1073_p7 = por %p1072_p5, %p1071_p3 }
  0x3a   : > { %p1067_p0 = pneg %p1066_p8 }
  0x3c   : > { %p1074_p9 = pnand %p1073_p7, %p1067_p0 }
  0x3e   : > { %1077 = shalt.err (!%p1074_p9)
}
  0x3f   : > { %960 = dma.hbm_to_vmem [thread:$0]  (!%p1332_p10), %s1735_s2, 16, %s1336_s30, [#allocation6]  }
  0x40   : > { %s1078_s7 = scalar_lea.hbm %s1736_s3, 64 }
  0x41   : > { %p1079_p11 = scmp.ne.s32.totalorder %s1736_s3, %s1078_s7  ;;  %p1085_p1 = scmp.lt.u32.totalorder %s1078_s7, %s1736_s3 }
  0x43   : > { %p1081_p13 = pnand %p1079_p11, %p1348_p12 }
  0x45   : > { %p1082_p2 = pneg %p1081_p13 }
  0x47   : > { %p1087_p4 = pnand %p1085_p1, %p1082_p2 }
  0x49   : > { %1090 = shalt.err (!%p1087_p4)
}
  0x4a   : > { %s1091_s30 = scalar_lea.vmem %s1338_s8, 64  ;;  %p1099_p3 = scmp.lt.s32.totalorder %s1338_s8, %s1338_s8 }
  0x4b   : > { %p1092_p6 = scmp.ne.s32.totalorder %s1338_s8, %s1091_s30  ;;  %p1100_p5 = scmp.lt.s32.totalorder %s1091_s30, %s1091_s30 }
  0x4d   : > { %p1094_p8 = pnand %p1092_p6, %p1348_p12  ;;  %p1101_p7 = por %p1100_p5, %p1099_p3 }
  0x4f   : > { %p1095_p0 = pneg %p1094_p8 }
  0x51   : > { %p1102_p9 = pnand %p1101_p7, %p1095_p0 }
  0x53   : > { %1105 = shalt.err (!%p1102_p9)
}
  0x54   : > { %963 = dma.hbm_to_vmem [thread:$0]  (!%p1332_p10), %s1736_s3, 64, %s1338_s8, [#allocation9]  }
  0x55   : > { %s1412_s14 = sadd.s32 1, %s1242_s21   ;;  %s34_s28 = sadd.s32 1, %s1238_s20 }
  0x56   : > { %s31_s6 = ssub.s32 %s1242_s21, %s1412_s14  ;;  %p41_p11 = scmp.ne.s32.totalorder %s1238_s20, %s1234_s19 }
  0x57   : > { %p32_p12 = scmp.eq.s32.totalorder %s31_s6, 0  ;;  %p42_p13 = scmp.eq.s32.totalorder %s1242_s21, 0 }
  0x58   : > { %p978_p2 = scmp.lt.s32.totalorder %s1242_s21, 4  ;;  %p1747_p4 = scmp.eq.s32.totalorder %s1305_s22, 3 }
  0x59   : > { %s1422_s16 = scalar_select %p32_p12, %s1238_s20, %s34_s28  }
  0x5a   : > { %p43_p1 = por %p42_p13, %p41_p11  ;;  %p1426_p6 = por %p1747_p4, %p41_p11 }
  0x5b   : > { %s219_s23 = sand.u32 1, %s1238_s20   ;;  %s889_s27 = sshll.u32 %s1242_s21, 11 }
  0x5c   : > { %s853_s8 = sshll.u32 %s219_s23, 7  ;;  %s1435_s9 = scalar_lea.hbm %s1733_s0, %s889_s27 }
  0x5d   : > { %s223_s10 = scalar_lea.vmem [#allocation2], %s853_s8  ;;  %p1437_p10 = pnand %p978_p2, %p43_p1 }
  0x5e   : > { %s230_s11 = sshll.u32 %s223_s10, 4  ;;  %s1443_s30 = scalar_lea.sflag [#allocation3], %s219_s23  ;;  %s1441_s11 = int_to_ptr.vmem [resolvable:$true] %s230_s11 }
  0x5f   : > { %s1106_s13 = scalar_lea.hbm %s1435_s9, 2048  ;;  %p1108_p0 = pneg %p1437_p10 }
  0x60   : > { %p1107_p8 = scmp.ne.s32.totalorder %s1435_s9, %s1106_s13  ;;  %s1111_s28 = scalar_lea.hbm %s1733_s0, 8192 }
  0x61   : > { %p1112_p7 = scmp.lt.u32.totalorder %s1435_s9, %s1733_s0  ;;  %p1113_p9 = scmp.lt.u32.totalorder %s1111_s28, %s1106_s13 }
  0x62   : > { %p1109_p3 = pnand %p1108_p0, %p1107_p8  ;;  %p1115_p11 = scmp.lt.u32.totalorder %s1106_s13, %s1435_s9 }
  0x63   : > { %p1114_p12 = por %p1113_p9, %p1112_p7 }
  0x64   : > { %p1110_p5 = pneg %p1109_p3 }
  0x65   : > { %p1116_p13 = por %p1115_p11, %p1114_p12 }
  0x67   : > { %p1117_p2 = pnand %p1116_p13, %p1110_p5 }
  0x69   : > { %1120 = shalt.err (!%p1117_p2)
}
  0x6a   : > { %s1121_s23 = scalar_lea.vmem %s1441_s11, 2048  ;;  %s1247_s29 = smov [#allocation2]  }
  0x6b   : > { %p1122_p1 = scmp.ne.s32.totalorder %s1441_s11, %s1121_s23  ;;  %s1126_s7 = sshll.u32 %s1247_s29, 4  ;;  %s1127_s7 = int_to_ptr.vmem [resolvable:$false] %s1126_s7 }
  0x6c   : > { %s1128_s10 = scalar_lea.vmem %s1127_s7, 4096  ;;  %p1129_p3 = scmp.lt.s32.totalorder %s1441_s11, %s1127_s7 }
  0x6d   : > { %p1124_p4 = pnand %p1122_p1, %p1108_p0  ;;  %p1130_p7 = scmp.lt.s32.totalorder %s1128_s10, %s1121_s23 }
  0x6f   : > { %p1125_p8 = pneg %p1124_p4  ;;  %p1131_p9 = por %p1130_p7, %p1129_p3 }
  0x71   : > { %p1132_p12 = pnand %p1131_p9, %p1125_p8 }
  0x73   : > { %1135 = shalt.err (!%p1132_p12)
}
  0x74   : > { %s1248_s13 = smov 128   ;;  %s1249_s15 = smov 8  }
  0x75   : > { %967 = dma.hbm_to_vmem [thread:$0]  (!%p1437_p10), %s1435_s9, 2048, %s1441_s11, %s1443_s30, %s1248_s13, %s1248_s13, %s1249_s15  }
  0x76   : > { %p1750_p0 = scmp.ne.s32.totalorder %s1744_s26, 0 }
  0x77   : > { %s1474_s6 = sand.u32 (!%p1750_p0), 1, %s1234_s19   ;;  %p1751_p5 = scmp.ne.s32.totalorder (!%p1750_p0), %s1742_s24, 0 }
  0x78   : > { %242 = sbr.rel (%p1750_p0) target bundleno = 429 (0x1ad), region = 36  ;;  %s857_s28 = sshll.u32 (!%p1750_p0), %s1474_s6, 7 }
  0x79   : > { %s245_s27 = scalar_lea.sflag (!%p1750_p0), [#allocation3], %s1474_s6  ;;  %s1480_s8 = scalar_lea.vmem (!%p1750_p0), [#allocation2], %s857_s28 }
  0x7f   : > { %1209 = dma.done.wait (%p1751_p5), %s245_s27, 2048  }
  0x80   : > { %1211 = vsyncadd (%p1751_p5), %s245_s27, 4294965248  ;;  %p1752_p10 = scmp.eq.s32.totalorder %s1305_s22, 0 }
  0x82   : > { %1213 = dma.done.wait (%p1752_p10), [#allocation6], 32   ;;  %p1753_p11 = pmov %p1752_p10 }
  0x83   : > { %p1754_p13 = pmov %p1752_p10 }
  0x84   : > { %1215 = vsyncadd (%p1753_p11), [#allocation6], 4294967264 }
  0x85   : > { %1217 = dma.done.wait (%p1754_p13), [#allocation9], 64   ;;  %p1755_p2 = pmov %p1752_p10 }
  0x86   : > { %vm422_vm0 = vcmask 1043456   ;;  %v372_v0 = vld [vmem:[#allocation8] sm:$0xf]  ;;  %v1495_v2 = vld [vmem:[#allocation5] ss:$0 sm:$0xff]  ;;  %v295_v5 = vld [vmem:[%s1480_s8 + $0x8] sm:$0xff] }
  0x87   : > { %1219 = vsyncadd (%p1755_p2), [#allocation9], 4294967232  ;;  %v294_v1 = vld [vmem:[%s1480_s8] sm:$0xff]  ;;  %908 = vmatprep.subr.msk.mxu0 %vm422_vm0, %v372_v0  ;;  %v296_v6 = vld [vmem:[%s1480_s8 + $0x10] sm:$0xff]  ;;  %934 = vmatprep.subr.msk.mxu1 %vm422_vm0, %v372_v0  ;;  %v318_v7 = vmul.f32 %v1495_v2, %v295_v5  ;;  %vm373_vm1 = vcmask 31744   ;;  %vm571_vm2 = vcmask 130048  }
  0x88   : > { %v317_v3 = vmul.f32 %v1495_v2, %v294_v1  ;;  %v1499_v4 = vld [vmem:[#allocation7] ss:$0 sm:$0xff]  ;;  %909 = vmatpush3.msk.msra.mxu0 %vm422_vm0, %v372_v0  ;;  %v319_v8 = vmul.f32 %v1495_v2, %v296_v6  ;;  %v297_v9 = vld [vmem:[%s1480_s8 + $0x18] sm:$0xff]  ;;  %v299_v11 = vld [vmem:[%s1480_s8 + $0x28] sm:$0xff]  ;;  %935 = vmatpush3.msk.msra.mxu1 %vm422_vm0, %v372_v0  ;;  %s1568_s24 = scalar_lea.vmem [#allocation10], %s857_s28  ;;  %s890_s26 = sshll.u32 %s1305_s22, 11 }
  0x89   : > { %v298_v10 = vld [vmem:[%s1480_s8 + $0x20] sm:$0xff]  ;;  %v320_v13 = vmul.f32 %v1495_v2, %v297_v9  ;;  %v322_v15 = vmul.f32 %v1495_v2, %v299_v11  ;;  %v300_v16 = vld [vmem:[%s1480_s8 + $0x30] sm:$0xff]  ;;  %v341_v17 = vadd.f32 %v1499_v4, %v318_v7  ;;  %v301_v20 = vld [vmem:[%s1480_s8 + $0x38] sm:$0xff]  ;;  %s700_s9 = sshll.u32 %s1568_s24, 4  ;;  %s1625_s30 = scalar_lea.hbm %s1737_s4, %s890_s26  ;;  %s1627_s9 = int_to_ptr.vmem [resolvable:$true] %s700_s9 }
  0x8a   : > { %v340_v12 = vadd.f32 %v1499_v4, %v317_v3  ;;  %v321_v14 = vmul.f32 %v1495_v2, %v298_v10  ;;  %v342_v18 = vadd.f32 %v1499_v4, %v319_v8  ;;  %v323_v19 = vmul.f32 %v1495_v2, %v300_v16  ;;  %v302_v21 = vld [vmem:[%s1480_s8 + $0x40] sm:$0xff]  ;;  %v303_v25 = vld [vmem:[%s1480_s8 + $0x48] sm:$0xff]  ;;  %v304_v26 = vld [vmem:[%s1480_s8 + $0x50] sm:$0xff]  ;;  %s682_s23 = scalar_lea.sflag [#allocation4], %s1474_s6  ;;  %s1136_s29 = scalar_lea.vmem %s1627_s9, 2048 }
  0x8b   : > { %v343_v23 = vadd.f32 %v1499_v4, %v320_v13  ;;  %v357_v27 = vmax.f32 %v341_v17, 0.0  ;;  %v305_v29 = vld [vmem:[%s1480_s8 + $0x58] sm:$0xff]  ;;  %v306_v30 = vld [vmem:[%s1480_s8 + $0x60] sm:$0xff]  ;;  %v345_v31 = vadd.f32 %v1499_v4, %v322_v15  ;;  %v324_v32 = vmul.f32 %v1495_v2, %v301_v20  ;;  %v307_v34 = vld [vmem:[%s1480_s8 + $0x68] sm:$0xff]  ;;  %p1137_p1 = scmp.ne.s32.totalorder %s1627_s9, %s1136_s29  ;;  %s1250_s7 = smov [#allocation10]  }
  0x8c   : > { %v356_v22 = vmax.f32 %v340_v12, 0.0  ;;  %v344_v24 = vadd.f32 %v1499_v4, %v321_v14  ;;  %v358_v28 = vmax.f32 %v342_v18, 0.0  ;;  %v325_v33 = vmul.f32 %v1495_v2, %v302_v21  ;;  %v308_v39 = vld [vmem:[%s1480_s8 + $0x70] sm:$0xff]  ;;  %v309_v51 = vld [vmem:[%s1480_s8 + $0x78] sm:$0xff]  ;;  %s1140_s10 = sshll.u32 %s1250_s7, 4  ;;  %s1141_s10 = int_to_ptr.vmem [resolvable:$false] %s1140_s10 }
  0x8d   : > { %v359_v35 = vmax.f32 %v343_v23, 0.0  ;;  %v346_v36 = vadd.f32 %v1499_v4, %v323_v19  ;;  %v326_v37 = vmul.f32 %v1495_v2, %v303_v25  ;;  %v327_v38 = vmul.f32 %v1495_v2, %v304_v26  ;;  %p1138_p4 = pnand %p1137_p1, %p1426_p6  ;;  %s1142_s13 = scalar_lea.vmem %s1141_s10, 4096 }
  0x8e   : > { %910 = vmatprep.mubr.msk.f32.mxu0 %vm373_vm1, %v356_v22  ;;  %v360_v40 = vmax.f32 %v344_v24, 0.0  ;;  %v348_v41 = vadd.f32 %v1499_v4, %v325_v33  ;;  %v328_v42 = vmul.f32 %v1495_v2, %v305_v29  ;;  %v329_v43 = vmul.f32 %v1495_v2, %v306_v30  ;;  %p1143_p3 = scmp.lt.s32.totalorder %s1627_s9, %s1141_s10  ;;  %p1144_p7 = scmp.lt.s32.totalorder %s1142_s13, %s1136_s29 }
  0x8f   : > { %911 = vmatmul.mubr.msk.f32.vlgmr.msra.gmra.mrb[0].mxu0 %vm373_vm1, %v357_v27  ;;  %v349_v44 = vadd.f32 %v1499_v4, %v326_v37  ;;  %v350_v45 = vadd.f32 %v1499_v4, %v327_v38  ;;  %v330_v46 = vmul.f32 %v1495_v2, %v307_v34  ;;  %v331_v50 = vmul.f32 %v1495_v2, %v308_v39  ;;  %p1139_p8 = pneg %p1138_p4 }
  0x90   : > { %913 = vmatprep.mubr.msk.f32.mxu0 %vm373_vm1, %v358_v28  ;;  %v364_v47 = vmax.f32 %v348_v41, 0.0  ;;  %v351_v48 = vadd.f32 %v1499_v4, %v328_v42  ;;  %v352_v49 = vadd.f32 %v1499_v4, %v329_v43  ;;  %v361_v52 = vmax.f32 %v345_v31, 0.0  ;;  %p1145_p9 = por %p1144_p7, %p1143_p3 }
  0x91   : > { %v347_v53 = vadd.f32 %v1499_v4, %v324_v32  ;;  %v365_v54 = vmax.f32 %v349_v44, 0.0  ;;  %v366_v55 = vmax.f32 %v350_v45, 0.0  ;;  %v362_v56 = vmax.f32 %v346_v36, 0.0 }
  0x92   : > { %922 = vmatprep.mubr.msk.f32.mxu1 %vm373_vm1, %v364_v47  ;;  %v367_v57 = vmax.f32 %v351_v48, 0.0  ;;  %v353_v58 = vadd.f32 %v1499_v4, %v330_v46  ;;  %v332_v59 = vmul.f32 %v1495_v2, %v309_v51  ;;  %v368_v60 = vmax.f32 %v352_v49, 0.0  ;;  %p1146_p12 = pnand %p1145_p9, %p1139_p8 }
  0x93   : > { %914 = vmatmul.mubr.msk.f32.gmra.mrb[2].mxu0 %vm373_vm1, %v359_v35  ;;  %923 = vmatmul.mubr.msk.f32.vlgmr.msra.gmra.mrb[0].mxu1 %vm373_vm1, %v365_v54  ;;  %v354_v61 = vadd.f32 %v1499_v4, %v331_v50  ;;  %v363_v62 = vmax.f32 %v347_v53, 0.0 }
  0x94   : > { %916 = vmatprep.mubr.msk.f32.mxu0 %vm373_vm1, %v360_v40  ;;  %925 = vmatprep.mubr.msk.f32.mxu1 %vm373_vm1, %v366_v55  ;;  %v369_v63 = vmax.f32 %v353_v58, 0.0  ;;  %v355_v0 = vadd.f32 %v1499_v4, %v332_v59 }
  0x95   : > { %v370_v1 = vmax.f32 %v354_v61, 0.0 }
  0x96   : > { %v371_v2 = vmax.f32 %v355_v0, 0.0 }
  0x97   : > { %917 = vmatmul.mubr.msk.f32.gmra.mrb[4].mxu0 %vm373_vm1, %v361_v52  ;;  %926 = vmatmul.mubr.msk.f32.gmra.mrb[2].mxu1 %vm373_vm1, %v367_v57 }
  0x98   : > { %919 = vmatprep.mubr.msk.f32.mxu0 %vm373_vm1, %v362_v56  ;;  %928 = vmatprep.mubr.msk.f32.mxu1 %vm373_vm1, %v368_v60 }
  0x9b   : > { %920 = vmatmul.mubr.msk.f32.gmra.mrb[6].mxu0 %vm373_vm1, %v363_v62  ;;  %929 = vmatmul.mubr.msk.f32.gmra.mrb[4].mxu1 %vm373_vm1, %v369_v63 }
  0x9c   : > { %931 = vmatprep.mubr.msk.f32.mxu1 %vm373_vm1, %v370_v1 }
  0x9f   : > { %932 = vmatmul.mubr.msk.f32.gmra.mrb[6].mxu1 %vm373_vm1, %v371_v2 }
 0x162   : > { %v912_v3 = vpop.f32.mrb[0].mxu0 }
 0x163   : > { %573 = vst.msk [vmem:[%s1568_s24 + $0x8] sm:$0xff] %vm571_vm2, %v912_v3  ;;  %v589_v4 = vsel %vm571_vm2, %v912_v3, 0.0  ;;  %v628_v5 = vmul.f32 %v912_v3, %v912_v3  ;;  %v492_v6 = vpop.f32.mrb[1].mxu0 }
 0x164   : > { %572 = vst.msk [vmem:[%s1568_s24] sm:$0xff] %vm571_vm2, %v492_v6  ;;  %v588_v7 = vsel %vm571_vm2, %v492_v6, 0.0  ;;  %v627_v8 = vmul.f32 %v492_v6, %v492_v6 }
 0x165   : > { %v644_v9 = vsel %vm571_vm2, %v628_v5, 0.0  ;;  %v590_v10 = vadd.f32 %v589_v4, %v588_v7 }
 0x166   : > { %v643_v11 = vsel %vm571_vm2, %v627_v8, 0.0  ;;  %v915_v12 = vpop.f32.mrb[2].mxu0  ;;  %v924_v18 = vpop.f32.mrb[0].mxu1 }
 0x167   : > { %v645_v13 = vadd.f32 %v644_v9, %v643_v11  ;;  %575 = vst.msk [vmem:[%s1568_s24 + $0x18] sm:$0xff] %vm571_vm2, %v915_v12  ;;  %v502_v14 = vpop.f32.mrb[3].mxu0  ;;  %v630_v15 = vmul.f32 %v915_v12, %v915_v12  ;;  %581 = vst.msk [vmem:[%s1568_s24 + $0x48] sm:$0xff] %vm571_vm2, %v924_v18  ;;  %v532_v20 = vpop.f32.mrb[1].mxu1  ;;  %v593_v21 = vsel %vm571_vm2, %v915_v12, 0.0  ;;  %v636_v56 = vmul.f32 %v924_v18, %v924_v18 }
 0x168   : > { %574 = vst.msk [vmem:[%s1568_s24 + $0x10] sm:$0xff] %vm571_vm2, %v502_v14  ;;  %v591_v16 = vsel %vm571_vm2, %v502_v14, 0.0  ;;  %v629_v17 = vmul.f32 %v502_v14, %v502_v14  ;;  %580 = vst.msk [vmem:[%s1568_s24 + $0x40] sm:$0xff] %vm571_vm2, %v532_v20  ;;  %v635_v41 = vmul.f32 %v532_v20, %v532_v20  ;;  %v603_v52 = vsel %vm571_vm2, %v532_v20, 0.0 }
 0x169   : > { %v592_v19 = vadd.f32 %v591_v16, %v590_v10  ;;  %v648_v27 = vsel %vm571_vm2, %v630_v15, 0.0  ;;  %v605_v63 = vsel %vm571_vm2, %v924_v18, 0.0 }
 0x16a   : > { %v646_v22 = vsel %vm571_vm2, %v629_v17, 0.0  ;;  %v918_v23 = vpop.f32.mrb[4].mxu0  ;;  %v1595_v31 = vpop.f32.mrb[2].mxu1  ;;  %v658_v57 = vsel %vm571_vm2, %v635_v41, 0.0 }
 0x16b   : > { %v647_v24 = vadd.f32 %v646_v22, %v645_v13  ;;  %577 = vst.msk [vmem:[%s1568_s24 + $0x28] sm:$0xff] %vm571_vm2, %v918_v23  ;;  %v512_v25 = vpop.f32.mrb[5].mxu0  ;;  %v594_v26 = vadd.f32 %v593_v21, %v592_v19  ;;  %v632_v28 = vmul.f32 %v918_v23, %v918_v23  ;;  %583 = vst.msk [vmem:[%s1568_s24 + $0x58] sm:$0xff] %vm571_vm2, %v1595_v31  ;;  %v542_v34 = vpop.f32.mrb[3].mxu1  ;;  %v597_v35 = vsel %vm571_vm2, %v918_v23, 0.0 }
 0x16c   : > { %576 = vst.msk [vmem:[%s1568_s24 + $0x20] sm:$0xff] %vm571_vm2, %v512_v25  ;;  %v595_v29 = vsel %vm571_vm2, %v512_v25, 0.0  ;;  %v631_v30 = vmul.f32 %v512_v25, %v512_v25  ;;  %582 = vst.msk [vmem:[%s1568_s24 + $0x50] sm:$0xff] %vm571_vm2, %v542_v34  ;;  %v637_v58 = vmul.f32 %v542_v34, %v542_v34  ;;  %v607_v0 = vsel %vm571_vm2, %v542_v34, 0.0 }
 0x16d   : > { %v596_v32 = vadd.f32 %v595_v29, %v594_v26  ;;  %v649_v33 = vadd.f32 %v648_v27, %v647_v24  ;;  %v652_v42 = vsel %vm571_vm2, %v632_v28, 0.0 }
 0x16e   : > { %v650_v36 = vsel %vm571_vm2, %v631_v30, 0.0  ;;  %v921_v37 = vpop.f32.mrb[6].mxu0  ;;  %v1610_v46 = vpop.f32.mrb[4].mxu1 }
 0x16f   : > { %v651_v38 = vadd.f32 %v650_v36, %v649_v33  ;;  %579 = vst.msk [vmem:[%s1568_s24 + $0x38] sm:$0xff] %vm571_vm2, %v921_v37  ;;  %v522_v39 = vpop.f32.mrb[7].mxu0  ;;  %v598_v40 = vadd.f32 %v597_v35, %v596_v32  ;;  %v634_v43 = vmul.f32 %v921_v37, %v921_v37  ;;  %585 = vst.msk [vmem:[%s1568_s24 + $0x68] sm:$0xff] %vm571_vm2, %v1610_v46  ;;  %v552_v49 = vpop.f32.mrb[5].mxu1  ;;  %v601_v50 = vsel %vm571_vm2, %v921_v37, 0.0 }
 0x170   : > { %578 = vst.msk [vmem:[%s1568_s24 + $0x30] sm:$0xff] %vm571_vm2, %v522_v39  ;;  %v599_v44 = vsel %vm571_vm2, %v522_v39, 0.0  ;;  %v633_v45 = vmul.f32 %v522_v39, %v522_v39  ;;  %584 = vst.msk [vmem:[%s1568_s24 + $0x60] sm:$0xff] %vm571_vm2, %v552_v49 }
 0x171   : > { %v600_v47 = vadd.f32 %v599_v44, %v598_v40  ;;  %v653_v48 = vadd.f32 %v652_v42, %v651_v38  ;;  %v656_v55 = vsel %vm571_vm2, %v634_v43, 0.0 }
 0x172   : > { %v654_v51 = vsel %vm571_vm2, %v633_v45, 0.0  ;;  %v1631_v59 = vpop.f32.mrb[6].mxu1 }
 0x173   : > { %v602_v53 = vadd.f32 %v601_v50, %v600_v47  ;;  %v655_v54 = vadd.f32 %v654_v51, %v653_v48  ;;  %587 = vst.msk [vmem:[%s1568_s24 + $0x78] sm:$0xff] %vm571_vm2, %v1631_v59  ;;  %v562_v62 = vpop.f32.mrb[7].mxu1 }
 0x174   : > { %586 = vst.msk [vmem:[%s1568_s24 + $0x70] sm:$0xff] %vm571_vm2, %v562_v62 }
 0x175   : > { %v657_v60 = vadd.f32 %v656_v55, %v655_v54  ;;  %v604_v61 = vadd.f32 %v603_v52, %v602_v53 }
 0x177   : > { %v659_v1 = vadd.f32 %v658_v57, %v657_v60  ;;  %v606_v2 = vadd.f32 %v605_v63, %v604_v61 }
 0x178   : > { %1149 = shalt.err (!%p1146_p12)
}
 0x179   : > { %s1150_s15 = scalar_lea.hbm %s1625_s30, 2048  ;;  %s1154_s8 = scalar_lea.hbm %s1737_s4, 8192 }
 0x17a   : > { %p1151_p0 = scmp.ne.s32.totalorder %s1625_s30, %s1150_s15  ;;  %p1155_p11 = scmp.lt.u32.totalorder %s1625_s30, %s1737_s4 }
 0x17b   : > { %p1156_p13 = scmp.lt.u32.totalorder %s1154_s8, %s1150_s15  ;;  %p1158_p1 = scmp.lt.u32.totalorder %s1150_s15, %s1625_s30 }
 0x17c   : > { %p1152_p5 = pnand %p1151_p0, %p1426_p6 }
 0x17d   : > { %p1157_p2 = por %p1156_p13, %p1155_p11 }
 0x17e   : > { %p1153_p10 = pneg %p1152_p5 }
 0x17f   : > { %p1159_p4 = por %p1158_p1, %p1157_p2 }
 0x181   : > { %p1160_p8 = pnand %p1159_p4, %p1153_p10 }
 0x183   : > { %1163 = shalt.err (!%p1160_p8)
}
 0x184   : > { %s1251_s11 = smov 128   ;;  %s1252_s12 = smov 8   ;;  %v660_v3 = vsel %vm571_vm2, %v636_v56, 0.0  ;;  %v638_v4 = vmul.f32 %v1595_v31, %v1595_v31  ;;  %v662_v5 = vsel %vm571_vm2, %v637_v58, 0.0  ;;  %v639_v6 = vmul.f32 %v552_v49, %v552_v49 }
 0x185   : > { %950 = dma.vmem_to_hbm [thread:$0]  (%p1426_p6), %s1627_s9, 2048, %s1625_s30, %s682_s23, %s1251_s11, %s1251_s11, %s1252_s12   ;;  %v608_v7 = vadd.f32 %v607_v0, %v606_v2  ;;  %v661_v8 = vadd.f32 %v660_v3, %v659_v1  ;;  %v609_v9 = vsel %vm571_vm2, %v1595_v31, 0.0  ;;  %v611_v10 = vsel %vm571_vm2, %v552_v49, 0.0 }
 0x186   : > { %v664_v13 = vsel %vm571_vm2, %v638_v4, 0.0  ;;  %v640_v14 = vmul.f32 %v1610_v46, %v1610_v46  ;;  %v666_v15 = vsel %vm571_vm2, %v639_v6, 0.0  ;;  %v641_v16 = vmul.f32 %v562_v62, %v562_v62  ;;  %s862_s9 = sshll.u32 %s1474_s6, 1  ;;  %s886_s30 = sshll.u32 %s1305_s22, 5 }
 0x187   : > { %v663_v11 = vadd.f32 %v662_v5, %v661_v8  ;;  %v610_v12 = vadd.f32 %v609_v9, %v608_v7  ;;  %v613_v19 = vsel %vm571_vm2, %v1610_v46, 0.0  ;;  %v615_v20 = vsel %vm571_vm2, %v562_v62, 0.0  ;;  %s291_s23 = scalar_lea.vmem [#allocation11], %s862_s9  ;;  %s1690_s13 = scalar_lea.hbm %s1738_s5, %s886_s30 }
 0x188   : > { %v668_v23 = vsel %vm571_vm2, %v640_v14, 0.0  ;;  %v642_v24 = vmul.f32 %v1631_v59, %v1631_v59  ;;  %v670_v25 = vsel %vm571_vm2, %v641_v16, 0.0  ;;  %v617_v28 = vsel %vm571_vm2, %v1631_v59, 0.0  ;;  %s716_s29 = sshll.u32 %s291_s23, 4  ;;  %s687_s15 = scalar_lea.sflag [#allocation12], %s1474_s6  ;;  %s1692_s29 = int_to_ptr.vmem [resolvable:$true] %s716_s29 }
 0x189   : > { %v612_v17 = vadd.f32 %v611_v10, %v610_v12  ;;  %v665_v18 = vadd.f32 %v664_v13, %v663_v11  ;;  %vm625_vm3 = vcmask 122880   ;;  %s1164_s28 = scalar_lea.vmem %s1692_s29, 32  ;;  %s1253_s22 = smov [#allocation11]  }
 0x18a   : > { %v672_v31 = vsel %vm571_vm2, %v642_v24, 0.0  ;;  %p1165_p3 = scmp.ne.s32.totalorder %s1692_s29, %s1164_s28  ;;  %s1168_s27 = sshll.u32 %s1253_s22, 4  ;;  %s1169_s27 = int_to_ptr.vmem [resolvable:$false] %s1168_s27 }
 0x18b   : > { %v667_v21 = vadd.f32 %v666_v15, %v665_v18  ;;  %v614_v22 = vadd.f32 %v613_v19, %v612_v17  ;;  %s1170_s8 = scalar_lea.vmem %s1169_s27, 64  ;;  %p1171_p12 = scmp.lt.s32.totalorder %s1692_s29, %s1169_s27 }
 0x18c   : > { %p1166_p7 = pnand %p1165_p3, %p1426_p6  ;;  %p1172_p0 = scmp.lt.s32.totalorder %s1170_s8, %s1164_s28 }
 0x18d   : > { %v616_v26 = vadd.f32 %v615_v20, %v614_v22  ;;  %v669_v27 = vadd.f32 %v668_v23, %v667_v21 }
 0x18e   : > { %p1167_p9 = pneg %p1166_p7  ;;  %p1173_p5 = por %p1172_p0, %p1171_p12 }
 0x18f   : > { %v618_v29 = vadd.f32 %v617_v28, %v616_v26  ;;  %v671_v30 = vadd.f32 %v670_v25, %v669_v27 }
 0x190   : > { %p1174_p10 = pnand %p1173_p5, %p1167_p9 }
 0x191   : > { %v619_v32 = vrot.slane %v618_v29, 4  ;;  %v673_v33 = vadd.f32 %v672_v31, %v671_v30 }
 0x193   : > { %v620_v34 = vadd.f32 %v619_v32, %v618_v29  ;;  %v674_v35 = vrot.slane %v673_v33, 4 }
 0x195   : > { %v621_v36 = vrot.slane %v620_v34, 2  ;;  %v675_v37 = vadd.f32 %v674_v35, %v673_v33 }
 0x197   : > { %v622_v38 = vadd.f32 %v621_v36, %v620_v34  ;;  %v676_v39 = vrot.slane %v675_v37, 2 }
 0x199   : > { %v623_v40 = vrot.slane %v622_v38, 1  ;;  %v677_v41 = vadd.f32 %v676_v39, %v675_v37 }
 0x19b   : > { %v624_v42 = vadd.f32 %v623_v40, %v622_v38  ;;  %v678_v43 = vrot.slane %v677_v41, 1 }
 0x19d   : > { %v679_v44 = vadd.f32 %v678_v43, %v677_v41  ;;  %626 = vst.msk [vmem:[%s291_s23] sm:$0x1] %vm625_vm3, %v624_v42 }
 0x19f   : > { %680 = vst.msk [vmem:[%s291_s23 + $0x1] sm:$0x1] %vm625_vm3, %v679_v44 }
 0x1a0   : > { %1177 = shalt.err (!%p1174_p10)
}
 0x1a1   : > { %s1178_s6 = scalar_lea.hbm %s1690_s13, 32  ;;  %s1182_s11 = scalar_lea.hbm %s1738_s5, 128 }
 0x1a2   : > { %p1179_p11 = scmp.ne.s32.totalorder %s1690_s13, %s1178_s6  ;;  %p1183_p1 = scmp.lt.u32.totalorder %s1690_s13, %s1738_s5 }
 0x1a3   : > { %p1184_p4 = scmp.lt.u32.totalorder %s1182_s11, %s1178_s6  ;;  %p1186_p3 = scmp.lt.u32.totalorder %s1178_s6, %s1690_s13 }
 0x1a4   : > { %p1180_p13 = pnand %p1179_p11, %p1426_p6 }
 0x1a5   : > { %p1185_p8 = por %p1184_p4, %p1183_p1 }
 0x1a6   : > { %p1181_p2 = pneg %p1180_p13 }
 0x1a7   : > { %p1187_p7 = por %p1186_p3, %p1185_p8 }
 0x1a9   : > { %p1188_p9 = pnand %p1187_p7, %p1181_p2 }
 0x1ab   : > { %1191 = shalt.err (!%p1188_p9)
}
 0x1ac   : > { %951 = dma.vmem_to_hbm [thread:$0]  (%p1426_p6), %s1692_s29, 32, %s1690_s13, %s687_s15  }
 0x1ad PF: > { %p982_p12 = scmp.ge.s32.totalorder %s1242_s21, 2  ;;  %s728_s30 = sand.u32 1, %s1230_s18  }
 0x1ae   : > { %p1756_p0 = scmp.ne.s32.totalorder %s1743_s25, 0  ;;  %s729_s23 = scalar_lea.sflag [#allocation4], %s728_s30 }
 0x1b0   : > { %p969_p5 = pnand %p982_p12, %p1756_p0 }
 0x1b2   : > { %1221 = dma.done.wait (!%p969_p5), %s729_s23, 2048  }
 0x1b3   : > { %1223 = vsyncadd (!%p969_p5), %s729_s23, 4294965248  ;;  %s738_s7 = scalar_lea.sflag [#allocation12], %s728_s30 }
 0x1b4   : > { %1225 = dma.done.wait (!%p969_p5), %s738_s7, 32  }
 0x1b5   : > { %1227 = vsyncadd (!%p969_p5), %s738_s7, 4294967264  ;;  %p24_p6 = scmp.ge.s32.totalorder %s1412_s14, 6   ;;  %s1757_s18 = smov %s1234_s19 }
 0x1b6   : > { %s1758_s19 = smov %s1238_s20  ;;  %s1759_s20 = smov %s1422_s16 }
 0x1b7   : > { %s1760_s21 = smov %s1412_s14  ;;  %26 = sbr.rel (!%p24_p6) target bundleno = 9 (0x9), region = 110 }
 0x1be   :  { %743 = vsyncpa [#allocation3], 1 }
 0x1bf   :  { %745 = vsyncpa [#allocation3 + $0x1], 1 }
 0x1c0   :  { %746 = vsyncpa [#allocation6], 1 }
 0x1c1   :  { %747 = vsyncpa [#allocation9], 1 }
 0x1c2   :  { %748 = vsyncpa [#allocation4], 1 }
 0x1c3   :  { %750 = vsyncpa [#allocation4 + $0x1], 1 }
 0x1c4   :  { %751 = vsyncpa [#allocation12], 1 }
 0x1c5   :  { %753 = vsyncpa [#allocation12 + $0x1], 1 }

// kernel: bottleneck_forward.4
= control target key start
LH: loop header
LB: loop body
LE: loop exit
PB: predicated region body
PF: predicated region fallthrough
CT: control target
= control target key end

     0   :  { %s2269_s0 = inlined_call_operand.hbm [shape: f32[512,4], index: 0, kind: input, shape index: {}]   ;;  %s2270_s1 = inlined_call_operand.hbm [shape: f32[4,4], index: 1, kind: input, shape index: {}]   ;;  %s2271_s2 = inlined_call_operand.hbm [shape: f32[4,16], index: 2, kind: input, shape index: {}]   ;;  %s2272_s3 = inlined_call_operand.hbm [shape: f32[512,4], index: 3, kind: output, shape index: {0}]   ;;  %s2273_s4 = inlined_call_operand.hbm [shape: f32[4,2,4], index: 4, kind: output, shape index: {1}]   ;;  %s2274_s5 = inlined_call_operand.hbm [shape: f32[512,16], index: 5, kind: output, shape index: {2}]   ;;  %s2275_s6 = inlined_call_operand.hbm [shape: f32[4,2,16], index: 6, kind: output, shape index: {3}]  }
   0x1   :  { %2284 = sst [smem:[#allocation20_spill]] %s2269_s0 }
   0x2   :  { %12 = vsyncpa [#allocation3], 0 }
   0x3   :  { %14 = vsyncpa [#allocation3 + $0x1], 0 }
   0x4   :  { %15 = vsyncpa [#allocation6], 0 }
   0x5   :  { %16 = vsyncpa [#allocation4], 0 }
   0x6   :  { %18 = vsyncpa [#allocation4 + $0x1], 0 }
   0x7   :  { %19 = vsyncpa [#allocation10], 0 }
   0x8   :  { %21 = vsyncpa [#allocation10 + $0x1], 0 }
   0x9   :  { %22 = vsyncpa [#allocation13], 0 }
   0xa   :  { %24 = vsyncpa [#allocation13 + $0x1], 0  ;;  %s1698_s21 = smov 0   ;;  %s1700_s22 = smov 0  }
   0xb   :  { %s1702_s23 = smov 0   ;;  %s1704_s24 = smov 0  }
   0xc LB: > { %s1719_s25 = sadd.s32 4294967295, %s1650_s24   ;;  %s2281_s26 = sadd.s32 4294967294, %s1650_s24   ;;  %s1650_s24 = sphi %s1704_s24, %s2308_s24   ;;  %s1646_s23 = sphi %s1702_s23, %s2307_s23   ;;  %s1642_s22 = sphi %s1700_s22, %s2306_s22   ;;  %s1638_s21 = sphi %s1698_s21, %s2305_s21  }
   0xd   : > { %s1723_s27 = sadd.s32 1, %s1650_s24   ;;  %s37_s28 = sadd.s32 1, %s1646_s23 }
   0xe   : > { %s34_s29 = ssub.s32 %s1650_s24, %s1723_s27  ;;  %p44_p0 = scmp.ne.s32.totalorder %s1646_s23, %s1642_s22 }
   0xf   : > { %p35_p1 = scmp.eq.s32.totalorder %s34_s29, 0  ;;  %p45_p2 = scmp.eq.s32.totalorder %s1650_s24, 0 }
  0x10   : > { %p50_p3 = scmp.ne.s32.totalorder %s1642_s22, %s1638_s21  ;;  %p2276_p4 = scmp.eq.s32.totalorder %s1719_s25, 0 }
  0x11   : > { %s1735_s30 = scalar_select %p35_p1, %s1646_s23, %s37_s28  }
  0x12   : > { %p1737_p5 = por %p45_p2, %p44_p0  ;;  %p1743_p6 = por %p2276_p4, %p50_p3 }
  0x13   : > { %2285 = sst [smem:[#allocation19_spill]] %s1735_s30  ;;  %p116_p7 = scmp.eq.s32.totalorder %s1719_s25, 3 }
  0x14   : > { %s2287_s8 = scalar_select %p1743_p6, 1, 0 }
  0x15   : > { %p122_p8 = scmp.eq.s32.totalorder %s2281_s26, 3  ;;  %p1166_p9 = scmp.ge.s32.totalorder %s1650_s24, 1 }
  0x16   : > { %p207_p10 = scmp.lt.s32.totalorder %s1650_s24, 5  ;;  %p1752_p11 = por %p116_p7, %p44_p0 }
  0x17   : > { %p1756_p12 = por %p122_p8, %p50_p3  ;;  %s1652_s12 = smov [#allocation5]  }
  0x18   : > { %s2288_s9 = scalar_select %p1752_p11, 1, 0 }
  0x19   : > { %s2289_s10 = scalar_select %p1756_p12, 1, 0 }
  0x1a   : > { %p1760_p13 = pnand %p1166_p9, %p207_p10  ;;  %s220_s13 = sshll.u32 %s1652_s12, 4  ;;  %s221_s13 = int_to_ptr.vmem [resolvable:$true] %s220_s13 }
  0x1b   : > { %p1360_p2 = scmp.lt.s32.totalorder %s1650_s24, 4  ;;  %s1653_s16 = smov [#allocation7]  }
  0x1c   : > { %s2290_s11 = scalar_select %p1760_p13, 1, 0 }
  0x1d   : > { %p1334_p1 = pneg %p1760_p13  ;;  %p1775_p3 = pnand %p1360_p2, %p1737_p5 }
  0x1e   : > { %s231_s17 = sshll.u32 %s1653_s16, 4  ;;  %s1402_s20 = scalar_lea.hbm %s2270_s1, 64  ;;  %s1779_s17 = int_to_ptr.vmem [resolvable:$true] %s231_s17 }
  0x1f   : > { %p1769_p0 = pnand %p1334_p1, %p2276_p4  ;;  %p1403_p7 = scmp.ne.s32.totalorder %s2270_s1, %s1402_s20 }
  0x20   : > { %s2292_s15 = scalar_select %p1775_p3, 1, 0 }
  0x21   : > { %p1404_p8 = pneg %p1769_p0  ;;  %p1409_p10 = scmp.lt.u32.totalorder %s1402_s20, %s2270_s1 }
  0x23   : > { %p1405_p5 = pnand %p1404_p8, %p1403_p7 }
  0x25   : > { %p1406_p9 = pneg %p1405_p5 }
  0x27   : > { %p1411_p1 = pnand %p1409_p10, %p1406_p9 }
  0x29   : > { %1414 = shalt.err (!%p1411_p1)
}
  0x2a   : > { %s1415_s16 = scalar_lea.vmem %s221_s13, 64  ;;  %p1423_p11 = scmp.lt.s32.totalorder %s221_s13, %s221_s13 }
  0x2b   : > { %p1416_p2 = scmp.ne.s32.totalorder %s221_s13, %s1415_s16  ;;  %p1424_p6 = scmp.lt.s32.totalorder %s1415_s16, %s1415_s16 }
  0x2d   : > { %p1418_p4 = pnand %p1416_p2, %p1404_p8  ;;  %p1425_p13 = por %p1424_p6, %p1423_p11 }
  0x2f   : > { %p1419_p12 = pneg %p1418_p4 }
  0x31   : > { %p1426_p3 = pnand %p1425_p13, %p1419_p12 }
  0x33   : > { %1429 = shalt.err (!%p1426_p3)
}
  0x34   : > { %1337 = dma.hbm_to_vmem [thread:$0]  (!%p1769_p0), %s2270_s1, 64, %s221_s13, [#allocation6]  }
  0x35   : > { %s242_s20 = sand.u32 1, %s1646_s23   ;;  %s1430_s7 = scalar_lea.hbm %s2271_s2, 64 }
  0x36   : > { %p1431_p4 = scmp.ne.s32.totalorder %s2271_s2, %s1430_s7  ;;  %p1437_p12 = scmp.lt.u32.totalorder %s1430_s7, %s2271_s2 }
  0x38   : > { %p1433_p6 = pnand %p1431_p4, %p1404_p8 }
  0x3a   : > { %p1434_p11 = pneg %p1433_p6 }
  0x3c   : > { %p1439_p13 = pnand %p1437_p12, %p1434_p11 }
  0x3e   : > { %1442 = shalt.err (!%p1439_p13)
}
  0x3f   : > { %s1443_s13 = scalar_lea.vmem %s1779_s17, 64  ;;  %p1451_p9 = scmp.lt.s32.totalorder %s1779_s17, %s1779_s17 }
  0x40   : > { %p1444_p3 = scmp.ne.s32.totalorder %s1779_s17, %s1443_s13  ;;  %p1452_p10 = scmp.lt.s32.totalorder %s1443_s13, %s1443_s13 }
  0x42   : > { %p1446_p7 = pnand %p1444_p3, %p1404_p8  ;;  %p1453_p1 = por %p1452_p10, %p1451_p9 }
  0x44   : > { %p1447_p5 = pneg %p1446_p7 }
  0x46   : > { %p1454_p2 = pnand %p1453_p1, %p1447_p5 }
  0x48   : > { %1457 = shalt.err (!%p1454_p2)
}
  0x49   : > { %1340 = dma.hbm_to_vmem [thread:$0]  (!%p1769_p0), %s2271_s2, 64, %s1779_s17, [#allocation6]  }
  0x4a   : > { %s1170_s18 = sshll.u32 %s242_s20, 7  ;;  %s1227_s19 = sshll.u32 %s1650_s24, 11 }
  0x4b   : > { %s2293_s0 = sld [smem:[#allocation20_spill]]  ;;  %s246_s14 = scalar_lea.vmem [#allocation2], %s1170_s18 }
  0x4c   : > { %s253_s12 = sshll.u32 %s246_s14, 4  ;;  %s1837_s16 = scalar_lea.sflag [#allocation3], %s242_s20  ;;  %s1835_s12 = int_to_ptr.vmem [resolvable:$true] %s253_s12 }
  0x4d   : > { %p2294_p0 = scmp.ne.s32.totalorder %s2292_s15, 0 }
  0x4f   : > { %p1460_p4 = pneg %p2294_p0 }
  0x51   : > { %s1833_s7 = scalar_lea.hbm %s2293_s0, %s1227_s19  ;;  %s1463_s30 = scalar_lea.hbm %s2293_s0, 8192 }
  0x52   : > { %s1458_s13 = scalar_lea.hbm %s1833_s7, 2048  ;;  %p1464_p12 = scmp.lt.u32.totalorder %s1833_s7, %s2293_s0 }
  0x53   : > { %p1459_p8 = scmp.ne.s32.totalorder %s1833_s7, %s1458_s13  ;;  %p1465_p13 = scmp.lt.u32.totalorder %s1463_s30, %s1458_s13 }
  0x54   : > { %p1467_p7 = scmp.lt.u32.totalorder %s1458_s13, %s1833_s7 }
  0x55   : > { %p1461_p6 = pnand %p1460_p4, %p1459_p8  ;;  %p1466_p3 = por %p1465_p13, %p1464_p12 }
  0x57   : > { %p1462_p11 = pneg %p1461_p6  ;;  %p1468_p5 = por %p1467_p7, %p1466_p3 }
  0x59   : > { %p1469_p9 = pnand %p1468_p5, %p1462_p11 }
  0x5b   : > { %1472 = shalt.err (!%p1469_p9)
}
  0x5c   : > { %s1473_s20 = scalar_lea.vmem %s1835_s12, 2048  ;;  %s1654_s18 = smov [#allocation2]  }
  0x5d   : > { %p1474_p10 = scmp.ne.s32.totalorder %s1835_s12, %s1473_s20  ;;  %s1478_s29 = sshll.u32 %s1654_s18, 4  ;;  %s1479_s29 = int_to_ptr.vmem [resolvable:$false] %s1478_s29 }
  0x5e   : > { %s1480_s14 = scalar_lea.vmem %s1479_s29, 4096  ;;  %p1481_p8 = scmp.lt.s32.totalorder %s1835_s12, %s1479_s29 }
  0x5f   : > { %p1476_p1 = pnand %p1474_p10, %p1460_p4  ;;  %p1482_p6 = scmp.lt.s32.totalorder %s1480_s14, %s1473_s20 }
  0x61   : > { %p1477_p2 = pneg %p1476_p1  ;;  %p1483_p12 = por %p1482_p6, %p1481_p8 }
  0x63   : > { %p1484_p13 = pnand %p1483_p12, %p1477_p2 }
  0x65   : > { %1487 = shalt.err (!%p1484_p13)
}
  0x66   : > { %s1655_s13 = smov 128   ;;  %s1656_s17 = smov 8  }
  0x67   : > { %1344 = dma.hbm_to_vmem [thread:$0]  (!%p2294_p0), %s1833_s7, 2048, %s1835_s12, %s1837_s16, %s1655_s13, %s1655_s13, %s1656_s17  }
  0x68   : > { %p2295_p4 = scmp.ne.s32.totalorder %s2290_s11, 0 }
  0x69   : > { %s1868_s26 = sand.u32 (!%p2295_p4), 1, %s1642_s22   ;;  %p2296_p11 = scmp.ne.s32.totalorder (!%p2295_p4), %s2287_s8, 0 }
  0x6a   : > { %265 = sbr.rel (%p2295_p4) target bundleno = 465 (0x1d1), region = 32  ;;  %s1871_s30 = sshll.u32 (!%p2295_p4), %s1868_s26, 7 }
  0x6b   : > { %s268_s19 = scalar_lea.sflag (!%p2295_p4), [#allocation3], %s1868_s26  ;;  %s1875_s28 = scalar_lea.vmem (!%p2295_p4), [#allocation2], %s1871_s30 }
  0x71   : > { %1617 = dma.done.wait (%p2296_p11), %s268_s19, 2048  }
  0x72   : > { %1619 = vsyncadd (%p2296_p11), %s268_s19, 4294965248  ;;  %p2297_p0 = scmp.eq.s32.totalorder %s1719_s25, 0 }
  0x74   : > { %1621 = dma.done.wait (%p2297_p0), [#allocation6], 128   ;;  %p2298_p3 = pmov %p2297_p0 }
  0x75   : > { %vm392_vm0 = vcmask 1043456   ;;  %vm343_vm1 = vcmask 31744   ;;  %v342_v0 = vld [vmem:[#allocation5] sm:$0xf]  ;;  %v650_v1 = vld [vmem:[#allocation7] sm:$0xf] }
  0x76   : > { %1623 = vsyncadd (%p2298_p3), [#allocation6], 4294967168  ;;  %v326_v2 = vld [vmem:[%s1875_s28] sm:$0xff]  ;;  %1264 = vmatprep.subr.msk.mxu0 %vm392_vm0, %v342_v0  ;;  %1290 = vmatprep.subr.msk.mxu1 %vm392_vm0, %v650_v1  ;;  %v327_v3 = vld [vmem:[%s1875_s28 + $0x8] sm:$0xff]  ;;  %vm799_vm2 = vcmask 130048   ;;  %s1934_s8 = scalar_lea.vmem [#allocation8], %s1871_s30 }
  0x77   : > { %1265 = vmatpush3.msk.msra.mxu0 %vm392_vm0, %v342_v0  ;;  %1266 = vmatprep.mubr.msk.f32.mxu0 %vm343_vm1, %v326_v2  ;;  %v328_v4 = vld [vmem:[%s1875_s28 + $0x10] sm:$0xff]  ;;  %v329_v5 = vld [vmem:[%s1875_s28 + $0x18] sm:$0xff]  ;;  %v330_v6 = vld [vmem:[%s1875_s28 + $0x20] sm:$0xff]  ;;  %s1940_s11 = scalar_lea.vmem [#allocation11], %s1871_s30  ;;  %s1228_s15 = sshll.u32 %s1719_s25, 11 }
  0x78   : > { %1291 = vmatpush3.msk.msra.mxu1 %vm392_vm0, %v650_v1  ;;  %1292 = vmatprep.mubr.msk.f32.mxu1 %vm343_vm1, %v326_v2  ;;  %v331_v7 = vld [vmem:[%s1875_s28 + $0x28] sm:$0xff]  ;;  %v332_v8 = vld [vmem:[%s1875_s28 + $0x30] sm:$0xff]  ;;  %v333_v9 = vld [vmem:[%s1875_s28 + $0x38] sm:$0xff]  ;;  %s938_s7 = sshll.u32 %s1934_s8, 4  ;;  %s2054_s20 = scalar_lea.hbm %s2272_s3, %s1228_s15  ;;  %s2056_s7 = int_to_ptr.vmem [resolvable:$true] %s938_s7 }
  0x79   : > { %1267 = vmatmul.mubr.msk.f32.vlgmr.msra.gmra.mrb[0].mxu0 %vm343_vm1, %v327_v3  ;;  %1293 = vmatmul.mubr.msk.f32.vlgmr.msra.gmra.mrb[0].mxu1 %vm343_vm1, %v327_v3  ;;  %v334_v10 = vld [vmem:[%s1875_s28 + $0x40] sm:$0xff]  ;;  %v335_v11 = vld [vmem:[%s1875_s28 + $0x48] sm:$0xff]  ;;  %v336_v12 = vld [vmem:[%s1875_s28 + $0x50] sm:$0xff]  ;;  %s910_s18 = scalar_lea.sflag [#allocation4], %s1868_s26  ;;  %s1488_s29 = scalar_lea.vmem %s2056_s7, 2048 }
  0x7a   : > { %1269 = vmatprep.mubr.msk.f32.mxu0 %vm343_vm1, %v328_v4  ;;  %1295 = vmatprep.mubr.msk.f32.mxu1 %vm343_vm1, %v328_v4  ;;  %v337_v13 = vld [vmem:[%s1875_s28 + $0x58] sm:$0xff]  ;;  %v338_v14 = vld [vmem:[%s1875_s28 + $0x60] sm:$0xff]  ;;  %v339_v15 = vld [vmem:[%s1875_s28 + $0x68] sm:$0xff]  ;;  %p1489_p7 = scmp.ne.s32.totalorder %s2056_s7, %s1488_s29  ;;  %p2299_p5 = scmp.ne.s32.totalorder %s2288_s9, 0 }
  0x7b   : > { %v340_v16 = vld [vmem:[%s1875_s28 + $0x70] sm:$0xff]  ;;  %v341_v17 = vld [vmem:[%s1875_s28 + $0x78] sm:$0xff]  ;;  %s1657_s14 = smov [#allocation8]  }
  0x7c   : > { %p1490_p9 = pnand %p1489_p7, %p2299_p5  ;;  %s1492_s13 = sshll.u32 %s1657_s14, 4  ;;  %s1493_s13 = int_to_ptr.vmem [resolvable:$false] %s1492_s13 }
  0x7d   : > { %1270 = vmatmul.mubr.msk.f32.gmra.mrb[2].mxu0 %vm343_vm1, %v329_v5  ;;  %1296 = vmatmul.mubr.msk.f32.gmra.mrb[2].mxu1 %vm343_vm1, %v329_v5  ;;  %s1494_s17 = scalar_lea.vmem %s1493_s13, 4096  ;;  %p1495_p1 = scmp.lt.s32.totalorder %s2056_s7, %s1493_s13 }
  0x7e   : > { %1272 = vmatprep.mubr.msk.f32.mxu0 %vm343_vm1, %v330_v6  ;;  %1298 = vmatprep.mubr.msk.f32.mxu1 %vm343_vm1, %v330_v6  ;;  %p1491_p10 = pneg %p1490_p9  ;;  %p1496_p2 = scmp.lt.s32.totalorder %s1494_s17, %s1488_s29 }
  0x80   : > { %p1497_p8 = por %p1496_p2, %p1495_p1 }
  0x81   : > { %1273 = vmatmul.mubr.msk.f32.gmra.mrb[4].mxu0 %vm343_vm1, %v331_v7  ;;  %1299 = vmatmul.mubr.msk.f32.gmra.mrb[4].mxu1 %vm343_vm1, %v331_v7 }
  0x82   : > { %1275 = vmatprep.mubr.msk.f32.mxu0 %vm343_vm1, %v332_v8  ;;  %1301 = vmatprep.mubr.msk.f32.mxu1 %vm343_vm1, %v332_v8  ;;  %p1498_p6 = pnand %p1497_p8, %p1491_p10 }
  0x85   : > { %1276 = vmatmul.mubr.msk.f32.gmra.mrb[6].mxu0 %vm343_vm1, %v333_v9  ;;  %1302 = vmatmul.mubr.msk.f32.gmra.mrb[6].mxu1 %vm343_vm1, %v333_v9 }
  0x86   : > { %1278 = vmatprep.mubr.msk.f32.mxu0 %vm343_vm1, %v334_v10  ;;  %1304 = vmatprep.mubr.msk.f32.mxu1 %vm343_vm1, %v334_v10 }
  0x89   : > { %1279 = vmatmul.mubr.msk.f32.gmra.mrb[8].mxu0 %vm343_vm1, %v335_v11  ;;  %1305 = vmatmul.mubr.msk.f32.gmra.mrb[8].mxu1 %vm343_vm1, %v335_v11 }
  0x8a   : > { %1281 = vmatprep.mubr.msk.f32.mxu0 %vm343_vm1, %v336_v12  ;;  %1307 = vmatprep.mubr.msk.f32.mxu1 %vm343_vm1, %v336_v12 }
  0x8d   : > { %1282 = vmatmul.mubr.msk.f32.gmra.mrb[10].mxu0 %vm343_vm1, %v337_v13  ;;  %1308 = vmatmul.mubr.msk.f32.gmra.mrb[10].mxu1 %vm343_vm1, %v337_v13 }
  0x8e   : > { %1284 = vmatprep.mubr.msk.f32.mxu0 %vm343_vm1, %v338_v14  ;;  %1310 = vmatprep.mubr.msk.f32.mxu1 %vm343_vm1, %v338_v14 }
  0x91   : > { %1285 = vmatmul.mubr.msk.f32.gmra.mrb[12].mxu0 %vm343_vm1, %v339_v15  ;;  %1311 = vmatmul.mubr.msk.f32.gmra.mrb[12].mxu1 %vm343_vm1, %v339_v15 }
  0x92   : > { %1287 = vmatprep.mubr.msk.f32.mxu0 %vm343_vm1, %v340_v16  ;;  %1313 = vmatprep.mubr.msk.f32.mxu1 %vm343_vm1, %v340_v16 }
  0x95   : > { %1288 = vmatmul.mubr.msk.f32.gmra.mrb[14].mxu0 %vm343_vm1, %v341_v17  ;;  %1314 = vmatmul.mubr.msk.f32.gmra.mrb[14].mxu1 %vm343_vm1, %v341_v17 }
 0x14c   : > { %v1268_v18 = vpop.f32.mrb[0].mxu0  ;;  %v1294_v19 = vpop.f32.mrb[0].mxu1 }
 0x14d   : > { %542 = vst.msk [vmem:[%s1934_s8 + $0x8] sm:$0xff] %vm343_vm1, %v1268_v18  ;;  %v558_v20 = vsel %vm343_vm1, %v1268_v18, 0.0  ;;  %v597_v21 = vmul.f32 %v1268_v18, %v1268_v18  ;;  %v817_v22 = vsel %vm799_vm2, %v1294_v19, 0.0  ;;  %v856_v23 = vmul.f32 %v1294_v19, %v1294_v19  ;;  %v462_v24 = vpop.f32.mrb[1].mxu0  ;;  %v720_v25 = vpop.f32.mrb[1].mxu1 }
 0x14e   : > { %801 = vst.msk [vmem:[%s1940_s11 + $0x8] sm:$0xff] %vm799_vm2, %v1294_v19  ;;  %v557_v26 = vsel %vm343_vm1, %v462_v24, 0.0  ;;  %v596_v27 = vmul.f32 %v462_v24, %v462_v24  ;;  %800 = vst.msk [vmem:[%s1940_s11] sm:$0xff] %vm799_vm2, %v720_v25  ;;  %v816_v28 = vsel %vm799_vm2, %v720_v25, 0.0  ;;  %v855_v29 = vmul.f32 %v720_v25, %v720_v25 }
 0x14f   : > { %541 = vst.msk [vmem:[%s1934_s8] sm:$0xff] %vm343_vm1, %v462_v24  ;;  %v613_v30 = vsel %vm343_vm1, %v597_v21, 0.0  ;;  %v872_v31 = vsel %vm799_vm2, %v856_v23, 0.0  ;;  %v559_v32 = vadd.f32 %v558_v20, %v557_v26  ;;  %v818_v33 = vadd.f32 %v817_v22, %v816_v28 }
 0x150   : > { %v612_v34 = vsel %vm343_vm1, %v596_v27, 0.0  ;;  %v871_v35 = vsel %vm799_vm2, %v855_v29, 0.0  ;;  %v1271_v36 = vpop.f32.mrb[2].mxu0  ;;  %v1297_v37 = vpop.f32.mrb[2].mxu1 }
 0x151   : > { %v614_v38 = vadd.f32 %v613_v30, %v612_v34  ;;  %v873_v39 = vadd.f32 %v872_v31, %v871_v35  ;;  %544 = vst.msk [vmem:[%s1934_s8 + $0x18] sm:$0xff] %vm343_vm1, %v1271_v36  ;;  %v472_v40 = vpop.f32.mrb[3].mxu0  ;;  %v730_v41 = vpop.f32.mrb[3].mxu1  ;;  %v599_v42 = vmul.f32 %v1271_v36, %v1271_v36  ;;  %v858_v45 = vmul.f32 %v1297_v37, %v1297_v37 }
 0x152   : > { %803 = vst.msk [vmem:[%s1940_s11 + $0x18] sm:$0xff] %vm799_vm2, %v1297_v37  ;;  %v560_v43 = vsel %vm343_vm1, %v472_v40, 0.0  ;;  %v598_v44 = vmul.f32 %v472_v40, %v472_v40  ;;  %802 = vst.msk [vmem:[%s1940_s11 + $0x10] sm:$0xff] %vm799_vm2, %v730_v41  ;;  %v819_v47 = vsel %vm799_vm2, %v730_v41, 0.0  ;;  %v857_v48 = vmul.f32 %v730_v41, %v730_v41 }
 0x153   : > { %543 = vst.msk [vmem:[%s1934_s8 + $0x10] sm:$0xff] %vm343_vm1, %v472_v40  ;;  %v561_v46 = vadd.f32 %v560_v43, %v559_v32  ;;  %v820_v50 = vadd.f32 %v819_v47, %v818_v33  ;;  %v562_v53 = vsel %vm343_vm1, %v1271_v36, 0.0  ;;  %v821_v54 = vsel %vm799_vm2, %v1297_v37, 0.0 }
 0x154   : > { %v615_v49 = vsel %vm343_vm1, %v598_v44, 0.0  ;;  %v1274_v51 = vpop.f32.mrb[4].mxu0  ;;  %v1300_v52 = vpop.f32.mrb[4].mxu1  ;;  %v874_v56 = vsel %vm799_vm2, %v857_v48, 0.0  ;;  %v617_v59 = vsel %vm343_vm1, %v599_v42, 0.0  ;;  %v876_v63 = vsel %vm799_vm2, %v858_v45, 0.0 }
 0x155   : > { %v616_v55 = vadd.f32 %v615_v49, %v614_v38  ;;  %546 = vst.msk [vmem:[%s1934_s8 + $0x28] sm:$0xff] %vm343_vm1, %v1274_v51  ;;  %v482_v57 = vpop.f32.mrb[5].mxu0  ;;  %v740_v58 = vpop.f32.mrb[5].mxu1  ;;  %v875_v60 = vadd.f32 %v874_v56, %v873_v39  ;;  %v601_v61 = vmul.f32 %v1274_v51, %v1274_v51  ;;  %v563_v62 = vadd.f32 %v562_v53, %v561_v46 }
 0x156   : > { %805 = vst.msk [vmem:[%s1940_s11 + $0x28] sm:$0xff] %vm799_vm2, %v1300_v52  ;;  %804 = vst.msk [vmem:[%s1940_s11 + $0x20] sm:$0xff] %vm799_vm2, %v740_v58  ;;  %v564_v0 = vsel %vm343_vm1, %v482_v57, 0.0  ;;  %v600_v1 = vmul.f32 %v482_v57, %v482_v57  ;;  %v860_v3 = vmul.f32 %v1300_v52, %v1300_v52  ;;  %v822_v5 = vadd.f32 %v821_v54, %v820_v50 }
 0x157   : > { %545 = vst.msk [vmem:[%s1934_s8 + $0x20] sm:$0xff] %vm343_vm1, %v482_v57  ;;  %v618_v2 = vadd.f32 %v617_v59, %v616_v55  ;;  %v565_v4 = vadd.f32 %v564_v0, %v563_v62  ;;  %v823_v6 = vsel %vm799_vm2, %v740_v58, 0.0  ;;  %v566_v9 = vsel %vm343_vm1, %v1274_v51, 0.0 }
 0x158   : > { %v1277_v7 = vpop.f32.mrb[6].mxu0  ;;  %v1303_v8 = vpop.f32.mrb[6].mxu1  ;;  %v619_v10 = vsel %vm343_vm1, %v600_v1, 0.0  ;;  %v859_v11 = vmul.f32 %v740_v58, %v740_v58  ;;  %v877_v12 = vadd.f32 %v876_v63, %v875_v60  ;;  %v621_v15 = vsel %vm343_vm1, %v601_v61, 0.0 }
 0x159   : > { %548 = vst.msk [vmem:[%s1934_s8 + $0x38] sm:$0xff] %vm343_vm1, %v1277_v7  ;;  %v492_v13 = vpop.f32.mrb[7].mxu0  ;;  %v750_v14 = vpop.f32.mrb[7].mxu1  ;;  %v825_v16 = vsel %vm799_vm2, %v1300_v52, 0.0  ;;  %v620_v17 = vadd.f32 %v619_v10, %v618_v2  ;;  %v824_v18 = vadd.f32 %v823_v6, %v822_v5  ;;  %v603_v20 = vmul.f32 %v1277_v7, %v1277_v7 }
 0x15a   : > { %807 = vst.msk [vmem:[%s1940_s11 + $0x38] sm:$0xff] %vm799_vm2, %v1303_v8  ;;  %806 = vst.msk [vmem:[%s1940_s11 + $0x30] sm:$0xff] %vm799_vm2, %v750_v14  ;;  %v878_v19 = vsel %vm799_vm2, %v859_v11, 0.0  ;;  %v567_v21 = vadd.f32 %v566_v9, %v565_v4  ;;  %v568_v22 = vsel %vm343_vm1, %v492_v13, 0.0  ;;  %v880_v23 = vsel %vm799_vm2, %v860_v3, 0.0 }
 0x15b   : > { %547 = vst.msk [vmem:[%s1934_s8 + $0x30] sm:$0xff] %vm343_vm1, %v492_v13  ;;  %v879_v24 = vadd.f32 %v878_v19, %v877_v12  ;;  %v602_v25 = vmul.f32 %v492_v13, %v492_v13  ;;  %v622_v26 = vadd.f32 %v621_v15, %v620_v17  ;;  %v862_v29 = vmul.f32 %v1303_v8, %v1303_v8 }
 0x15c   : > { %v1280_v27 = vpop.f32.mrb[8].mxu0  ;;  %v1306_v28 = vpop.f32.mrb[8].mxu1  ;;  %v569_v30 = vadd.f32 %v568_v22, %v567_v21  ;;  %v826_v31 = vadd.f32 %v825_v16, %v824_v18  ;;  %v827_v32 = vsel %vm799_vm2, %v750_v14, 0.0  ;;  %v570_v35 = vsel %vm343_vm1, %v1277_v7, 0.0 }
 0x15d   : > { %550 = vst.msk [vmem:[%s1934_s8 + $0x48] sm:$0xff] %vm343_vm1, %v1280_v27  ;;  %v502_v33 = vpop.f32.mrb[9].mxu0  ;;  %v760_v34 = vpop.f32.mrb[9].mxu1  ;;  %v623_v36 = vsel %vm343_vm1, %v602_v25, 0.0  ;;  %v861_v37 = vmul.f32 %v750_v14, %v750_v14  ;;  %v881_v38 = vadd.f32 %v880_v23, %v879_v24  ;;  %v625_v39 = vsel %vm343_vm1, %v603_v20, 0.0 }
 0x15e   : > { %809 = vst.msk [vmem:[%s1940_s11 + $0x48] sm:$0xff] %vm799_vm2, %v1306_v28  ;;  %808 = vst.msk [vmem:[%s1940_s11 + $0x40] sm:$0xff] %vm799_vm2, %v760_v34  ;;  %v829_v40 = vsel %vm799_vm2, %v1303_v8, 0.0  ;;  %v624_v41 = vadd.f32 %v623_v36, %v622_v26  ;;  %v828_v42 = vadd.f32 %v827_v32, %v826_v31  ;;  %v605_v44 = vmul.f32 %v1280_v27, %v1280_v27 }
 0x15f   : > { %549 = vst.msk [vmem:[%s1934_s8 + $0x40] sm:$0xff] %vm343_vm1, %v502_v33  ;;  %v882_v43 = vsel %vm799_vm2, %v861_v37, 0.0  ;;  %v571_v45 = vadd.f32 %v570_v35, %v569_v30  ;;  %v572_v46 = vsel %vm343_vm1, %v502_v33, 0.0  ;;  %v884_v49 = vsel %vm799_vm2, %v862_v29, 0.0 }
 0x160   : > { %v1283_v47 = vpop.f32.mrb[10].mxu0  ;;  %v1309_v48 = vpop.f32.mrb[10].mxu1  ;;  %v883_v50 = vadd.f32 %v882_v43, %v881_v38  ;;  %v604_v51 = vmul.f32 %v502_v33, %v502_v33  ;;  %v626_v52 = vadd.f32 %v625_v39, %v624_v41  ;;  %v864_v55 = vmul.f32 %v1306_v28, %v1306_v28 }
 0x161   : > { %552 = vst.msk [vmem:[%s1934_s8 + $0x58] sm:$0xff] %vm343_vm1, %v1283_v47  ;;  %v512_v53 = vpop.f32.mrb[11].mxu0  ;;  %v770_v54 = vpop.f32.mrb[11].mxu1  ;;  %v573_v56 = vadd.f32 %v572_v46, %v571_v45  ;;  %v830_v57 = vadd.f32 %v829_v40, %v828_v42  ;;  %v831_v58 = vsel %vm799_vm2, %v760_v34, 0.0  ;;  %v574_v59 = vsel %vm343_vm1, %v1280_v27, 0.0 }
 0x162   : > { %811 = vst.msk [vmem:[%s1940_s11 + $0x58] sm:$0xff] %vm799_vm2, %v1309_v48  ;;  %810 = vst.msk [vmem:[%s1940_s11 + $0x50] sm:$0xff] %vm799_vm2, %v770_v54  ;;  %v627_v60 = vsel %vm343_vm1, %v604_v51, 0.0  ;;  %v863_v61 = vmul.f32 %v760_v34, %v760_v34  ;;  %v885_v62 = vadd.f32 %v884_v49, %v883_v50  ;;  %v629_v63 = vsel %vm343_vm1, %v605_v44, 0.0 }
 0x163   : > { %551 = vst.msk [vmem:[%s1934_s8 + $0x50] sm:$0xff] %vm343_vm1, %v512_v53  ;;  %v833_v0 = vsel %vm799_vm2, %v1306_v28, 0.0  ;;  %v628_v1 = vadd.f32 %v627_v60, %v626_v52  ;;  %v832_v2 = vadd.f32 %v831_v58, %v830_v57  ;;  %v607_v6 = vmul.f32 %v1283_v47, %v1283_v47 }
 0x164   : > { %v2025_v3 = vpop.f32.mrb[12].mxu0  ;;  %v2027_v4 = vpop.f32.mrb[12].mxu1  ;;  %v886_v5 = vsel %vm799_vm2, %v863_v61, 0.0  ;;  %v575_v7 = vadd.f32 %v574_v59, %v573_v56  ;;  %v576_v8 = vsel %vm343_vm1, %v512_v53, 0.0  ;;  %v888_v11 = vsel %vm799_vm2, %v864_v55, 0.0 }
 0x165   : > { %554 = vst.msk [vmem:[%s1934_s8 + $0x68] sm:$0xff] %vm343_vm1, %v2025_v3  ;;  %v522_v9 = vpop.f32.mrb[13].mxu0  ;;  %v2039_v10 = vpop.f32.mrb[13].mxu1  ;;  %v887_v12 = vadd.f32 %v886_v5, %v885_v62  ;;  %v606_v13 = vmul.f32 %v512_v53, %v512_v53  ;;  %v630_v14 = vadd.f32 %v629_v63, %v628_v1  ;;  %v578_v15 = vsel %vm343_vm1, %v1283_v47, 0.0 }
 0x166   : > { %813 = vst.msk [vmem:[%s1940_s11 + $0x68] sm:$0xff] %vm799_vm2, %v2027_v4  ;;  %812 = vst.msk [vmem:[%s1940_s11 + $0x60] sm:$0xff] %vm799_vm2, %v2039_v10  ;;  %v577_v16 = vadd.f32 %v576_v8, %v575_v7  ;;  %v834_v17 = vadd.f32 %v833_v0, %v832_v2  ;;  %v835_v18 = vsel %vm799_vm2, %v770_v54, 0.0  ;;  %v866_v19 = vmul.f32 %v1309_v48, %v1309_v48 }
 0x167   : > { %553 = vst.msk [vmem:[%s1934_s8 + $0x60] sm:$0xff] %vm343_vm1, %v522_v9  ;;  %v631_v20 = vsel %vm343_vm1, %v606_v13, 0.0  ;;  %v865_v21 = vmul.f32 %v770_v54, %v770_v54  ;;  %v889_v22 = vadd.f32 %v888_v11, %v887_v12  ;;  %v633_v25 = vsel %vm343_vm1, %v607_v6, 0.0 }
 0x168   : > { %v2059_v23 = vpop.f32.mrb[14].mxu0  ;;  %v2061_v24 = vpop.f32.mrb[14].mxu1  ;;  %v837_v26 = vsel %vm799_vm2, %v1309_v48, 0.0  ;;  %v632_v27 = vadd.f32 %v631_v20, %v630_v14  ;;  %v836_v28 = vadd.f32 %v835_v18, %v834_v17  ;;  %v609_v32 = vmul.f32 %v2025_v3, %v2025_v3 }
 0x169   : > { %556 = vst.msk [vmem:[%s1934_s8 + $0x78] sm:$0xff] %vm343_vm1, %v2059_v23  ;;  %v532_v29 = vpop.f32.mrb[15].mxu0  ;;  %v2071_v30 = vpop.f32.mrb[15].mxu1  ;;  %v890_v31 = vsel %vm799_vm2, %v865_v21, 0.0  ;;  %v579_v33 = vadd.f32 %v578_v15, %v577_v16  ;;  %v580_v34 = vsel %vm343_vm1, %v522_v9, 0.0  ;;  %v868_v36 = vmul.f32 %v2027_v4, %v2027_v4 }
 0x16a   : > { %815 = vst.msk [vmem:[%s1940_s11 + $0x78] sm:$0xff] %vm799_vm2, %v2061_v24  ;;  %814 = vst.msk [vmem:[%s1940_s11 + $0x70] sm:$0xff] %vm799_vm2, %v2071_v30  ;;  %v891_v35 = vadd.f32 %v890_v31, %v889_v22  ;;  %v608_v37 = vmul.f32 %v522_v9, %v522_v9  ;;  %v634_v38 = vadd.f32 %v633_v25, %v632_v27 }
 0x16b   : > { %555 = vst.msk [vmem:[%s1934_s8 + $0x70] sm:$0xff] %vm343_vm1, %v532_v29 }
 0x16c   : > { %1501 = shalt.err (!%p1498_p6)
}
 0x16d   : > { %s1502_s30 = scalar_lea.hbm %s2054_s20, 2048  ;;  %s1506_s8 = scalar_lea.hbm %s2272_s3, 8192 }
 0x16e   : > { %p1503_p12 = scmp.ne.s32.totalorder %s2054_s20, %s1502_s30  ;;  %p1507_p11 = scmp.lt.u32.totalorder %s2054_s20, %s2272_s3 }
 0x16f   : > { %p1508_p0 = scmp.lt.u32.totalorder %s1506_s8, %s1502_s30  ;;  %p1510_p7 = scmp.lt.u32.totalorder %s1502_s30, %s2054_s20 }
 0x170   : > { %p1504_p13 = pnand %p1503_p12, %p2299_p5 }
 0x171   : > { %p1509_p3 = por %p1508_p0, %p1507_p11 }
 0x172   : > { %p1505_p4 = pneg %p1504_p13 }
 0x173   : > { %p1511_p9 = por %p1510_p7, %p1509_p3 }
 0x175   : > { %p1512_p10 = pnand %p1511_p9, %p1505_p4 }
 0x177   : > { %1515 = shalt.err (!%p1512_p10)
}
 0x178   : > { %s2282_s29 = smov 128   ;;  %s2283_s14 = smov 8   ;;  %v892_v39 = vsel %vm799_vm2, %v866_v19, 0.0  ;;  %v581_v40 = vadd.f32 %v580_v34, %v579_v33  ;;  %v838_v41 = vadd.f32 %v837_v26, %v836_v28  ;;  %v839_v42 = vsel %vm799_vm2, %v2039_v10, 0.0 }
 0x179   : > { %1326 = dma.vmem_to_hbm [thread:$0]  (%p2299_p5), %s2056_s7, 2048, %s2054_s20, %s910_s18, %s2282_s29, %s2282_s29, %s2283_s14   ;;  %v582_v43 = vsel %vm343_vm1, %v2025_v3, 0.0  ;;  %v635_v44 = vsel %vm343_vm1, %v608_v37, 0.0  ;;  %v867_v45 = vmul.f32 %v2039_v10, %v2039_v10  ;;  %v893_v46 = vadd.f32 %v892_v39, %v891_v35 }
 0x17a   : > { %v637_v47 = vsel %vm343_vm1, %v609_v32, 0.0  ;;  %v841_v48 = vsel %vm799_vm2, %v2027_v4, 0.0  ;;  %v636_v49 = vadd.f32 %v635_v44, %v634_v38  ;;  %v840_v50 = vadd.f32 %v839_v42, %v838_v41  ;;  %s1178_s7 = sshll.u32 %s1868_s26, 1  ;;  %s914_s20 = sand.u32 1, %s1719_s25  }
 0x17b   : > { %v896_v51 = vsel %vm799_vm2, %v868_v36, 0.0  ;;  %v894_v52 = vsel %vm799_vm2, %v867_v45, 0.0  ;;  %v583_v53 = vadd.f32 %v582_v43, %v581_v40  ;;  %v584_v54 = vsel %vm343_vm1, %v532_v29, 0.0  ;;  %s1221_s18 = sshll.u32 %s1719_s25, 5  ;;  %s308_s13 = scalar_lea.vmem [#allocation9], %s1178_s7 }
 0x17c   : > { %v895_v55 = vadd.f32 %v894_v52, %v893_v46  ;;  %v611_v56 = vmul.f32 %v2059_v23, %v2059_v23  ;;  %v610_v57 = vmul.f32 %v532_v29, %v532_v29  ;;  %v638_v58 = vadd.f32 %v637_v47, %v636_v49  ;;  %s954_s17 = sshll.u32 %s308_s13, 4  ;;  %s967_s30 = sshll.u32 %s1940_s11, 4  ;;  %s2154_s17 = int_to_ptr.vmem [resolvable:$true] %s954_s17  ;;  %s2163_s30 = int_to_ptr.vmem [resolvable:$true] %s967_s30 }
 0x17d   : > { %v586_v59 = vsel %vm343_vm1, %v2059_v23, 0.0  ;;  %v585_v60 = vadd.f32 %v584_v54, %v583_v53  ;;  %v842_v61 = vadd.f32 %v841_v48, %v840_v50  ;;  %v843_v62 = vsel %vm799_vm2, %v2071_v30, 0.0  ;;  %s2148_s8 = scalar_lea.hbm %s2273_s4, %s1221_s18  ;;  %s2150_s12 = scalar_lea.vmem [#allocation12], %s1178_s7 }
 0x17e   : > { %v870_v63 = vmul.f32 %v2061_v24, %v2061_v24  ;;  %v639_v0 = vsel %vm343_vm1, %v610_v57, 0.0  ;;  %v869_v1 = vmul.f32 %v2071_v30, %v2071_v30  ;;  %v897_v2 = vadd.f32 %v896_v51, %v895_v55  ;;  %s983_s16 = sshll.u32 %s2150_s12, 4  ;;  %s2161_s28 = scalar_lea.hbm %s2274_s5, %s1228_s15  ;;  %s2173_s16 = int_to_ptr.vmem [resolvable:$true] %s983_s16 }
 0x17f   : > { %v587_v3 = vadd.f32 %v586_v59, %v585_v60  ;;  %v640_v4 = vadd.f32 %v639_v0, %v638_v58  ;;  %v844_v5 = vadd.f32 %v843_v62, %v842_v61  ;;  %v641_v6 = vsel %vm343_vm1, %v611_v56, 0.0  ;;  %s2171_s14 = scalar_lea.hbm %s2275_s6, %s1221_s18  ;;  %s2177_s11 = scalar_lea.sflag [#allocation10], %s914_s20 }
 0x180   : > { %v845_v7 = vsel %vm799_vm2, %v2061_v24, 0.0  ;;  %v898_v8 = vsel %vm799_vm2, %v869_v1, 0.0  ;;  %v900_v13 = vsel %vm799_vm2, %v870_v63, 0.0  ;;  %vm594_vm3 = vcmask 24576   ;;  %s1516_s15 = scalar_lea.vmem %s2154_s17, 32  ;;  %s1660_s19 = smov [#allocation9]  }
 0x181   : > { %v588_v9 = vrot.slane %v587_v3, 4  ;;  %v642_v10 = vadd.f32 %v641_v6, %v640_v4  ;;  %v846_v11 = vadd.f32 %v845_v7, %v844_v5  ;;  %v899_v12 = vadd.f32 %v898_v8, %v897_v2  ;;  %p1517_p1 = scmp.ne.s32.totalorder %s2154_s17, %s1516_s15  ;;  %s1520_s0 = sshll.u32 %s1660_s19, 4  ;;  %s1521_s0 = int_to_ptr.vmem [resolvable:$false] %s1520_s0 }
 0x182   : > { %vm853_vm4 = vcmask 122880   ;;  %p1523_p6 = scmp.lt.s32.totalorder %s2154_s17, %s1521_s0 }
 0x183   : > { %v589_v14 = vadd.f32 %v588_v9, %v587_v3  ;;  %v643_v15 = vrot.slane %v642_v10, 4  ;;  %v847_v16 = vrot.slane %v846_v11, 4  ;;  %v901_v17 = vadd.f32 %v900_v13, %v899_v12  ;;  %p1518_p2 = pnand %p1517_p1, %p2299_p5 }
 0x185   : > { %v590_v18 = vrot.slane %v589_v14, 2  ;;  %v644_v19 = vadd.f32 %v643_v15, %v642_v10  ;;  %v848_v20 = vadd.f32 %v847_v16, %v846_v11  ;;  %v902_v21 = vrot.slane %v901_v17, 4  ;;  %p1519_p8 = pneg %p1518_p2 }
 0x187   : > { %v591_v22 = vadd.f32 %v590_v18, %v589_v14  ;;  %v645_v23 = vrot.slane %v644_v19, 2  ;;  %v849_v24 = vrot.slane %v848_v20, 2  ;;  %v903_v25 = vadd.f32 %v902_v21, %v901_v17 }
 0x189   : > { %v592_v26 = vrot.slane %v591_v22, 1  ;;  %v646_v27 = vadd.f32 %v645_v23, %v644_v19  ;;  %v850_v28 = vadd.f32 %v849_v24, %v848_v20  ;;  %v904_v29 = vrot.slane %v903_v25, 2 }
 0x18b   : > { %v593_v30 = vadd.f32 %v592_v26, %v591_v22  ;;  %v647_v31 = vrot.slane %v646_v27, 1  ;;  %v851_v32 = vrot.slane %v850_v28, 1  ;;  %v905_v33 = vadd.f32 %v904_v29, %v903_v25 }
 0x18d   : > { %v648_v34 = vadd.f32 %v647_v31, %v646_v27  ;;  %v852_v35 = vadd.f32 %v851_v32, %v850_v28  ;;  %v906_v36 = vrot.slane %v905_v33, 1  ;;  %595 = vst.msk [vmem:[%s308_s13] sm:$0x1] %vm594_vm3, %v593_v30 }
 0x18f   : > { %v907_v37 = vadd.f32 %v906_v36, %v905_v33  ;;  %649 = vst.msk [vmem:[%s308_s13 + $0x1] sm:$0x1] %vm594_vm3, %v648_v34  ;;  %s1522_s13 = scalar_lea.vmem %s1521_s0, 64 }
 0x190   : > { %854 = vst.msk [vmem:[%s2150_s12] sm:$0x1] %vm853_vm4, %v852_v35  ;;  %p1524_p12 = scmp.lt.s32.totalorder %s1522_s13, %s1516_s15 }
 0x192   : > { %p1525_p13 = por %p1524_p12, %p1523_p6 }
 0x194   : > { %p1526_p4 = pnand %p1525_p13, %p1519_p8 }
 0x196   : > { %1529 = shalt.err (!%p1526_p4)
}
 0x197   : > { %s1530_s25 = scalar_lea.hbm %s2148_s8, 32  ;;  %s1534_s18 = scalar_lea.hbm %s2273_s4, 128 }
 0x198   : > { %p1531_p11 = scmp.ne.s32.totalorder %s2148_s8, %s1530_s25  ;;  %p1535_p7 = scmp.lt.u32.totalorder %s2148_s8, %s2273_s4 }
 0x199   : > { %p1536_p9 = scmp.lt.u32.totalorder %s1534_s18, %s1530_s25  ;;  %p1538_p1 = scmp.lt.u32.totalorder %s1530_s25, %s2148_s8 }
 0x19a   : > { %p1532_p0 = pnand %p1531_p11, %p2299_p5 }
 0x19b   : > { %p1537_p10 = por %p1536_p9, %p1535_p7 }
 0x19c   : > { %p1533_p3 = pneg %p1532_p0 }
 0x19d   : > { %p1539_p2 = por %p1538_p1, %p1537_p10 }
 0x19f   : > { %p1540_p8 = pnand %p1539_p2, %p1533_p3 }
 0x1a1   : > { %1543 = shalt.err (!%p1540_p8)
}
 0x1a2   : > { %1327 = dma.vmem_to_hbm [thread:$0]  (%p2299_p5), %s2154_s17, 32, %s2148_s8, %s2177_s11  }
 0x1a3   : > { %s1544_s15 = scalar_lea.vmem %s2163_s30, 2048  ;;  %s1661_s19 = smov [#allocation11]  }
 0x1a4   : > { %p1545_p6 = scmp.ne.s32.totalorder %s2163_s30, %s1544_s15  ;;  %s1548_s13 = sshll.u32 %s1661_s19, 4  ;;  %s1549_s13 = int_to_ptr.vmem [resolvable:$false] %s1548_s13 }
 0x1a5   : > { %s1550_s25 = scalar_lea.vmem %s1549_s13, 4096  ;;  %p1551_p4 = scmp.lt.s32.totalorder %s2163_s30, %s1549_s13 }
 0x1a6   : > { %p1546_p12 = pnand %p1545_p6, %p2299_p5  ;;  %p1552_p11 = scmp.lt.s32.totalorder %s1550_s25, %s1544_s15 }
 0x1a8   : > { %p1547_p13 = pneg %p1546_p12  ;;  %p1553_p0 = por %p1552_p11, %p1551_p4 }
 0x1aa   : > { %p1554_p3 = pnand %p1553_p0, %p1547_p13 }
 0x1ac   : > { %1557 = shalt.err (!%p1554_p3)
}
 0x1ad   : > { %s1558_s17 = scalar_lea.hbm %s2161_s28, 2048  ;;  %s1562_s20 = scalar_lea.hbm %s2274_s5, 8192 }
 0x1ae   : > { %p1559_p7 = scmp.ne.s32.totalorder %s2161_s28, %s1558_s17  ;;  %p1563_p1 = scmp.lt.u32.totalorder %s2161_s28, %s2274_s5 }
 0x1af   : > { %p1564_p2 = scmp.lt.u32.totalorder %s1562_s20, %s1558_s17  ;;  %p1566_p6 = scmp.lt.u32.totalorder %s1558_s17, %s2161_s28 }
 0x1b0   : > { %p1560_p9 = pnand %p1559_p7, %p2299_p5 }
 0x1b1   : > { %p1565_p8 = por %p1564_p2, %p1563_p1 }
 0x1b2   : > { %p1561_p10 = pneg %p1560_p9 }
 0x1b3   : > { %p1567_p12 = por %p1566_p6, %p1565_p8 }
 0x1b5   : > { %p1568_p13 = pnand %p1567_p12, %p1561_p10 }
 0x1b7   : > { %1571 = shalt.err (!%p1568_p13)
}
 0x1b8   : > { %s2300_s0 = smov 8   ;;  %s2301_s15 = smov 128   ;;  %908 = vst.msk [vmem:[%s2150_s12 + $0x1] sm:$0x1] %vm853_vm4, %v907_v37 }
 0x1b9   : > { %1328 = dma.vmem_to_hbm [thread:$0]  (%p2299_p5), %s2163_s30, 2048, %s2161_s28, %s2177_s11, %s2301_s15, %s2301_s15, %s2300_s0  }
 0x1ba   : > { %s925_s19 = scalar_lea.sflag [#allocation13], %s1868_s26  ;;  %s1572_s13 = scalar_lea.vmem %s2173_s16, 32 }
 0x1bb   : > { %p1573_p4 = scmp.ne.s32.totalorder %s2173_s16, %s1572_s13  ;;  %s1662_s25 = smov [#allocation12]  }
 0x1bc   : > { %s1576_s17 = sshll.u32 %s1662_s25, 4  ;;  %s1577_s17 = int_to_ptr.vmem [resolvable:$false] %s1576_s17 }
 0x1bd   : > { %p1574_p11 = pnand %p1573_p4, %p2299_p5  ;;  %s1578_s8 = scalar_lea.vmem %s1577_s17, 64 }
 0x1be   : > { %p1579_p3 = scmp.lt.s32.totalorder %s2173_s16, %s1577_s17  ;;  %p1580_p7 = scmp.lt.s32.totalorder %s1578_s8, %s1572_s13 }
 0x1bf   : > { %p1575_p0 = pneg %p1574_p11 }
 0x1c0   : > { %p1581_p9 = por %p1580_p7, %p1579_p3 }
 0x1c2   : > { %p1582_p10 = pnand %p1581_p9, %p1575_p0 }
 0x1c4   : > { %1585 = shalt.err (!%p1582_p10)
}
 0x1c5   : > { %s1586_s26 = scalar_lea.hbm %s2171_s14, 32  ;;  %s1590_s28 = scalar_lea.hbm %s2275_s6, 128 }
 0x1c6   : > { %p1587_p1 = scmp.ne.s32.totalorder %s2171_s14, %s1586_s26  ;;  %p1591_p6 = scmp.lt.u32.totalorder %s2171_s14, %s2275_s6 }
 0x1c7   : > { %p1592_p12 = scmp.lt.u32.totalorder %s1590_s28, %s1586_s26  ;;  %p1594_p4 = scmp.lt.u32.totalorder %s1586_s26, %s2171_s14 }
 0x1c8   : > { %p1588_p2 = pnand %p1587_p1, %p2299_p5 }
 0x1c9   : > { %p1593_p13 = por %p1592_p12, %p1591_p6 }
 0x1ca   : > { %p1589_p8 = pneg %p1588_p2 }
 0x1cb   : > { %p1595_p11 = por %p1594_p4, %p1593_p13 }
 0x1cd   : > { %p1596_p0 = pnand %p1595_p11, %p1589_p8 }
 0x1cf   : > { %1599 = shalt.err (!%p1596_p0)
}
 0x1d0   : > { %1329 = dma.vmem_to_hbm [thread:$0]  (%p2299_p5), %s2173_s16, 32, %s2171_s14, %s925_s19  }
 0x1d1 PF: > { %p1363_p3 = scmp.ge.s32.totalorder %s1650_s24, 2  ;;  %s995_s20 = sand.u32 1, %s1638_s21  }
 0x1d2   : > { %p2302_p7 = scmp.ne.s32.totalorder %s2289_s10, 0  ;;  %s996_s18 = scalar_lea.sflag [#allocation4], %s995_s20 }
 0x1d4   : > { %p1346_p9 = pnand %p1363_p3, %p2302_p7 }
 0x1d6   : > { %1625 = dma.done.wait (!%p1346_p9), %s996_s18, 2048  }
 0x1d7   : > { %1627 = vsyncadd (!%p1346_p9), %s996_s18, 4294965248  ;;  %s2303_s7 = sadd.s32 4294967294, %s1650_s24  }
 0x1d8   : > { %s1004_s0 = sand.u32 1, %s2303_s7  }
 0x1d9   : > { %s1005_s15 = scalar_lea.sflag [#allocation10], %s1004_s0 }
 0x1da   : > { %1629 = dma.done.wait (!%p1346_p9), %s1005_s15, 2080  }
 0x1db   : > { %1631 = vsyncadd (!%p1346_p9), %s1005_s15, 4294965216  ;;  %s1023_s9 = scalar_lea.sflag [#allocation13], %s995_s20 }
 0x1dc   : > { %1633 = dma.done.wait (!%p1346_p9), %s1023_s9, 32  }
 0x1dd   : > { %1635 = vsyncadd (!%p1346_p9), %s1023_s9, 4294967264  ;;  %s2304_s14 = sld [smem:[#allocation19_spill]]  ;;  %p27_p5 = scmp.ge.s32.totalorder %s1723_s27, 6  }
 0x1de   : > { %s2305_s21 = smov %s1642_s22  ;;  %s2306_s22 = smov %s1646_s23 }
 0x1df   : > { %s2308_s24 = smov %s1723_s27  ;;  %29 = sbr.rel (!%p27_p5) target bundleno = 12 (0xc), region = 134 }
 0x1e3   : > { %s2307_s23 = smov %s2304_s14 }
 0x1e6   :  { %1028 = vsyncpa [#allocation3], 1 }
 0x1e7   :  { %1030 = vsyncpa [#allocation3 + $0x1], 1 }
 0x1e8   :  { %1031 = vsyncpa [#allocation6], 1 }
 0x1e9   :  { %1032 = vsyncpa [#allocation4], 1 }
 0x1ea   :  { %1034 = vsyncpa [#allocation4 + $0x1], 1 }
 0x1eb   :  { %1035 = vsyncpa [#allocation10], 1 }
 0x1ec   :  { %1037 = vsyncpa [#allocation10 + $0x1], 1 }
 0x1ed   :  { %1038 = vsyncpa [#allocation13], 1 }
 0x1ee   :  { %1040 = vsyncpa [#allocation13 + $0x1], 1 }

// kernel: bottleneck_forward.7
= control target key start
LH: loop header
LB: loop body
LE: loop exit
PB: predicated region body
PF: predicated region fallthrough
CT: control target
= control target key end

     0   :  { %s1594_s0 = inlined_call_operand.hbm [shape: f32[512,16], index: 0, kind: input, shape index: {}]   ;;  %s1595_s1 = inlined_call_operand.hbm [shape: f32[512,16], index: 1, kind: input, shape index: {}]   ;;  %s1596_s2 = inlined_call_operand.hbm [shape: f32[1,16], index: 2, kind: input, shape index: {}]   ;;  %s1597_s3 = inlined_call_operand.hbm [shape: f32[1,16], index: 3, kind: input, shape index: {}]   ;;  %s1598_s4 = inlined_call_operand.hbm [shape: f32[1,16], index: 4, kind: input, shape index: {}]   ;;  %s1599_s5 = inlined_call_operand.hbm [shape: f32[1,16], index: 5, kind: input, shape index: {}]   ;;  %s1600_s6 = inlined_call_operand.hbm [shape: f32[512,16], index: 6, kind: output, shape index: {}]  }
   0x1   :  { %1604 = sst [smem:[#allocation20_spill]] %s1594_s0 }
   0x2   :  { %1605 = sst [smem:[#allocation21_spill]] %s1596_s2 }
   0x3   :  { %1606 = sst [smem:[#allocation22_spill]] %s1597_s3 }
   0x4   :  { %11 = vsyncpa [#allocation3], 0 }
   0x5   :  { %13 = vsyncpa [#allocation3 + $0x1], 0 }
   0x6   :  { %14 = vsyncpa [#allocation6], 0 }
   0x7   :  { %16 = vsyncpa [#allocation6 + $0x1], 0 }
   0x8   :  { %17 = vsyncpa [#allocation9], 0 }
   0x9   :  { %18 = vsyncpa [#allocation12], 0 }
   0xa   :  { %19 = vsyncpa [#allocation4], 0 }
   0xb   :  { %21 = vsyncpa [#allocation4 + $0x1], 0  ;;  %s1115_s21 = smov 0   ;;  %s1117_s22 = smov 0  }
   0xc   :  { %s1119_s23 = smov 0   ;;  %s1121_s24 = smov 0  }
   0xd LB: > { %s1136_s25 = sadd.s32 4294967295, %s1067_s24   ;;  %s684_s26 = sadd.s32 4294967294, %s1067_s24   ;;  %s1067_s24 = sphi %s1121_s24, %s1630_s24   ;;  %s1063_s23 = sphi %s1119_s23, %s1629_s23   ;;  %s1059_s22 = sphi %s1117_s22, %s1628_s22   ;;  %s1055_s21 = sphi %s1115_s21, %s1627_s21  }
   0xe   : > { %p47_p0 = scmp.ne.s32.totalorder %s1059_s22, %s1055_s21  ;;  %p1601_p1 = scmp.eq.s32.totalorder %s1136_s25, 0 }
   0xf   : > { %p187_p3 = scmp.eq.s32.totalorder %s684_s26, 3  ;;  %p685_p5 = scmp.ge.s32.totalorder %s1067_s24, 1 }
  0x10   : > { %p1145_p4 = por %p1601_p1, %p47_p0  ;;  %p194_p7 = scmp.lt.s32.totalorder %s1067_s24, 5 }
  0x11   : > { %p1150_p6 = por %p187_p3, %p47_p0  ;;  %s1069_s30 = smov [#allocation7]  }
  0x12   : > { %s1607_s27 = scalar_select %p1145_p4, 1, 0 }
  0x13   : > { %s1608_s28 = scalar_select %p1150_p6, 1, 0 }
  0x14   : > { %p1155_p8 = pnand %p685_p5, %p194_p7  ;;  %s207_s7 = sshll.u32 %s1069_s30, 4  ;;  %s208_s7 = int_to_ptr.vmem [resolvable:$true] %s207_s7 }
  0x15   : > { %s1070_s8 = smov [#allocation8]   ;;  %s1071_s11 = smov [#allocation10]  }
  0x16   : > { %s1609_s29 = scalar_select %p1155_p8, 1, 0 }
  0x17   : > { %p739_p9 = pneg %p1155_p8  ;;  %s218_s9 = sshll.u32 %s1070_s8, 4  ;;  %s1167_s9 = int_to_ptr.vmem [resolvable:$true] %s218_s9 }
  0x18   : > { %s229_s12 = sshll.u32 %s1071_s11, 4  ;;  %s1611_s2 = sld [smem:[#allocation21_spill]]  ;;  %s1169_s12 = int_to_ptr.vmem [resolvable:$true] %s229_s12 }
  0x19   : > { %p1163_p10 = pnand %p739_p9, %p1601_p1 }
  0x1b   : > { %p1179_p12 = pneg %p1163_p10 }
  0x1e   : > { %s813_s15 = scalar_lea.hbm %s1611_s2, 16 }
  0x1f   : > { %p814_p11 = scmp.ne.s32.totalorder %s1611_s2, %s813_s15  ;;  %p820_p3 = scmp.lt.u32.totalorder %s813_s15, %s1611_s2 }
  0x21   : > { %p816_p13 = pnand %p1179_p12, %p814_p11 }
  0x23   : > { %p817_p0 = pneg %p816_p13 }
  0x25   : > { %p822_p5 = pnand %p820_p3, %p817_p0 }
  0x27   : > { %825 = shalt.err (!%p822_p5)
}
  0x28   : > { %s826_s26 = scalar_lea.vmem %s208_s7, 16  ;;  %s833_s30 = scalar_lea.vmem %s208_s7, 32 }
  0x29   : > { %p827_p7 = scmp.ne.s32.totalorder %s208_s7, %s826_s26  ;;  %p834_p2 = scmp.lt.s32.totalorder %s208_s7, %s208_s7 }
  0x2a   : > { %p835_p6 = scmp.lt.s32.totalorder %s833_s30, %s826_s26 }
  0x2b   : > { %p829_p9 = pnand %p827_p7, %p1179_p12 }
  0x2c   : > { %p836_p4 = por %p835_p6, %p834_p2 }
  0x2d   : > { %p830_p1 = pneg %p829_p9 }
  0x2f   : > { %p837_p8 = pnand %p836_p4, %p830_p1 }
  0x31   : > { %840 = shalt.err (!%p837_p8)
}
  0x32   : > { %742 = dma.hbm_to_vmem [thread:$0]  (!%p1163_p10), %s1611_s2, 16, %s208_s7, [#allocation6]  }
  0x33   : > { %s1613_s3 = sld [smem:[#allocation22_spill]] }
  0x39   : > { %s841_s15 = scalar_lea.hbm %s1613_s3, 16 }
  0x3a   : > { %p842_p11 = scmp.ne.s32.totalorder %s1613_s3, %s841_s15  ;;  %p848_p1 = scmp.lt.u32.totalorder %s841_s15, %s1613_s3 }
  0x3c   : > { %p844_p13 = pnand %p842_p11, %p1179_p12 }
  0x3e   : > { %p845_p2 = pneg %p844_p13 }
  0x40   : > { %p850_p4 = pnand %p848_p1, %p845_p2 }
  0x42   : > { %853 = shalt.err (!%p850_p4)
}
  0x43   : > { %s854_s7 = scalar_lea.vmem %s1167_s9, 16  ;;  %s861_s26 = scalar_lea.vmem %s1167_s9, 32 }
  0x44   : > { %p855_p6 = scmp.ne.s32.totalorder %s1167_s9, %s854_s7  ;;  %p862_p3 = scmp.lt.s32.totalorder %s1167_s9, %s1167_s9 }
  0x45   : > { %p863_p5 = scmp.lt.s32.totalorder %s861_s26, %s854_s7 }
  0x46   : > { %p857_p8 = pnand %p855_p6, %p1179_p12 }
  0x47   : > { %p864_p7 = por %p863_p5, %p862_p3 }
  0x48   : > { %p858_p0 = pneg %p857_p8 }
  0x4a   : > { %p865_p9 = pnand %p864_p7, %p858_p0 }
  0x4c   : > { %868 = shalt.err (!%p865_p9)
}
  0x4d   : > { %745 = dma.hbm_to_vmem [thread:$0]  (!%p1163_p10), %s1613_s3, 16, %s1167_s9, [#allocation9]  }
  0x4e   : > { %s869_s14 = scalar_lea.hbm %s1598_s4, 16 }
  0x4f   : > { %p870_p11 = scmp.ne.s32.totalorder %s1598_s4, %s869_s14  ;;  %p876_p1 = scmp.lt.u32.totalorder %s869_s14, %s1598_s4 }
  0x51   : > { %p872_p13 = pnand %p870_p11, %p1179_p12 }
  0x53   : > { %p873_p2 = pneg %p872_p13 }
  0x55   : > { %p878_p4 = pnand %p876_p1, %p873_p2 }
  0x57   : > { %881 = shalt.err (!%p878_p4)
}
  0x58   : > { %s882_s9 = scalar_lea.vmem %s1169_s12, 16  ;;  %s889_s20 = scalar_lea.vmem %s1169_s12, 32 }
  0x59   : > { %p883_p6 = scmp.ne.s32.totalorder %s1169_s12, %s882_s9  ;;  %p890_p3 = scmp.lt.s32.totalorder %s1169_s12, %s1169_s12 }
  0x5a   : > { %p891_p5 = scmp.lt.s32.totalorder %s889_s20, %s882_s9 }
  0x5b   : > { %p885_p8 = pnand %p883_p6, %p1179_p12 }
  0x5c   : > { %p892_p7 = por %p891_p5, %p890_p3 }
  0x5d   : > { %p886_p0 = pneg %p885_p8 }
  0x5f   : > { %p893_p9 = pnand %p892_p7, %p886_p0 }
  0x61   : > { %896 = shalt.err (!%p893_p9)
}
  0x62   : > { %748 = dma.hbm_to_vmem [thread:$0]  (!%p1163_p10), %s1598_s4, 16, %s1169_s12, [#allocation9]  }
  0x63   : > { %s1072_s30 = smov [#allocation11]   ;;  %s897_s14 = scalar_lea.hbm %s1599_s5, 16 }
  0x64   : > { %s240_s8 = sshll.u32 %s1072_s30, 4  ;;  %p898_p11 = scmp.ne.s32.totalorder %s1599_s5, %s897_s14  ;;  %s241_s8 = int_to_ptr.vmem [resolvable:$true] %s240_s8 }
  0x65   : > { %p904_p1 = scmp.lt.u32.totalorder %s897_s14, %s1599_s5 }
  0x66   : > { %p900_p13 = pnand %p898_p11, %p1179_p12 }
  0x68   : > { %p901_p2 = pneg %p900_p13 }
  0x6a   : > { %p906_p4 = pnand %p904_p1, %p901_p2 }
  0x6c   : > { %909 = shalt.err (!%p906_p4)
}
  0x6d   : > { %s910_s12 = scalar_lea.vmem %s241_s8, 16  ;;  %s917_s9 = scalar_lea.vmem %s241_s8, 32 }
  0x6e   : > { %p911_p6 = scmp.ne.s32.totalorder %s241_s8, %s910_s12  ;;  %p918_p3 = scmp.lt.s32.totalorder %s241_s8, %s241_s8 }
  0x6f   : > { %p919_p5 = scmp.lt.s32.totalorder %s917_s9, %s910_s12 }
  0x70   : > { %p913_p8 = pnand %p911_p6, %p1179_p12 }
  0x71   : > { %p920_p7 = por %p919_p5, %p918_p3 }
  0x72   : > { %p914_p0 = pneg %p913_p8 }
  0x74   : > { %p921_p9 = pnand %p920_p7, %p914_p0 }
  0x76   : > { %924 = shalt.err (!%p921_p9)
}
  0x77   : > { %751 = dma.hbm_to_vmem [thread:$0]  (!%p1163_p10), %s1599_s5, 16, %s241_s8, [#allocation12]  }
  0x78   : > { %s1262_s18 = sadd.s32 1, %s1067_s24   ;;  %s34_s10 = sadd.s32 1, %s1063_s23 }
  0x79   : > { %s31_s26 = ssub.s32 %s1067_s24, %s1262_s18  ;;  %p41_p12 = scmp.ne.s32.totalorder %s1063_s23, %s1059_s22 }
  0x7a   : > { %p32_p11 = scmp.eq.s32.totalorder %s31_s26, 0  ;;  %p42_p13 = scmp.eq.s32.totalorder %s1067_s24, 0 }
  0x7b   : > { %p1614_p2 = scmp.eq.s32.totalorder %s1136_s25, 3  ;;  %p767_p4 = scmp.lt.s32.totalorder %s1067_s24, 4 }
  0x7c   : > { %s1278_s11 = scalar_select %p32_p11, %s1063_s23, %s34_s10  }
  0x7d   : > { %p1272_p1 = por %p1614_p2, %p41_p12  ;;  %p43_p6 = por %p42_p13, %p41_p12 }
  0x7e   : > { %s251_s13 = sand.u32 1, %s1063_s23   ;;  %s714_s8 = sshll.u32 %s1067_s24, 11 }
  0x7f   : > { %s1281_s14 = sshll.u32 %s251_s13, 7  ;;  %s1616_s0 = sld [smem:[#allocation20_spill]] }
  0x80   : > { %s255_s19 = scalar_lea.vmem [#allocation2], %s1281_s14  ;;  %p1294_p10 = pnand %p767_p4, %p43_p6 }
  0x81   : > { %s262_s12 = sshll.u32 %s255_s19, 4  ;;  %s1298_s20 = scalar_lea.sflag [#allocation3], %s251_s13  ;;  %s1292_s12 = int_to_ptr.vmem [resolvable:$true] %s262_s12 }
  0x82   : > { %p927_p0 = pneg %p1294_p10 }
  0x85   : > { %s1289_s17 = scalar_lea.hbm %s1616_s0, %s714_s8  ;;  %s930_s15 = scalar_lea.hbm %s1616_s0, 8192 }
  0x86   : > { %s925_s7 = scalar_lea.hbm %s1289_s17, 2048  ;;  %p931_p7 = scmp.lt.u32.totalorder %s1289_s17, %s1616_s0 }
  0x87   : > { %p926_p8 = scmp.ne.s32.totalorder %s1289_s17, %s925_s7  ;;  %p932_p9 = scmp.lt.u32.totalorder %s930_s15, %s925_s7 }
  0x88   : > { %p934_p11 = scmp.lt.u32.totalorder %s925_s7, %s1289_s17 }
  0x89   : > { %p928_p3 = pnand %p927_p0, %p926_p8  ;;  %p933_p12 = por %p932_p9, %p931_p7 }
  0x8b   : > { %p929_p5 = pneg %p928_p3  ;;  %p935_p13 = por %p934_p11, %p933_p12 }
  0x8d   : > { %p936_p2 = pnand %p935_p13, %p929_p5 }
  0x8f   : > { %939 = shalt.err (!%p936_p2)
}
  0x90   : > { %s940_s13 = scalar_lea.vmem %s1292_s12, 2048  ;;  %s1073_s10 = smov [#allocation2]  }
  0x91   : > { %p941_p4 = scmp.ne.s32.totalorder %s1292_s12, %s940_s13  ;;  %s945_s26 = sshll.u32 %s1073_s10, 4  ;;  %s946_s26 = int_to_ptr.vmem [resolvable:$false] %s945_s26 }
  0x92   : > { %s947_s16 = scalar_lea.vmem %s946_s26, 4096  ;;  %p948_p3 = scmp.lt.s32.totalorder %s1292_s12, %s946_s26 }
  0x93   : > { %p943_p6 = pnand %p941_p4, %p927_p0  ;;  %p949_p7 = scmp.lt.s32.totalorder %s947_s16, %s940_s13 }
  0x95   : > { %p944_p8 = pneg %p943_p6  ;;  %p950_p9 = por %p949_p7, %p948_p3 }
  0x97   : > { %p951_p12 = pnand %p950_p9, %p944_p8 }
  0x99   : > { %954 = shalt.err (!%p951_p12)
}
  0x9a   : > { %s1074_s7 = smov 128   ;;  %s1075_s15 = smov 8  }
  0x9b   : > { %755 = dma.hbm_to_vmem [thread:$0]  (!%p1294_p10), %s1289_s17, 2048, %s1292_s12, %s1298_s20, %s1074_s7, %s1074_s7, %s1075_s15  }
  0x9c   : > { %s1334_s10 = scalar_lea.hbm %s1595_s1, %s714_s8  ;;  %s276_s26 = scalar_lea.vmem [#allocation5], %s1281_s14 }
  0x9d   : > { %s283_s16 = sshll.u32 %s276_s26, 4  ;;  %s272_s0 = sand.u32 1, %s1067_s24   ;;  %s1337_s16 = int_to_ptr.vmem [resolvable:$true] %s283_s16 }
  0x9e   : > { %s1340_s2 = scalar_lea.sflag [#allocation6], %s272_s0  ;;  %s955_s3 = scalar_lea.hbm %s1334_s10, 2048 }
  0x9f   : > { %p956_p5 = scmp.ne.s32.totalorder %s1334_s10, %s955_s3  ;;  %s960_s12 = scalar_lea.hbm %s1595_s1, 8192 }
  0xa0   : > { %p961_p2 = scmp.lt.u32.totalorder %s1334_s10, %s1595_s1  ;;  %p962_p4 = scmp.lt.u32.totalorder %s960_s12, %s955_s3 }
  0xa1   : > { %p958_p11 = pnand %p956_p5, %p927_p0  ;;  %p964_p8 = scmp.lt.u32.totalorder %s955_s3, %s1334_s10 }
  0xa2   : > { %p963_p6 = por %p962_p4, %p961_p2 }
  0xa3   : > { %p959_p13 = pneg %p958_p11 }
  0xa4   : > { %p965_p3 = por %p964_p8, %p963_p6 }
  0xa6   : > { %p966_p7 = pnand %p965_p3, %p959_p13 }
  0xa8   : > { %969 = shalt.err (!%p966_p7)
}
  0xa9   : > { %s970_s0 = scalar_lea.vmem %s1337_s16, 2048  ;;  %s1076_s14 = smov [#allocation5]  }
  0xaa   : > { %p971_p9 = scmp.ne.s32.totalorder %s1337_s16, %s970_s0  ;;  %s975_s13 = sshll.u32 %s1076_s14, 4  ;;  %s976_s13 = int_to_ptr.vmem [resolvable:$false] %s975_s13 }
  0xab   : > { %s977_s26 = scalar_lea.vmem %s976_s13, 4096  ;;  %p978_p11 = scmp.lt.s32.totalorder %s1337_s16, %s976_s13 }
  0xac   : > { %p973_p12 = pnand %p971_p9, %p927_p0  ;;  %p979_p2 = scmp.lt.s32.totalorder %s977_s26, %s970_s0 }
  0xae   : > { %p974_p5 = pneg %p973_p12  ;;  %p980_p4 = por %p979_p2, %p978_p11 }
  0xb0   : > { %p981_p6 = pnand %p980_p4, %p974_p5 }
  0xb2   : > { %984 = shalt.err (!%p981_p6)
}
  0xb3   : > { %758 = dma.hbm_to_vmem [thread:$0]  (!%p1294_p10), %s1334_s10, 2048, %s1337_s16, %s1340_s2, %s1074_s7, %s1074_s7, %s1075_s15  }
  0xb4   : > { %p1618_p0 = scmp.ne.s32.totalorder %s1609_s29, 0 }
  0xb5   : > { %s1372_s3 = sand.u32 (!%p1618_p0), 1, %s1059_s22   ;;  %p1619_p13 = scmp.ne.s32.totalorder (!%p1618_p0), %s1607_s27, 0 }
  0xb6   : > { %295 = sbr.rel (%p1618_p0) target bundleno = 250 (0xfa), region = 44  ;;  %s1375_s17 = sshll.u32 (!%p1618_p0), %s1372_s3, 7 }
  0xb7   : > { %s298_s9 = scalar_lea.sflag (!%p1618_p0), [#allocation3], %s1372_s3  ;;  %s1379_s8 = scalar_lea.vmem (!%p1618_p0), [#allocation2], %s1375_s17 }
  0xbd   : > { %1030 = dma.done.wait (%p1619_p13), %s298_s9, 2048  }
  0xbe   : > { %1032 = vsyncadd (%p1619_p13), %s298_s9, 4294965248  ;;  %s306_s2 = sand.u32 1, %s1136_s25   ;;  %s1387_s7 = scalar_lea.vmem [#allocation5], %s1375_s17 }
  0xbf   : > { %s307_s29 = scalar_lea.sflag [#allocation6], %s306_s2 }
  0xc0   : > { %1034 = dma.done.wait (%p1619_p13), %s307_s29, 2048  }
  0xc1   : > { %1036 = vsyncadd (%p1619_p13), %s307_s29, 4294965248  ;;  %p1620_p10 = scmp.eq.s32.totalorder %s1136_s25, 0 }
  0xc3   : > { %1038 = dma.done.wait (%p1620_p10), [#allocation6], 16   ;;  %p1621_p8 = pmov %p1620_p10 }
  0xc5   : > { %1040 = vsyncadd (%p1621_p8), [#allocation6], 4294967280  ;;  %p1622_p3 = pmov %p1621_p8 }
  0xc7   : > { %1042 = dma.done.wait (%p1622_p3), [#allocation9], 32   ;;  %p1623_p7 = pmov %p1622_p3 }
  0xc8   : > { %p1624_p9 = pmov %p1622_p3 }
  0xc9   : > { %1044 = vsyncadd (%p1623_p7), [#allocation9], 4294967264 }
  0xca   : > { %1046 = dma.done.wait (%p1624_p9), [#allocation12], 16   ;;  %p1625_p12 = pmov %p1622_p3 }
  0xcb   : > { %v363_v0 = vld [vmem:[%s1379_s8] sm:$0xff]  ;;  %vm519_vm0 = vcmask 130048   ;;  %v364_v8 = vld [vmem:[%s1379_s8 + $0x8] sm:$0xff]  ;;  %v365_v10 = vld [vmem:[%s1379_s8 + $0x10] sm:$0xff]  ;;  %s1456_s27 = scalar_lea.vmem [#allocation13], %s1375_s17  ;;  %s716_s15 = sshll.u32 %s1136_s25, 11 }
  0xcc   : > { %1048 = vsyncadd (%p1625_p12), [#allocation12], 4294967280  ;;  %v1406_v1 = vld [vmem:[#allocation7] ss:$0 sm:$0xff]  ;;  %v1408_v2 = vld [vmem:[#allocation8] ss:$0 sm:$0xff]  ;;  %s1545_s20 = scalar_lea.hbm %s1600_s6, %s716_s15 }
  0xcd   : > { %v386_v3 = vmul.f32 %v1406_v1, %v363_v0  ;;  %v425_v4 = vld [vmem:[%s1387_s7] sm:$0xff]  ;;  %v426_v9 = vld [vmem:[%s1387_s7 + $0x8] sm:$0xff]  ;;  %v387_v12 = vmul.f32 %v1406_v1, %v364_v8  ;;  %v388_v14 = vmul.f32 %v1406_v1, %v365_v10  ;;  %v427_v15 = vld [vmem:[%s1387_s7 + $0x10] sm:$0xff]  ;;  %s550_s10 = sshll.u32 %s1456_s27, 4  ;;  %s537_s25 = scalar_lea.sflag [#allocation4], %s1372_s3  ;;  %s1547_s10 = int_to_ptr.vmem [resolvable:$true] %s550_s10 }
  0xce   : > { %v1412_v5 = vld [vmem:[#allocation10] ss:$0 sm:$0xff]  ;;  %v1414_v6 = vld [vmem:[#allocation11] ss:$0 sm:$0xff]  ;;  %v366_v16 = vld [vmem:[%s1379_s8 + $0x18] sm:$0xff]  ;;  %s985_s19 = scalar_lea.vmem %s1547_s10, 2048 }
  0xcf   : > { %v448_v7 = vmul.f32 %v1412_v5, %v425_v4  ;;  %v409_v11 = vadd.f32 %v1408_v2, %v386_v3  ;;  %v449_v13 = vmul.f32 %v1412_v5, %v426_v9  ;;  %v428_v17 = vld [vmem:[%s1387_s7 + $0x18] sm:$0xff]  ;;  %v450_v19 = vmul.f32 %v1412_v5, %v427_v15  ;;  %v367_v22 = vld [vmem:[%s1379_s8 + $0x20] sm:$0xff]  ;;  %v368_v24 = vld [vmem:[%s1379_s8 + $0x28] sm:$0xff]  ;;  %p986_p5 = scmp.ne.s32.totalorder %s1547_s10, %s985_s19  ;;  %s1077_s0 = smov [#allocation13]  }
  0xd0   : > { %v389_v20 = vmul.f32 %v1406_v1, %v366_v16  ;;  %v451_v21 = vmul.f32 %v1412_v5, %v428_v17  ;;  %v429_v23 = vld [vmem:[%s1387_s7 + $0x20] sm:$0xff]  ;;  %v410_v25 = vadd.f32 %v1408_v2, %v387_v12  ;;  %v411_v27 = vadd.f32 %v1408_v2, %v388_v14  ;;  %v430_v29 = vld [vmem:[%s1387_s7 + $0x28] sm:$0xff]  ;;  %v369_v34 = vld [vmem:[%s1379_s8 + $0x30] sm:$0xff]  ;;  %s989_s14 = sshll.u32 %s1077_s0, 4  ;;  %s990_s14 = int_to_ptr.vmem [resolvable:$false] %s989_s14 }
  0xd1   : > { %v471_v18 = vadd.f32 %v1414_v6, %v448_v7  ;;  %v472_v26 = vadd.f32 %v1414_v6, %v449_v13  ;;  %v390_v28 = vmul.f32 %v1406_v1, %v367_v22  ;;  %v473_v31 = vadd.f32 %v1414_v6, %v450_v19  ;;  %v431_v39 = vld [vmem:[%s1387_s7 + $0x30] sm:$0xff]  ;;  %v370_v44 = vld [vmem:[%s1379_s8 + $0x38] sm:$0xff]  ;;  %v371_v50 = vld [vmem:[%s1379_s8 + $0x40] sm:$0xff]  ;;  %p987_p11 = pnand %p986_p5, %p1272_p1  ;;  %s991_s13 = scalar_lea.vmem %s990_s14, 4096 }
  0xd2   : > { %v412_v32 = vadd.f32 %v1408_v2, %v389_v20  ;;  %v474_v33 = vadd.f32 %v1414_v6, %v451_v21  ;;  %v452_v37 = vmul.f32 %v1412_v5, %v429_v23  ;;  %v391_v38 = vmul.f32 %v1406_v1, %v368_v24  ;;  %v432_v45 = vld [vmem:[%s1387_s7 + $0x38] sm:$0xff]  ;;  %v433_v51 = vld [vmem:[%s1387_s7 + $0x40] sm:$0xff]  ;;  %v372_v56 = vld [vmem:[%s1379_s8 + $0x48] sm:$0xff]  ;;  %p992_p4 = scmp.lt.s32.totalorder %s1547_s10, %s990_s14  ;;  %p993_p6 = scmp.lt.s32.totalorder %s991_s13, %s985_s19 }
  0xd3   : > { %v487_v30 = vadd.f32 %v471_v18, %v409_v11  ;;  %v488_v35 = vadd.f32 %v472_v26, %v410_v25  ;;  %v413_v36 = vadd.f32 %v1408_v2, %v390_v28  ;;  %v489_v41 = vadd.f32 %v473_v31, %v411_v27  ;;  %v434_v3 = vld [vmem:[%s1387_s7 + $0x48] sm:$0xff]  ;;  %v373_v4 = vld [vmem:[%s1379_s8 + $0x50] sm:$0xff]  ;;  %v374_v12 = vld [vmem:[%s1379_s8 + $0x58] sm:$0xff]  ;;  %p988_p2 = pneg %p987_p11 }
  0xd4   : > { %v490_v42 = vadd.f32 %v474_v33, %v412_v32  ;;  %v453_v43 = vmul.f32 %v1412_v5, %v430_v29  ;;  %v475_v47 = vadd.f32 %v1414_v6, %v452_v37  ;;  %v414_v48 = vadd.f32 %v1408_v2, %v391_v38  ;;  %v435_v11 = vld [vmem:[%s1387_s7 + $0x50] sm:$0xff]  ;;  %v436_v17 = vld [vmem:[%s1387_s7 + $0x58] sm:$0xff]  ;;  %v375_v22 = vld [vmem:[%s1379_s8 + $0x60] sm:$0xff]  ;;  %p994_p0 = por %p993_p6, %p992_p4 }
  0xd5   : > { %v503_v40 = vmax.f32 %v487_v30, 0.0  ;;  %v504_v46 = vmax.f32 %v488_v35, 0.0  ;;  %v392_v49 = vmul.f32 %v1406_v1, %v369_v34  ;;  %v505_v52 = vmax.f32 %v489_v41, 0.0  ;;  %v437_v27 = vld [vmem:[%s1387_s7 + $0x60] sm:$0xff]  ;;  %v376_v28 = vld [vmem:[%s1379_s8 + $0x68] sm:$0xff]  ;;  %v377_v34 = vld [vmem:[%s1379_s8 + $0x70] sm:$0xff] }
  0xd6   : > { %v506_v53 = vmax.f32 %v490_v42, 0.0  ;;  %v476_v54 = vadd.f32 %v1414_v6, %v453_v43  ;;  %v454_v55 = vmul.f32 %v1412_v5, %v431_v39  ;;  %v491_v57 = vadd.f32 %v475_v47, %v413_v36  ;;  %v438_v33 = vld [vmem:[%s1387_s7 + $0x68] sm:$0xff]  ;;  %v439_v43 = vld [vmem:[%s1387_s7 + $0x70] sm:$0xff]  ;;  %p995_p13 = pnand %p994_p0, %p988_p2 }
  0xd7   : > { %520 = vst.msk [vmem:[%s1456_s27] sm:$0xff] %vm519_vm0, %v503_v40  ;;  %521 = vst.msk [vmem:[%s1456_s27 + $0x8] sm:$0xff] %vm519_vm0, %v504_v46  ;;  %v415_v58 = vadd.f32 %v1408_v2, %v392_v49  ;;  %v393_v59 = vmul.f32 %v1406_v1, %v370_v44  ;;  %v455_v60 = vmul.f32 %v1412_v5, %v432_v45  ;;  %v440_v49 = vld [vmem:[%s1387_s7 + $0x78] sm:$0xff] }
  0xd8   : > { %522 = vst.msk [vmem:[%s1456_s27 + $0x10] sm:$0xff] %vm519_vm0, %v505_v52  ;;  %523 = vst.msk [vmem:[%s1456_s27 + $0x18] sm:$0xff] %vm519_vm0, %v506_v53  ;;  %v492_v61 = vadd.f32 %v476_v54, %v414_v48  ;;  %v477_v62 = vadd.f32 %v1414_v6, %v454_v55  ;;  %v394_v63 = vmul.f32 %v1406_v1, %v371_v50  ;;  %v507_v7 = vmax.f32 %v491_v57, 0.0  ;;  %v378_v48 = vld [vmem:[%s1379_s8 + $0x78] sm:$0xff] }
  0xd9   : > { %v456_v0 = vmul.f32 %v1412_v5, %v433_v51  ;;  %v416_v8 = vadd.f32 %v1408_v2, %v393_v59  ;;  %v478_v9 = vadd.f32 %v1414_v6, %v455_v60  ;;  %v395_v10 = vmul.f32 %v1406_v1, %v372_v56 }
  0xda   : > { %v508_v13 = vmax.f32 %v492_v61, 0.0  ;;  %v493_v14 = vadd.f32 %v477_v62, %v415_v58  ;;  %v417_v15 = vadd.f32 %v1408_v2, %v394_v63  ;;  %524 = vst.msk [vmem:[%s1456_s27 + $0x20] sm:$0xff] %vm519_vm0, %v507_v7  ;;  %v457_v20 = vmul.f32 %v1412_v5, %v434_v3 }
  0xdb   : > { %v479_v16 = vadd.f32 %v1414_v6, %v456_v0  ;;  %v494_v18 = vadd.f32 %v478_v9, %v416_v8  ;;  %v418_v19 = vadd.f32 %v1408_v2, %v395_v10  ;;  %v396_v21 = vmul.f32 %v1406_v1, %v373_v4 }
  0xdc   : > { %525 = vst.msk [vmem:[%s1456_s27 + $0x28] sm:$0xff] %vm519_vm0, %v508_v13  ;;  %v509_v23 = vmax.f32 %v493_v14, 0.0  ;;  %v458_v25 = vmul.f32 %v1412_v5, %v435_v11  ;;  %v397_v26 = vmul.f32 %v1406_v1, %v374_v12  ;;  %v480_v30 = vadd.f32 %v1414_v6, %v457_v20 }
  0xdd   : > { %v495_v24 = vadd.f32 %v479_v16, %v417_v15  ;;  %v510_v29 = vmax.f32 %v494_v18, 0.0  ;;  %v419_v31 = vadd.f32 %v1408_v2, %v396_v21  ;;  %v459_v32 = vmul.f32 %v1412_v5, %v436_v17 }
  0xde   : > { %526 = vst.msk [vmem:[%s1456_s27 + $0x30] sm:$0xff] %vm519_vm0, %v509_v23  ;;  %v481_v36 = vadd.f32 %v1414_v6, %v458_v25  ;;  %v420_v37 = vadd.f32 %v1408_v2, %v397_v26  ;;  %v398_v38 = vmul.f32 %v1406_v1, %v375_v22  ;;  %v496_v39 = vadd.f32 %v480_v30, %v418_v19 }
  0xdf   : > { %v511_v35 = vmax.f32 %v495_v24, 0.0  ;;  %527 = vst.msk [vmem:[%s1456_s27 + $0x38] sm:$0xff] %vm519_vm0, %v510_v29  ;;  %v482_v40 = vadd.f32 %v1414_v6, %v459_v32  ;;  %v460_v41 = vmul.f32 %v1412_v5, %v437_v27  ;;  %v399_v42 = vmul.f32 %v1406_v1, %v376_v28 }
  0xe0   : > { %v497_v44 = vadd.f32 %v481_v36, %v419_v31  ;;  %v421_v45 = vadd.f32 %v1408_v2, %v398_v38  ;;  %v461_v46 = vmul.f32 %v1412_v5, %v438_v33  ;;  %v400_v47 = vmul.f32 %v1406_v1, %v377_v34 }
  0xe1   : > { %528 = vst.msk [vmem:[%s1456_s27 + $0x40] sm:$0xff] %vm519_vm0, %v511_v35  ;;  %v512_v50 = vmax.f32 %v496_v39, 0.0  ;;  %v498_v51 = vadd.f32 %v482_v40, %v420_v37  ;;  %v483_v52 = vadd.f32 %v1414_v6, %v460_v41  ;;  %v422_v53 = vadd.f32 %v1408_v2, %v399_v42 }
  0xe2   : > { %v513_v54 = vmax.f32 %v497_v44, 0.0  ;;  %v484_v55 = vadd.f32 %v1414_v6, %v461_v46  ;;  %v423_v56 = vadd.f32 %v1408_v2, %v400_v47  ;;  %v462_v57 = vmul.f32 %v1412_v5, %v439_v43 }
  0xe3   : > { %529 = vst.msk [vmem:[%s1456_s27 + $0x48] sm:$0xff] %vm519_vm0, %v512_v50  ;;  %v514_v58 = vmax.f32 %v498_v51, 0.0  ;;  %v499_v59 = vadd.f32 %v483_v52, %v421_v45  ;;  %v401_v60 = vmul.f32 %v1406_v1, %v378_v48  ;;  %v463_v61 = vmul.f32 %v1412_v5, %v440_v49 }
  0xe4   : > { %530 = vst.msk [vmem:[%s1456_s27 + $0x50] sm:$0xff] %vm519_vm0, %v513_v54  ;;  %v500_v62 = vadd.f32 %v484_v55, %v422_v53  ;;  %v485_v63 = vadd.f32 %v1414_v6, %v462_v57 }
  0xe5   : > { %531 = vst.msk [vmem:[%s1456_s27 + $0x58] sm:$0xff] %vm519_vm0, %v514_v58  ;;  %v515_v0 = vmax.f32 %v499_v59, 0.0  ;;  %v424_v3 = vadd.f32 %v1408_v2, %v401_v60  ;;  %v486_v4 = vadd.f32 %v1414_v6, %v463_v61 }
  0xe6   : > { %v516_v1 = vmax.f32 %v500_v62, 0.0  ;;  %v501_v5 = vadd.f32 %v485_v63, %v423_v56 }
  0xe7   : > { %532 = vst.msk [vmem:[%s1456_s27 + $0x60] sm:$0xff] %vm519_vm0, %v515_v0  ;;  %v502_v7 = vadd.f32 %v486_v4, %v424_v3 }
  0xe8   : > { %533 = vst.msk [vmem:[%s1456_s27 + $0x68] sm:$0xff] %vm519_vm0, %v516_v1  ;;  %v517_v8 = vmax.f32 %v501_v5, 0.0 }
  0xe9   : > { %v518_v2 = vmax.f32 %v502_v7, 0.0 }
  0xea   : > { %534 = vst.msk [vmem:[%s1456_s27 + $0x70] sm:$0xff] %vm519_vm0, %v517_v8 }
  0xeb   : > { %535 = vst.msk [vmem:[%s1456_s27 + $0x78] sm:$0xff] %vm519_vm0, %v518_v2 }
  0xec   : > { %998 = shalt.err (!%p995_p13)
}
  0xed   : > { %s999_s26 = scalar_lea.hbm %s1545_s20, 2048  ;;  %s1003_s8 = scalar_lea.hbm %s1600_s6, 8192 }
  0xee   : > { %p1000_p10 = scmp.ne.s32.totalorder %s1545_s20, %s999_s26  ;;  %p1004_p7 = scmp.lt.u32.totalorder %s1545_s20, %s1600_s6 }
  0xef   : > { %p1005_p9 = scmp.lt.u32.totalorder %s1003_s8, %s999_s26  ;;  %p1007_p5 = scmp.lt.u32.totalorder %s999_s26, %s1545_s20 }
  0xf0   : > { %p1001_p8 = pnand %p1000_p10, %p1272_p1 }
  0xf1   : > { %p1006_p12 = por %p1005_p9, %p1004_p7 }
  0xf2   : > { %p1002_p3 = pneg %p1001_p8 }
  0xf3   : > { %p1008_p11 = por %p1007_p5, %p1006_p12 }
  0xf5   : > { %p1009_p2 = pnand %p1008_p11, %p1002_p3 }
  0xf7   : > { %1012 = shalt.err (!%p1009_p2)
}
  0xf8   : > { %s1078_s7 = smov 128   ;;  %s1079_s27 = smov 8  }
  0xf9   : > { %737 = dma.vmem_to_hbm [thread:$0]  (%p1272_p1), %s1547_s10, 2048, %s1545_s20, %s537_s25, %s1078_s7, %s1078_s7, %s1079_s27  }
  0xfa PF: > { %p772_p4 = scmp.ge.s32.totalorder %s1067_s24, 2  ;;  %s565_s15 = sand.u32 1, %s1055_s21  }
  0xfb   : > { %p1626_p6 = scmp.ne.s32.totalorder %s1608_s28, 0  ;;  %s566_s16 = scalar_lea.sflag [#allocation4], %s565_s15 }
  0xfd   : > { %p760_p0 = pnand %p772_p4, %p1626_p6 }
  0xff   : > { %1050 = dma.done.wait (!%p760_p0), %s566_s16, 2048  }
 0x100   : > { %1052 = vsyncadd (!%p760_p0), %s566_s16, 4294965248  ;;  %p24_p13 = scmp.ge.s32.totalorder %s1262_s18, 6   ;;  %s1627_s21 = smov %s1059_s22 }
 0x101   : > { %s1628_s22 = smov %s1063_s23  ;;  %s1629_s23 = smov %s1278_s11 }
 0x102   : > { %s1630_s24 = smov %s1262_s18  ;;  %26 = sbr.rel (!%p24_p13) target bundleno = 13 (0xd), region = 118 }
 0x109   :  { %571 = vsyncpa [#allocation3], 1 }
 0x10a   :  { %573 = vsyncpa [#allocation3 + $0x1], 1 }
 0x10b   :  { %574 = vsyncpa [#allocation6], 1 }
 0x10c   :  { %576 = vsyncpa [#allocation6 + $0x1], 1 }
 0x10d   :  { %577 = vsyncpa [#allocation9], 1 }
 0x10e   :  { %578 = vsyncpa [#allocation12], 1 }
 0x10f   :  { %579 = vsyncpa [#allocation4], 1 }
 0x110   :  { %581 = vsyncpa [#allocation4 + $0x1], 1 }

// kernel: bottleneck_forward.5
= control target key start
LH: loop header
LB: loop body
LE: loop exit
PB: predicated region body
PF: predicated region fallthrough
CT: control target
= control target key end

     0   :  { %11 = vsyncpa [#allocation4], 0  ;;  %s5580_s0 = inlined_call_operand.hbm [shape: f32[512,4], index: 0, kind: input, shape index: {}]   ;;  %s5581_s1 = inlined_call_operand.hbm [shape: f32[3,12,4], index: 1, kind: input, shape index: {}]   ;;  %s5582_s2 = inlined_call_operand.hbm [shape: f32[1,4], index: 2, kind: input, shape index: {}]   ;;  %s5583_s3 = inlined_call_operand.hbm [shape: f32[1,4], index: 3, kind: input, shape index: {}]   ;;  %s5584_s4 = inlined_call_operand.hbm [shape: f32[2,256,4], index: 4, kind: output, shape index: {0}]   ;;  %s5585_s5 = inlined_call_operand.hbm [shape: f32[2,2,4], index: 5, kind: output, shape index: {1}]  }
   0x1   :  { %13 = vsyncpa [#allocation4 + $0x1], 0 }
   0x2   :  { %14 = vsyncpa [#allocation7], 0 }
   0x3   :  { %15 = vsyncpa [#allocation10], 0 }
   0x4   :  { %16 = vsyncpa [#allocation5], 0 }
   0x5   :  { %18 = vsyncpa [#allocation5 + $0x1], 0 }
   0x6   :  { %19 = vsyncpa [#allocation13], 0 }
   0x7   :  { %21 = vsyncpa [#allocation13 + $0x1], 0  ;;  %s3972_s18 = smov 0   ;;  %s3974_s19 = smov 0  }
   0x8   :  { %s3976_s20 = smov 0   ;;  %s3978_s21 = smov 0  }
   0x9 LB: > { %s3993_s22 = sadd.s32 4294967295, %s3927_s21   ;;  %s3150_s23 = sadd.s32 4294967294, %s3927_s21   ;;  %s3927_s21 = sphi %s3978_s21, %s5610_s21   ;;  %s3923_s20 = sphi %s3976_s20, %s5609_s20   ;;  %s3919_s19 = sphi %s3974_s19, %s5608_s19   ;;  %s3915_s18 = sphi %s3972_s18, %s5607_s18  }
   0xa   : > { %p47_p0 = scmp.ne.s32.totalorder %s3919_s19, %s3915_s18  ;;  %p5586_p1 = scmp.eq.s32.totalorder %s3993_s22, 0 }
   0xb   : > { %p140_p3 = scmp.eq.s32.totalorder %s3150_s23, 1  ;;  %p3151_p5 = scmp.ge.s32.totalorder %s3927_s21, 1 }
   0xc   : > { %p4002_p4 = por %p5586_p1, %p47_p0  ;;  %p173_p7 = scmp.lt.s32.totalorder %s3927_s21, 3 }
   0xd   : > { %p4007_p6 = por %p140_p3, %p47_p0  ;;  %s3929_s27 = smov [#allocation6]  }
   0xe   : > { %s5589_s24 = scalar_select %p4002_p4, 1, 0 }
   0xf   : > { %s5590_s25 = scalar_select %p4007_p6, 1, 0 }
  0x10   : > { %p4012_p8 = pnand %p3151_p5, %p173_p7  ;;  %s185_s28 = sshll.u32 %s3929_s27, 4  ;;  %s4016_s28 = int_to_ptr.vmem [resolvable:$true] %s185_s28 }
  0x11   : > { %s3930_s30 = smov [#allocation8]   ;;  %s3931_s7 = smov [#allocation9]  }
  0x12   : > { %s5591_s26 = scalar_select %p4012_p8, 1, 0 }
  0x13   : > { %p3636_p9 = pneg %p4012_p8  ;;  %s199_s6 = sshll.u32 %s3930_s30, 4  ;;  %s4027_s6 = int_to_ptr.vmem [resolvable:$true] %s199_s6 }
  0x14   : > { %s4029_s8 = sshll.u32 %s3931_s7, 4  ;;  %s3707_s11 = scalar_lea.hbm %s5581_s1, 768  ;;  %s211_s8 = int_to_ptr.vmem [resolvable:$true] %s4029_s8 }
  0x15   : > { %p4023_p11 = pnand %p3636_p9, %p5586_p1  ;;  %p3708_p12 = scmp.ne.s32.totalorder %s5581_s1, %s3707_s11 }
  0x16   : > { %p3714_p5 = scmp.lt.u32.totalorder %s3707_s11, %s5581_s1 }
  0x17   : > { %p4039_p13 = pneg %p4023_p11 }
  0x19   : > { %p3710_p0 = pnand %p4039_p13, %p3708_p12 }
  0x1b   : > { %p3711_p3 = pneg %p3710_p0 }
  0x1d   : > { %p3716_p7 = pnand %p3714_p5, %p3711_p3 }
  0x1f   : > { %3719 = shalt.err (!%p3716_p7)
}
  0x20   : > { %s3720_s17 = scalar_lea.vmem %s4016_s28, 768  ;;  %p3728_p2 = scmp.lt.s32.totalorder %s4016_s28, %s4016_s28 }
  0x21   : > { %p3721_p9 = scmp.ne.s32.totalorder %s4016_s28, %s3720_s17  ;;  %p3729_p6 = scmp.lt.s32.totalorder %s3720_s17, %s3720_s17 }
  0x23   : > { %p3723_p10 = pnand %p3721_p9, %p4039_p13  ;;  %p3730_p12 = por %p3729_p6, %p3728_p2 }
  0x25   : > { %p3724_p1 = pneg %p3723_p10 }
  0x27   : > { %p3731_p0 = pnand %p3730_p12, %p3724_p1 }
  0x29   : > { %3734 = shalt.err (!%p3731_p0)
}
  0x2a   : > { %s3932_s23 = smov 128   ;;  %s3933_s27 = smov 8  }
  0x2b   : > { %3639 = dma.hbm_to_vmem [thread:$0]  (!%p4023_p11), %s5581_s1, 768, %s4016_s28, [#allocation7], %s3932_s23, %s3932_s23, %s3933_s27  }
  0x2c   : > { %s3735_s11 = scalar_lea.hbm %s5582_s2, 16 }
  0x2d   : > { %p3736_p1 = scmp.ne.s32.totalorder %s5582_s2, %s3735_s11  ;;  %p3742_p10 = scmp.lt.u32.totalorder %s3735_s11, %s5582_s2 }
  0x2f   : > { %p3738_p2 = pnand %p3736_p1, %p4039_p13 }
  0x31   : > { %p3739_p6 = pneg %p3738_p2 }
  0x33   : > { %p3744_p3 = pnand %p3742_p10, %p3739_p6 }
  0x35   : > { %3747 = shalt.err (!%p3744_p3)
}
  0x36   : > { %s3748_s28 = scalar_lea.vmem %s4027_s6, 16  ;;  %s3755_s17 = scalar_lea.vmem %s4027_s6, 32 }
  0x37   : > { %p3749_p5 = scmp.ne.s32.totalorder %s4027_s6, %s3748_s28  ;;  %p3756_p12 = scmp.lt.s32.totalorder %s4027_s6, %s4027_s6 }
  0x38   : > { %p3757_p0 = scmp.lt.s32.totalorder %s3755_s17, %s3748_s28 }
  0x39   : > { %p3751_p7 = pnand %p3749_p5, %p4039_p13 }
  0x3a   : > { %p3758_p1 = por %p3757_p0, %p3756_p12 }
  0x3b   : > { %p3752_p9 = pneg %p3751_p7 }
  0x3d   : > { %p3759_p2 = pnand %p3758_p1, %p3752_p9 }
  0x3f   : > { %3762 = shalt.err (!%p3759_p2)
}
  0x40   : > { %3642 = dma.hbm_to_vmem [thread:$0]  (!%p4023_p11), %s5582_s2, 16, %s4027_s6, [#allocation7]  }
  0x41   : > { %s3763_s11 = scalar_lea.hbm %s5583_s3, 16 }
  0x42   : > { %p3764_p6 = scmp.ne.s32.totalorder %s5583_s3, %s3763_s11  ;;  %p3770_p5 = scmp.lt.u32.totalorder %s3763_s11, %s5583_s3 }
  0x44   : > { %p3766_p10 = pnand %p3764_p6, %p4039_p13 }
  0x46   : > { %p3767_p3 = pneg %p3766_p10 }
  0x48   : > { %p3772_p7 = pnand %p3770_p5, %p3767_p3 }
  0x4a   : > { %3775 = shalt.err (!%p3772_p7)
}
  0x4b   : > { %s3776_s28 = scalar_lea.vmem %s211_s8, 16  ;;  %s3783_s6 = scalar_lea.vmem %s211_s8, 32 }
  0x4c   : > { %p3777_p9 = scmp.ne.s32.totalorder %s211_s8, %s3776_s28  ;;  %p3784_p1 = scmp.lt.s32.totalorder %s211_s8, %s211_s8 }
  0x4d   : > { %p3785_p2 = scmp.lt.s32.totalorder %s3783_s6, %s3776_s28 }
  0x4e   : > { %p3779_p12 = pnand %p3777_p9, %p4039_p13 }
  0x4f   : > { %p3786_p4 = por %p3785_p2, %p3784_p1 }
  0x50   : > { %p3780_p0 = pneg %p3779_p12 }
  0x52   : > { %p3787_p8 = pnand %p3786_p4, %p3780_p0 }
  0x54   : > { %3790 = shalt.err (!%p3787_p8)
}
  0x55   : > { %3645 = dma.hbm_to_vmem [thread:$0]  (!%p4023_p11), %s5583_s3, 16, %s211_s8, [#allocation10]  }
  0x56   : > { %s4107_s14 = sadd.s32 1, %s3927_s21   ;;  %s34_s29 = sadd.s32 1, %s3923_s20 }
  0x57   : > { %s31_s7 = ssub.s32 %s3927_s21, %s4107_s14  ;;  %p41_p8 = scmp.ne.s32.totalorder %s3923_s20, %s3919_s19 }
  0x58   : > { %p32_p4 = scmp.eq.s32.totalorder %s31_s7, 0  ;;  %p42_p13 = scmp.eq.s32.totalorder %s3927_s21, 0 }
  0x59   : > { %p3660_p6 = scmp.lt.s32.totalorder %s3927_s21, 2  ;;  %p5594_p3 = scmp.eq.s32.totalorder %s3993_s22, 1 }
  0x5a   : > { %s4117_s9 = scalar_select %p32_p4, %s3923_s20, %s34_s29  }
  0x5b   : > { %p43_p10 = por %p42_p13, %p41_p8  ;;  %p4121_p5 = por %p5594_p3, %p41_p8 }
  0x5c   : > { %s221_s11 = sand.u32 1, %s3923_s20   ;;  %s3274_s12 = sshll.u32 %s3927_s21, 12 }
  0x5d   : > { %s3156_s8 = sshll.u32 %s221_s11, 8  ;;  %s4130_s16 = scalar_lea.hbm %s5580_s0, %s3274_s12 }
  0x5e   : > { %s225_s28 = scalar_lea.vmem [#allocation3], %s3156_s8  ;;  %p4132_p11 = pnand %p3660_p6, %p43_p10 }
  0x5f   : > { %s232_s6 = sshll.u32 %s225_s28, 4  ;;  %s4138_s30 = scalar_lea.sflag [#allocation4], %s221_s11  ;;  %s4136_s6 = int_to_ptr.vmem [resolvable:$true] %s232_s6 }
  0x60   : > { %s3791_s7 = scalar_lea.hbm %s4130_s16, 4096  ;;  %p3793_p9 = pneg %p4132_p11 }
  0x61   : > { %p3792_p7 = scmp.ne.s32.totalorder %s4130_s16, %s3791_s7  ;;  %s3796_s8 = scalar_lea.hbm %s5580_s0, 8192 }
  0x62   : > { %p3797_p1 = scmp.lt.u32.totalorder %s4130_s16, %s5580_s0  ;;  %p3798_p2 = scmp.lt.u32.totalorder %s3796_s8, %s3791_s7 }
  0x63   : > { %p3794_p12 = pnand %p3793_p9, %p3792_p7  ;;  %p3800_p8 = scmp.lt.u32.totalorder %s3791_s7, %s4130_s16 }
  0x64   : > { %p3799_p4 = por %p3798_p2, %p3797_p1 }
  0x65   : > { %p3795_p0 = pneg %p3794_p12 }
  0x66   : > { %p3801_p13 = por %p3800_p8, %p3799_p4 }
  0x68   : > { %p3802_p6 = pnand %p3801_p13, %p3795_p0 }
  0x6a   : > { %3805 = shalt.err (!%p3802_p6)
}
  0x6b   : > { %s3806_s11 = scalar_lea.vmem %s4136_s6, 4096  ;;  %s3934_s28 = smov [#allocation3]  }
  0x6c   : > { %p3807_p10 = scmp.ne.s32.totalorder %s4136_s6, %s3806_s11  ;;  %s3811_s29 = sshll.u32 %s3934_s28, 4  ;;  %s3812_s29 = int_to_ptr.vmem [resolvable:$false] %s3811_s29 }
  0x6d   : > { %s3813_s12 = scalar_lea.vmem %s3812_s29, 8192  ;;  %p3814_p12 = scmp.lt.s32.totalorder %s4136_s6, %s3812_s29 }
  0x6e   : > { %p3809_p3 = pnand %p3807_p10, %p3793_p9  ;;  %p3815_p1 = scmp.lt.s32.totalorder %s3813_s12, %s3806_s11 }
  0x70   : > { %p3810_p7 = pneg %p3809_p3  ;;  %p3816_p2 = por %p3815_p1, %p3814_p12 }
  0x72   : > { %p3817_p4 = pnand %p3816_p2, %p3810_p7 }
  0x74   : > { %3820 = shalt.err (!%p3817_p4)
}
  0x75   : > { %3649 = dma.hbm_to_vmem [thread:$0]  (!%p4132_p11), %s4130_s16, 4096, %s4136_s6, %s4138_s30, %s3932_s23, %s3932_s23, %s3933_s27  }
  0x76   : > { %p5597_p9 = scmp.ne.s32.totalorder %s5591_s26, 0 }
  0x77   : > { %s4172_s7 = sand.u32 (!%p5597_p9), 1, %s3919_s19   ;;  %p5598_p0 = scmp.ne.s32.totalorder (!%p5597_p9), %s5589_s24, 0 }
  0x78   : > { %244 = sbr.rel (%p5597_p9) target bundleno = 914 (0x392), region = 36  ;;  %s3160_s8 = sshll.u32 (!%p5597_p9), %s4172_s7, 8 }
  0x79   : > { %s247_s13 = scalar_lea.sflag (!%p5597_p9), [#allocation4], %s4172_s7  ;;  %s4178_s17 = scalar_lea.vmem (!%p5597_p9), [#allocation3], %s3160_s8 }
  0x7f   : > { %3894 = dma.done.wait (%p5598_p0), %s247_s13, 4096  }
  0x80   : > { %3896 = vsyncadd (%p5598_p0), %s247_s13, 4294963200  ;;  %p5599_p11 = scmp.eq.s32.totalorder %s3993_s22, 0 }
  0x82   : > { %3898 = dma.done.wait (%p5599_p11), [#allocation7], 784   ;;  %p5600_p8 = pmov %p5599_p11 }
  0x84   : > { %3900 = vsyncadd (%p5600_p8), [#allocation7], 4294966512  ;;  %p5601_p13 = pmov %p5600_p8 }
  0x85   : > { %p5602_p6 = pmov %p5600_p8 }
  0x86   : > { %3902 = dma.done.wait (%p5601_p13), [#allocation10], 16  }
  0x87   : > { %3904 = vsyncadd (%p5602_p6), [#allocation10], 4294967280  ;;  %vm437_vm0 = vcmask 31744   ;;  %vm440_vm1 = vcmask 25600   ;;  %v3935_v0 = vmov 0.0   ;;  %vm446_vm2 = vcmask 24576  }
  0x88   : > { %439 = vst.msk [vmem:[#allocation2 + $0x8] sm:$0xff] %vm437_vm0, %v3935_v0  ;;  %438 = vst.msk [vmem:[#allocation2] sm:$0xff] %vm437_vm0, %v3935_v0  ;;  %v295_v1 = vld [vmem:[%s4178_s17] sm:$0xff]  ;;  %v296_v2 = vld [vmem:[%s4178_s17 + $0x8] sm:$0xff]  ;;  %s3936_s24 = smov 4   ;;  %vm1451_vm3 = vcmask 1043456  }
  0x89   : > { %441 = vst.msk [vmem:[#allocation2 + $0x10] sm:$0x3] %vm440_vm1, %v3935_v0  ;;  %445 = vst.msk [vmem:[#allocation2 + $0x1a8] sm:$0x3] %vm440_vm1, %v3935_v0  ;;  %v4234_v3 = vld [vmem:[#allocation8] ss:$0 sm:$0xff] }
  0x8a   : > { %443 = vst.msk [vmem:[#allocation2 + $0x198] sm:$0xff] %vm437_vm0, %v3935_v0  ;;  %444 = vst.msk [vmem:[#allocation2 + $0x1a0] sm:$0xff] %vm437_vm0, %v3935_v0  ;;  %v334_v7 = vmul.f32 %v4234_v3, %v295_v1  ;;  %v335_v8 = vmul.f32 %v4234_v3, %v296_v2  ;;  %v4240_v10 = vld [vmem:[#allocation9] ss:$0 sm:$0xff]  ;;  %v298_v15 = vld [vmem:[%s4178_s17 + $0x18] sm:$0xff]  ;;  %s3937_s26 = smov 8  }
  0x8b   : > { %465 = vst.msk [vmem:[#allocation2 + $0x11] sm:$0x1] %vm446_vm2, %v3935_v0  ;;  %447 = vst.msk [vmem:[#allocation2] sm:$0x1] %vm446_vm2, %v3935_v0  ;;  %v297_v11 = vld [vmem:[%s4178_s17 + $0x10] sm:$0xff]  ;;  %v299_v16 = vld [vmem:[%s4178_s17 + $0x20] sm:$0xff]  ;;  %v337_v18 = vmul.f32 %v4234_v3, %v298_v15 }
  0x8c   : > { %448 = vst.msk [vmem:[#allocation2 + $0x18] sm:$0x1] %vm446_vm2, %v3935_v0  ;;  %449 = vst.msk [vmem:[#allocation2 + $0x30] sm:$0x1] %vm446_vm2, %v3935_v0  ;;  %v373_v12 = vadd.f32 %v4240_v10, %v334_v7  ;;  %v374_v13 = vadd.f32 %v4240_v10, %v335_v8  ;;  %v336_v14 = vmul.f32 %v4234_v3, %v297_v11  ;;  %v300_v17 = vld [vmem:[%s4178_s17 + $0x28] sm:$0xff]  ;;  %v301_v21 = vld [vmem:[%s4178_s17 + $0x30] sm:$0xff] }
  0x8d   : > { %450 = vst.msk [vmem:[#allocation2 + $0x48] sm:$0x1] %vm446_vm2, %v3935_v0  ;;  %451 = vst.msk [vmem:[#allocation2 + $0x60] sm:$0x1] %vm446_vm2, %v3935_v0  ;;  %v338_v19 = vmul.f32 %v4234_v3, %v299_v16  ;;  %v339_v20 = vmul.f32 %v4234_v3, %v300_v17  ;;  %v302_v22 = vld [vmem:[%s4178_s17 + $0x38] sm:$0xff]  ;;  %v303_v23 = vld [vmem:[%s4178_s17 + $0x40] sm:$0xff]  ;;  %v340_v27 = vmul.f32 %v4234_v3, %v301_v21 }
  0x8e   : > { %452 = vst.msk [vmem:[#allocation2 + $0x78] sm:$0x1] %vm446_vm2, %v3935_v0  ;;  %453 = vst.msk [vmem:[#allocation2 + $0x90] sm:$0x1] %vm446_vm2, %v3935_v0  ;;  %v405_v24 = vmax.f32 %v373_v12, 0.0  ;;  %v406_v25 = vmax.f32 %v374_v13, 0.0  ;;  %v375_v26 = vadd.f32 %v4240_v10, %v336_v14  ;;  %v376_v29 = vadd.f32 %v4240_v10, %v337_v18 }
  0x8f   : > { %454 = vst.msk [vmem:[#allocation2 + $0xa8] sm:$0x1] %vm446_vm2, %v3935_v0  ;;  %455 = vst.msk [vmem:[#allocation2 + $0xc0] sm:$0x1] %vm446_vm2, %v3935_v0  ;;  %v548_v5 = vld [vmem:[#allocation2 + $0x1] sm:$0xff]  ;;  %v304_v28 = vld [vmem:[%s4178_s17 + $0x48] sm:$0xff]  ;;  %v377_v30 = vadd.f32 %v4240_v10, %v338_v19  ;;  %v378_v31 = vadd.f32 %v4240_v10, %v339_v20  ;;  %v379_v34 = vadd.f32 %v4240_v10, %v340_v27 }
  0x90   : > { %456 = vst.msk [vmem:[#allocation2 + $0xd8] sm:$0x1] %vm446_vm2, %v3935_v0  ;;  %457 = vst.msk [vmem:[#allocation2 + $0xf0] sm:$0x1] %vm446_vm2, %v3935_v0  ;;  %v549_v4 = vld [vmem:[#allocation2 + $0x9] sm:$0xff]  ;;  %644 = vrot.lane.b32.xlu0 %v548_v5, %s3936_s24  ;;  %v305_v32 = vld [vmem:[%s4178_s17 + $0x50] sm:$0xff]  ;;  %v341_v35 = vmul.f32 %v4234_v3, %v302_v22  ;;  %v342_v36 = vmul.f32 %v4234_v3, %v303_v23  ;;  %v343_v43 = vmul.f32 %v4234_v3, %v304_v28 }
  0x91   : > { %458 = vst.msk [vmem:[#allocation2 + $0x108] sm:$0x1] %vm446_vm2, %v3935_v0  ;;  %459 = vst.msk [vmem:[#allocation2 + $0x120] sm:$0x1] %vm446_vm2, %v3935_v0  ;;  %v580_v6 = vld [vmem:[#allocation2 + $0x2] sm:$0xff]  ;;  %646 = vrot.lane.b32.xlu1 %v549_v4, %s3936_s24  ;;  %v407_v33 = vmax.f32 %v375_v26, 0.0  ;;  %v344_v48 = vmul.f32 %v4234_v3, %v305_v32 }
  0x92   : > { %460 = vst.msk [vmem:[#allocation2 + $0x138] sm:$0x1] %vm446_vm2, %v3935_v0  ;;  %461 = vst.msk [vmem:[#allocation2 + $0x150] sm:$0x1] %vm446_vm2, %v3935_v0  ;;  %v581_v9 = vld [vmem:[#allocation2 + $0xa] sm:$0xff]  ;;  %v308_v39 = vld [vmem:[%s4178_s17 + $0x68] sm:$0xff]  ;;  %v380_v46 = vadd.f32 %v4240_v10, %v341_v35  ;;  %v381_v47 = vadd.f32 %v4240_v10, %v342_v36  ;;  %v382_v49 = vadd.f32 %v4240_v10, %v343_v43 }
  0x93   : > { %462 = vst.msk [vmem:[#allocation2 + $0x168] sm:$0x1] %vm446_vm2, %v3935_v0  ;;  %463 = vst.msk [vmem:[#allocation2 + $0x180] sm:$0x1] %vm446_vm2, %v3935_v0  ;;  %v306_v37 = vld [vmem:[%s4178_s17 + $0x58] sm:$0xff]  ;;  %v307_v38 = vld [vmem:[%s4178_s17 + $0x60] sm:$0xff]  ;;  %v347_v52 = vmul.f32 %v4234_v3, %v308_v39  ;;  %v383_v58 = vadd.f32 %v4240_v10, %v344_v48 }
  0x94   : > { %464 = vst.msk [vmem:[#allocation2 + $0x198] sm:$0x1] %vm446_vm2, %v3935_v0  ;;  %466 = vst.msk [vmem:[#allocation2 + $0x29] sm:$0x1] %vm446_vm2, %v3935_v0  ;;  %774 = vrot.lane.b32.xlu0 %v581_v9, %s3937_s26  ;;  %v408_v40 = vmax.f32 %v376_v29, 0.0  ;;  %v409_v41 = vmax.f32 %v377_v30, 0.0  ;;  %v345_v50 = vmul.f32 %v4234_v3, %v306_v37  ;;  %v346_v51 = vmul.f32 %v4234_v3, %v307_v38 }
  0x95   : > { %467 = vst.msk [vmem:[#allocation2 + $0x41] sm:$0x1] %vm446_vm2, %v3935_v0  ;;  %468 = vst.msk [vmem:[#allocation2 + $0x59] sm:$0x1] %vm446_vm2, %v3935_v0  ;;  %772 = vrot.lane.b32.xlu1 %v580_v6, %s3937_s26  ;;  %v410_v42 = vmax.f32 %v378_v31, 0.0  ;;  %v309_v44 = vld [vmem:[%s4178_s17 + $0x70] sm:$0xff]  ;;  %v386_v1 = vadd.f32 %v4240_v10, %v347_v52 }
  0x96   : > { %469 = vst.msk [vmem:[#allocation2 + $0x71] sm:$0x1] %vm446_vm2, %v3935_v0  ;;  %470 = vst.msk [vmem:[#allocation2 + $0x89] sm:$0x1] %vm446_vm2, %v3935_v0  ;;  %v411_v45 = vmax.f32 %v379_v34, 0.0  ;;  %v933_v53 = vld [vmem:[#allocation6] sm:$0xff]  ;;  %v348_v59 = vmul.f32 %v4234_v3, %v309_v44  ;;  %v384_v63 = vadd.f32 %v4240_v10, %v345_v50 }
  0x97   : > { %471 = vst.msk [vmem:[#allocation2 + $0xa1] sm:$0x1] %vm446_vm2, %v3935_v0  ;;  %472 = vst.msk [vmem:[#allocation2 + $0xb9] sm:$0x1] %vm446_vm2, %v3935_v0  ;;  %v934_v54 = vld [vmem:[#allocation6 + $0x8] sm:$0xf] }
  0x98   : > { %473 = vst.msk [vmem:[#allocation2 + $0xd1] sm:$0x1] %vm446_vm2, %v3935_v0  ;;  %474 = vst.msk [vmem:[#allocation2 + $0xe9] sm:$0x1] %vm446_vm2, %v3935_v0  ;;  %v310_v55 = vld [vmem:[%s4178_s17 + $0x78] sm:$0xff]  ;;  %v412_v56 = vmax.f32 %v380_v46, 0.0  ;;  %v387_v6 = vadd.f32 %v4240_v10, %v348_v59  ;;  %v4302_v8 = vpack.c.bf16 %v934_v54, %v933_v53 }
  0x99   : > { %475 = vst.msk [vmem:[#allocation2 + $0x101] sm:$0x1] %vm446_vm2, %v3935_v0  ;;  %476 = vst.msk [vmem:[#allocation2 + $0x119] sm:$0x1] %vm446_vm2, %v3935_v0  ;;  %v413_v57 = vmax.f32 %v381_v47, 0.0  ;;  %v1352_v60 = vld [vmem:[#allocation6 + $0x10] sm:$0xff]  ;;  %v349_v9 = vmul.f32 %v4234_v3, %v310_v55 }
  0x9a   : > { %477 = vst.msk [vmem:[#allocation2 + $0x131] sm:$0x1] %vm446_vm2, %v3935_v0  ;;  %478 = vst.msk [vmem:[#allocation2 + $0x149] sm:$0x1] %vm446_vm2, %v3935_v0  ;;  %v1353_v61 = vld [vmem:[#allocation6 + $0x18] sm:$0xf] }
  0x9b   : > { %479 = vst.msk [vmem:[#allocation2 + $0x161] sm:$0x1] %vm446_vm2, %v3935_v0  ;;  %480 = vst.msk [vmem:[#allocation2 + $0x179] sm:$0x1] %vm446_vm2, %v3935_v0  ;;  %v414_v62 = vmax.f32 %v382_v49, 0.0  ;;  %v311_v2 = vld [vmem:[%s4178_s17 + $0x80] sm:$0xff]  ;;  %v3534_v18 = vpack.c.bf16 %v1353_v61, %v1352_v60  ;;  %v388_v20 = vadd.f32 %v4240_v10, %v349_v9 }
  0x9c   : > { %481 = vst.msk [vmem:[#allocation2 + $0x191] sm:$0x1] %vm446_vm2, %v3935_v0  ;;  %482 = vst.msk [vmem:[#allocation2 + $0x1a9] sm:$0x1] %vm446_vm2, %v3935_v0  ;;  %v385_v0 = vadd.f32 %v4240_v10, %v346_v51  ;;  %v312_v4 = vld [vmem:[%s4178_s17 + $0x88] sm:$0xff]  ;;  %v415_v5 = vmax.f32 %v383_v58, 0.0  ;;  %v350_v21 = vmul.f32 %v4234_v3, %v311_v2 }
  0x9d   : > { %484 = vst.msk [vmem:[#allocation2 + $0x19] sm:$0xff] %vm437_vm0, %v405_v24  ;;  %485 = vst.msk [vmem:[#allocation2 + $0x21] sm:$0xff] %vm437_vm0, %v406_v25  ;;  %vm3938_vm4 = vmmov 1   ;;  %v313_v11 = vld [vmem:[%s4178_s17 + $0x90] sm:$0xff]  ;;  %v314_v12 = vld [vmem:[%s4178_s17 + $0x98] sm:$0xff]  ;;  %v416_v15 = vmax.f32 %v384_v63, 0.0  ;;  %v351_v22 = vmul.f32 %v4234_v3, %v312_v4 }
  0x9e   : > { %486 = vst.msk [vmem:[#allocation2 + $0x31] sm:$0xff] %vm437_vm0, %v407_v33  ;;  %487 = vst.msk [vmem:[#allocation2 + $0x39] sm:$0xff] %vm437_vm0, %v408_v40  ;;  %v417_v16 = vmax.f32 %v385_v0, 0.0  ;;  %v418_v17 = vmax.f32 %v386_v1, 0.0  ;;  %v419_v19 = vmax.f32 %v387_v6, 0.0  ;;  %v352_v25 = vmul.f32 %v4234_v3, %v313_v11  ;;  %v315_v37 = vld [vmem:[%s4178_s17 + $0xa0] sm:$0xff] }
  0x9f   : > { %488 = vst.msk [vmem:[#allocation2 + $0x49] sm:$0xff] %vm437_vm0, %v409_v41  ;;  %489 = vst.msk [vmem:[#allocation2 + $0x51] sm:$0xff] %vm437_vm0, %v410_v42  ;;  %v353_v26 = vmul.f32 %v4234_v3, %v314_v12  ;;  %v420_v27 = vmax.f32 %v388_v20, 0.0  ;;  %v389_v28 = vadd.f32 %v4240_v10, %v350_v21  ;;  %v390_v29 = vadd.f32 %v4240_v10, %v351_v22  ;;  %v316_v42 = vld [vmem:[%s4178_s17 + $0xa8] sm:$0xff]  ;;  %v317_v49 = vld [vmem:[%s4178_s17 + $0xb0] sm:$0xff]  ;;  %s5323_s23 = scalar_lea.vmem [#allocation11], %s3160_s8 }
  0xa0   : > { %490 = vst.msk [vmem:[#allocation2 + $0x61] sm:$0xff] %vm437_vm0, %v411_v45  ;;  %491 = vst.msk [vmem:[#allocation2 + $0x69] sm:$0xff] %vm437_vm0, %v412_v56  ;;  %v391_v30 = vadd.f32 %v4240_v10, %v352_v25  ;;  %v354_v40 = vmul.f32 %v4234_v3, %v315_v37  ;;  %v355_v43 = vmul.f32 %v4234_v3, %v316_v42  ;;  %v318_v54 = vld [vmem:[%s4178_s17 + $0xb8] sm:$0xff]  ;;  %v319_v61 = vld [vmem:[%s4178_s17 + $0xc0] sm:$0xff]  ;;  %vm900_vm6 = vcmask 64512   ;;  %s3275_s27 = sshll.u32 %s3993_s22, 12 }
  0xa1   : > { %492 = vst.msk [vmem:[#allocation2 + $0x79] sm:$0xff] %vm437_vm0, %v413_v57  ;;  %vm4298_vm5 = vmpackc.low %vm1451_vm3, %vm3938_vm4  ;;  %v392_v31 = vadd.f32 %v4240_v10, %v353_v26  ;;  %v421_v32 = vmax.f32 %v389_v28, 0.0  ;;  %v422_v33 = vmax.f32 %v390_v29, 0.0  ;;  %v356_v50 = vmul.f32 %v4234_v3, %v317_v49  ;;  %v320_v2 = vld [vmem:[%s4178_s17 + $0xc8] sm:$0xff]  ;;  %v323_v25 = vld [vmem:[%s4178_s17 + $0xe0] sm:$0xff]  ;;  %s3003_s16 = sshll.u32 %s5323_s23, 4  ;;  %s5492_s15 = scalar_lea.hbm %s5584_s4, %s3275_s27  ;;  %s5494_s16 = int_to_ptr.vmem [resolvable:$true] %s3003_s16 }
  0xa2   : > { %493 = vst.msk [vmem:[#allocation2 + $0x81] sm:$0xff] %vm437_vm0, %v414_v62  ;;  %494 = vst.msk [vmem:[#allocation2 + $0x91] sm:$0xff] %vm437_vm0, %v415_v5  ;;  %3542 = vmatprep.subr.msk.bf16.mxu0 %vm4298_vm5, %v4302_v8  ;;  %3536 = vmatprep.subr.msk.bf16.mxu1 %vm4298_vm5, %v3534_v18  ;;  %v423_v35 = vmax.f32 %v391_v30, 0.0  ;;  %v393_v41 = vadd.f32 %v4240_v10, %v354_v40  ;;  %v394_v46 = vadd.f32 %v4240_v10, %v355_v43  ;;  %v324_v30 = vld [vmem:[%s4178_s17 + $0xe8] sm:$0xff]  ;;  %v325_v40 = vld [vmem:[%s4178_s17 + $0xf0] sm:$0xff]  ;;  %vm1354_vm7 = vcmask 97280  }
  0xa3   : > { %495 = vst.msk [vmem:[#allocation2 + $0x99] sm:$0xff] %vm437_vm0, %v416_v15  ;;  %496 = vst.msk [vmem:[#allocation2 + $0xa9] sm:$0xff] %vm437_vm0, %v417_v16  ;;  %3545 = vmatpush3.bf16.msk.msra.mxu0 %vm4298_vm5, %v4302_v8  ;;  %3539 = vmatpush3.bf16.msk.msra.mxu1 %vm4298_vm5, %v3534_v18  ;;  %v424_v36 = vmax.f32 %v392_v31, 0.0  ;;  %v395_v53 = vadd.f32 %v4240_v10, %v356_v50  ;;  %v357_v56 = vmul.f32 %v4234_v3, %v318_v54  ;;  %v322_v18 = vld [vmem:[%s4178_s17 + $0xd8] sm:$0xff]  ;;  %s2985_s11 = scalar_lea.sflag [#allocation5], %s4172_s7  ;;  %s3821_s28 = scalar_lea.vmem %s5494_s16, 4096 }
  0xa4   : > { %v999_v13 = vld [vmem:[#allocation2 + $0x1a] sm:$0xff]  ;;  %v1000_v23 = vld [vmem:[#allocation2 + $0x22] sm:$0xff]  ;;  %497 = vst.msk [vmem:[#allocation2 + $0xb1] sm:$0xff] %vm437_vm0, %v418_v17  ;;  %498 = vst.msk [vmem:[#allocation2 + $0xc1] sm:$0xff] %vm437_vm0, %v419_v19  ;;  %3552 = vmatprep.subr.msk.bf16.mxu1 %vm4298_vm5, %v4302_v8  ;;  %v425_v45 = vmax.f32 %v393_v41, 0.0  ;;  %v426_v47 = vmax.f32 %v394_v46, 0.0  ;;  %v358_v62 = vmul.f32 %v4234_v3, %v319_v61  ;;  %v359_v5 = vmul.f32 %v4234_v3, %v320_v2  ;;  %p3822_p10 = scmp.ne.s32.totalorder %s5494_s16, %s3821_s28 }
  0xa5   : > { %v967_v14 = vld [vmem:[#allocation2 + $0x19] sm:$0xff]  ;;  %1191 = vrot.lane.b32.xlu1 %v999_v13, %s3937_s26  ;;  %v968_v24 = vld [vmem:[#allocation2 + $0x21] sm:$0xff]  ;;  %499 = vst.msk [vmem:[#allocation2 + $0xc9] sm:$0xff] %vm437_vm0, %v420_v27  ;;  %v4340_v34 = vld [vmem:[#allocation2 + $0x31] sm:$0xff]  ;;  %v427_v55 = vmax.f32 %v395_v53, 0.0  ;;  %v396_v58 = vadd.f32 %v4240_v10, %v357_v56  ;;  %v361_v20 = vmul.f32 %v4234_v3, %v322_v18  ;;  %v362_v26 = vmul.f32 %v4234_v3, %v323_v25  ;;  %s3939_s29 = smov [#allocation11]  }
  0xa6   : > { %1063 = vrot.lane.b32.xlu0 %v967_v14, %s3936_s24  ;;  %500 = vst.msk [vmem:[#allocation2 + $0xd9] sm:$0xff] %vm437_vm0, %v421_v32  ;;  %501 = vst.msk [vmem:[#allocation2 + $0xe1] sm:$0xff] %vm437_vm0, %v422_v33  ;;  %v4352_v38 = vld [vmem:[#allocation2 + $0x32] sm:$0xff]  ;;  %v4364_v44 = vld [vmem:[#allocation2 + $0x3a] sm:$0xff]  ;;  %v397_v1 = vadd.f32 %v4240_v10, %v358_v62  ;;  %v398_v9 = vadd.f32 %v4240_v10, %v359_v5  ;;  %v363_v32 = vmul.f32 %v4234_v3, %v324_v30  ;;  %p3823_p3 = pnand %p3822_p10, %p4121_p5  ;;  %s3825_s12 = sshll.u32 %s3939_s29, 4  ;;  %s3826_s12 = int_to_ptr.vmem [resolvable:$false] %s3825_s12 }
  0xa7   : > { %502 = vst.msk [vmem:[#allocation2 + $0xf1] sm:$0xff] %vm437_vm0, %v423_v35  ;;  %503 = vst.msk [vmem:[#allocation2 + $0xf9] sm:$0xff] %vm437_vm0, %v424_v36  ;;  %v4354_v39 = vld [vmem:[#allocation2 + $0x39] sm:$0xff]  ;;  %v4371_v48 = vld [vmem:[#allocation2 + $0x49] sm:$0xff]  ;;  %v428_v59 = vmax.f32 %v396_v58, 0.0  ;;  %v400_v22 = vadd.f32 %v4240_v10, %v361_v20  ;;  %v401_v29 = vadd.f32 %v4240_v10, %v362_v26  ;;  %v364_v41 = vmul.f32 %v4234_v3, %v325_v40  ;;  %s3827_s8 = scalar_lea.vmem %s3826_s12, 8192  ;;  %p3828_p12 = scmp.lt.s32.totalorder %s5494_s16, %s3826_s12 }
  0xa8   : > { %504 = vst.msk [vmem:[#allocation2 + $0x109] sm:$0xff] %vm437_vm0, %v425_v45  ;;  %505 = vst.msk [vmem:[#allocation2 + $0x111] sm:$0xff] %vm437_vm0, %v426_v47  ;;  %v4384_v51 = vld [vmem:[#allocation2 + $0x4a] sm:$0xff]  ;;  %v4395_v57 = vld [vmem:[#allocation2 + $0x52] sm:$0xff]  ;;  %v429_v4 = vmax.f32 %v397_v1, 0.0  ;;  %v430_v11 = vmax.f32 %v398_v9, 0.0  ;;  %v402_v35 = vadd.f32 %v4240_v10, %v363_v32  ;;  %p3824_p7 = pneg %p3823_p3  ;;  %p3829_p1 = scmp.lt.s32.totalorder %s3827_s8, %s3821_s28 }
  0xa9   : > { %1193 = vrot.lane.b32.xlu1 %v1000_v23, %s3937_s26  ;;  %v4386_v52 = vld [vmem:[#allocation2 + $0x51] sm:$0xff]  ;;  %506 = vst.msk [vmem:[#allocation2 + $0x121] sm:$0xff] %vm437_vm0, %v427_v55  ;;  %v4403_v60 = vld [vmem:[#allocation2 + $0x61] sm:$0xff]  ;;  %507 = vst.msk [vmem:[#allocation2 + $0x129] sm:$0xff] %vm437_vm0, %v428_v59  ;;  %v433_v31 = vmax.f32 %v401_v29, 0.0  ;;  %v403_v45 = vadd.f32 %v4240_v10, %v364_v41 }
  0xaa   : > { %1065 = vrot.lane.b32.xlu0 %v968_v24, %s3936_s24  ;;  %v4416_v63 = vld [vmem:[#allocation2 + $0x62] sm:$0xff]  ;;  %v4427_v6 = vld [vmem:[#allocation2 + $0x6a] sm:$0xff]  ;;  %508 = vst.msk [vmem:[#allocation2 + $0x139] sm:$0xff] %vm437_vm0, %v429_v4  ;;  %v4435_v12 = vld [vmem:[#allocation2 + $0x79] sm:$0xff]  ;;  %v434_v36 = vmax.f32 %v402_v35, 0.0  ;;  %p3830_p2 = por %p3829_p1, %p3828_p12 }
  0xab   : > { %v4418_v0 = vld [vmem:[#allocation2 + $0x69] sm:$0xff]  ;;  %509 = vst.msk [vmem:[#allocation2 + $0x141] sm:$0xff] %vm437_vm0, %v430_v11  ;;  %v4448_v15 = vld [vmem:[#allocation2 + $0x7a] sm:$0xff]  ;;  %v4480_v27 = vld [vmem:[#allocation2 + $0x92] sm:$0xff]  ;;  %v435_v47 = vmax.f32 %v403_v45, 0.0 }
  0xac   : > { %v4450_v16 = vld [vmem:[#allocation2 + $0x81] sm:$0xff]  ;;  %v4482_v28 = vld [vmem:[#allocation2 + $0x99] sm:$0xff]  ;;  %512 = vst.msk [vmem:[#allocation2 + $0x169] sm:$0xff] %vm437_vm0, %v433_v31  ;;  %v4499_v37 = vld [vmem:[#allocation2 + $0xa9] sm:$0xff]  ;;  %p3831_p4 = pnand %p3830_p2, %p3824_p7 }
  0xad   : > { %1067 = vrot.lane.b32.xlu1 %v4340_v34, %s3936_s24  ;;  %v4459_v21 = vld [vmem:[#allocation2 + $0x82] sm:$0xff]  ;;  %v4491_v33 = vld [vmem:[#allocation2 + $0x9a] sm:$0xff]  ;;  %513 = vst.msk [vmem:[#allocation2 + $0x171] sm:$0xff] %vm437_vm0, %v434_v36  ;;  %v4512_v42 = vld [vmem:[#allocation2 + $0xaa] sm:$0xff] }
  0xae   : > { %648 = vrot.lane.b32.xlu0 %v967_v14, %s3936_s24  ;;  %v4514_v43 = vld [vmem:[#allocation2 + $0xb1] sm:$0xff]  ;;  %v326_v46 = vld [vmem:[%s4178_s17 + $0xf8] sm:$0xff]  ;;  %514 = vst.msk [vmem:[#allocation2 + $0x181] sm:$0xff] %vm437_vm0, %v435_v47  ;;  %v516_v55 = vld [vmem:[#allocation2] sm:$0xff] }
  0xaf   : > { %v365_v49 = vmul.f32 %v4234_v3, %v326_v46  ;;  %v4523_v50 = vld [vmem:[#allocation2 + $0xb2] sm:$0xff]  ;;  %v4531_v59 = vld [vmem:[#allocation2 + $0xc1] sm:$0xff]  ;;  %v4550_v9 = vld [vmem:[#allocation2 + $0xc9] sm:$0xff] }
  0xb0   : > { %v4548_v5 = vld [vmem:[#allocation2 + $0xc2] sm:$0xff]  ;;  %v935_v11 = vld [vmem:[#allocation2 + $0x18] sm:$0xff]  ;;  %v2422_v18 = vld [vmem:[#allocation6 + $0x20] sm:$0xff] }
  0xb1   : > { %776 = vrot.lane.b32.xlu1 %v999_v13, %s3937_s26  ;;  %v321_v13 = vld [vmem:[%s4178_s17 + $0xd0] sm:$0xff]  ;;  %v404_v53 = vadd.f32 %v4240_v10, %v365_v49  ;;  %v4590_v47 = vld [vmem:[#allocation2 + $0x30] sm:$0xff] }
  0xb2   : > { %650 = vrot.lane.b32.xlu0 %v968_v24, %s3936_s24  ;;  %v360_v14 = vmul.f32 %v4234_v3, %v321_v13  ;;  %v4467_v24 = vld [vmem:[#allocation2 + $0x91] sm:$0xff]  ;;  %v517_v3 = vld [vmem:[#allocation2 + $0x8] sm:$0xff]  ;;  %v936_v25 = vld [vmem:[#allocation2 + $0x20] sm:$0xff] }
  0xb3   : > { %v436_v54 = vmax.f32 %v404_v53, 0.0  ;;  %v4556_v13 = vld [vmem:[#allocation2 + $0xca] sm:$0xff]  ;;  %v4565_v26 = vld [vmem:[#allocation2 + $0xd9] sm:$0xff]  ;;  %v4580_v36 = vld [vmem:[#allocation2 + $0xe1] sm:$0xff] }
  0xb4   : > { %v399_v17 = vadd.f32 %v4240_v10, %v360_v14  ;;  %v4578_v35 = vld [vmem:[#allocation2 + $0xda] sm:$0xff] }
  0xb5   : > { %1195 = vrot.lane.b32.xlu1 %v4352_v38, %s3937_s26  ;;  %515 = vst.msk [vmem:[#allocation2 + $0x189] sm:$0xff] %vm437_vm0, %v436_v54  ;;  %v4600_v54 = vld [vmem:[#allocation2 + $0xe2] sm:$0xff] }
  0xb6   : > { %1069 = vrot.lane.b32.xlu0 %v4354_v39, %s3936_s24  ;;  %v431_v19 = vmax.f32 %v399_v17, 0.0 }
  0xb8   : > { %510 = vst.msk [vmem:[#allocation2 + $0x151] sm:$0xff] %vm437_vm0, %v431_v19  ;;  %v2423_v19 = vld [vmem:[#allocation6 + $0x28] sm:$0xf] }
  0xb9   : > { %1197 = vrot.lane.b32.xlu1 %v4364_v44, %s3937_s26 }
  0xba   : > { %778 = vrot.lane.b32.xlu0 %v1000_v23, %s3937_s26  ;;  %v432_v23 = vmax.f32 %v400_v22, 0.0  ;;  %v3546_v22 = vpack.c.bf16 %v2423_v19, %v2422_v18 }
  0xbc   : > { %511 = vst.msk [vmem:[#allocation2 + $0x159] sm:$0xff] %vm437_vm0, %v432_v23  ;;  %3548 = vmatprep.subr.msk.bf16.mxu0 %vm4298_vm5, %v3546_v22 }
  0xbd   : > { %1071 = vrot.lane.b32.xlu1 %v4371_v48, %s3936_s24 }
  0xbe   : > { %652 = vrot.lane.b32.xlu0 %v4340_v34, %s3936_s24 }
  0xc1   : > { %780 = vrot.lane.b32.xlu1 %v4352_v38, %s3937_s26 }
  0xc2   : > { %654 = vrot.lane.b32.xlu0 %v4354_v39, %s3936_s24 }
  0xc5   : > { %1199 = vrot.lane.b32.xlu1 %v4384_v51, %s3937_s26 }
  0xc6   : > { %1073 = vrot.lane.b32.xlu0 %v4386_v52, %s3936_s24 }
  0xc9   : > { %1201 = vrot.lane.b32.xlu1 %v4395_v57, %s3937_s26 }
  0xca   : > { %782 = vrot.lane.b32.xlu0 %v4364_v44, %s3937_s26 }
  0xcd   : > { %1075 = vrot.lane.b32.xlu1 %v4403_v60, %s3936_s24 }
  0xce   : > { %656 = vrot.lane.b32.xlu0 %v4371_v48, %s3936_s24 }
  0xd1   : > { %784 = vrot.lane.b32.xlu1 %v4384_v51, %s3937_s26 }
  0xd2   : > { %658 = vrot.lane.b32.xlu0 %v4386_v52, %s3936_s24 }
  0xd5   : > { %1203 = vrot.lane.b32.xlu1 %v4416_v63, %s3937_s26 }
  0xd6   : > { %1077 = vrot.lane.b32.xlu0 %v4418_v0, %s3936_s24 }
  0xd9   : > { %1205 = vrot.lane.b32.xlu1 %v4427_v6, %s3937_s26 }
  0xda   : > { %786 = vrot.lane.b32.xlu0 %v4395_v57, %s3937_s26 }
  0xdd   : > { %1079 = vrot.lane.b32.xlu1 %v4435_v12, %s3936_s24 }
  0xde   : > { %660 = vrot.lane.b32.xlu0 %v4403_v60, %s3936_s24 }
  0xe1   : > { %788 = vrot.lane.b32.xlu1 %v4416_v63, %s3937_s26 }
  0xe2   : > { %662 = vrot.lane.b32.xlu0 %v4418_v0, %s3936_s24 }
  0xe5   : > { %1207 = vrot.lane.b32.xlu1 %v4448_v15, %s3937_s26 }
  0xe6   : > { %1081 = vrot.lane.b32.xlu0 %v4450_v16, %s3936_s24 }
  0xe9   : > { %1209 = vrot.lane.b32.xlu1 %v4459_v21, %s3937_s26 }
  0xea   : > { %790 = vrot.lane.b32.xlu0 %v4427_v6, %s3937_s26 }
  0xed   : > { %1083 = vrot.lane.b32.xlu1 %v4467_v24, %s3936_s24 }
  0xee   : > { %664 = vrot.lane.b32.xlu0 %v4435_v12, %s3936_s24 }
  0xf1   : > { %792 = vrot.lane.b32.xlu1 %v4448_v15, %s3937_s26 }
  0xf2   : > { %666 = vrot.lane.b32.xlu0 %v4450_v16, %s3936_s24 }
  0xf5   : > { %1211 = vrot.lane.b32.xlu1 %v4480_v27, %s3937_s26 }
  0xf6   : > { %1085 = vrot.lane.b32.xlu0 %v4482_v28, %s3936_s24 }
  0xf9   : > { %1213 = vrot.lane.b32.xlu1 %v4491_v33, %s3937_s26 }
  0xfa   : > { %794 = vrot.lane.b32.xlu0 %v4459_v21, %s3937_s26 }
  0xfd   : > { %1087 = vrot.lane.b32.xlu1 %v4499_v37, %s3936_s24 }
  0xfe   : > { %668 = vrot.lane.b32.xlu0 %v4467_v24, %s3936_s24 }
 0x101   : > { %796 = vrot.lane.b32.xlu1 %v4480_v27, %s3937_s26 }
 0x102   : > { %670 = vrot.lane.b32.xlu0 %v4482_v28, %s3936_s24  ;;  %v645_v58 = vpop.permute.xlu0 %644 }
 0x103   : > { %v647_v56 = vpop.permute.xlu1 %646  ;;  %v868_v62 = vsel %vm437_vm0, %v516_v55, %v645_v58  ;;  %v4603_v55 = vld [vmem:[#allocation2 + $0x38] sm:$0xff] }
 0x104   : > { %v869_v61 = vsel %vm437_vm0, %v517_v3, %v647_v56 }
 0x105   : > { %1215 = vrot.lane.b32.xlu1 %v4512_v42, %s3937_s26 }
 0x106   : > { %1089 = vrot.lane.b32.xlu0 %v4514_v43, %s3936_s24  ;;  %v775_v1 = vpop.permute.xlu0 %774 }
 0x107   : > { %v773_v10 = vpop.permute.xlu1 %772  ;;  %v902_v2 = vsel %vm900_vm6, %v869_v61, %v775_v1  ;;  %v4613_v61 = vld [vmem:[#allocation2 + $0xf1] sm:$0xff] }
 0x108   : > { %v901_v4 = vsel %vm900_vm6, %v868_v62, %v773_v10 }
 0x109   : > { %1217 = vrot.lane.b32.xlu1 %v4523_v50, %s3937_s26  ;;  %3434 = vmatprep.mubr.msk.f32.mxu0 %vm1354_vm7, %v901_v4  ;;  %v4625_v4 = vld [vmem:[#allocation2 + $0xf9] sm:$0xff] }
 0x10a   : > { %798 = vrot.lane.b32.xlu0 %v4491_v33, %s3937_s26  ;;  %3435 = vmatmul.mubr.msk.f32.vlgmr.msra.gmra.mrb[0].mxu0 %vm1354_vm7, %v902_v2 }
 0x10b   : > { %3551 = vmatpush3.bf16.msk.msra.mxu0 %vm4298_vm5, %v3546_v22 }
 0x10d   : > { %1091 = vrot.lane.b32.xlu1 %v4531_v59, %s3936_s24 }
 0x10e   : > { %672 = vrot.lane.b32.xlu0 %v4499_v37, %s3936_s24 }
 0x111   : > { %800 = vrot.lane.b32.xlu1 %v4512_v42, %s3937_s26 }
 0x112   : > { %674 = vrot.lane.b32.xlu0 %v4514_v43, %s3936_s24 }
 0x115   : > { %1219 = vrot.lane.b32.xlu1 %v4548_v5, %s3937_s26 }
 0x116   : > { %1093 = vrot.lane.b32.xlu0 %v4550_v9, %s3936_s24 }
 0x117   : > { %v1192_v14 = vpop.permute.xlu1 %1191 }
 0x118   : > { %v1064_v17 = vpop.permute.xlu0 %1063 }
 0x119   : > { %v1287_v20 = vsel %vm437_vm0, %v935_v11, %v1064_v17  ;;  %1221 = vrot.lane.b32.xlu1 %v4556_v13, %s3937_s26  ;;  %v4633_v17 = vld [vmem:[#allocation2 + $0x48] sm:$0xff] }
 0x11a   : > { %802 = vrot.lane.b32.xlu0 %v4523_v50, %s3937_s26  ;;  %v1319_v23 = vsel %vm900_vm6, %v1287_v20, %v1192_v14 }
 0x11b   : > { %3382 = vmatprep.mubr.msk.f32.mxu1 %vm1354_vm7, %v1319_v23  ;;  %v1194_v29 = vpop.permute.xlu1 %1193  ;;  %v4643_v23 = vld [vmem:[#allocation2 + $0xfa] sm:$0xff] }
 0x11c   : > { %v1066_v30 = vpop.permute.xlu0 %1065 }
 0x11d   : > { %v1288_v31 = vsel %vm437_vm0, %v936_v25, %v1066_v30  ;;  %2133 = vrot.lane.b32.xlu1 %v4340_v34, %s3936_s24 }
 0x11e   : > { %1095 = vrot.lane.b32.xlu0 %v4565_v26, %s3936_s24  ;;  %v1320_v32 = vsel %vm900_vm6, %v1288_v31, %v1194_v29  ;;  %v4646_v29 = vld [vmem:[#allocation2 + $0x50] sm:$0xff] }
 0x11f   : > { %3383 = vmatmul.mubr.msk.f32.vlgmr.msra.gmra.mrb[0].mxu1 %vm1354_vm7, %v1320_v32  ;;  %v1068_v40 = vpop.permute.xlu1 %1067  ;;  %v4657_v32 = vld [vmem:[#allocation2 + $0x109] sm:$0xff] }
 0x120   : > { %v649_v41 = vpop.permute.xlu0 %648  ;;  %3553 = vmatpush3.bf16.msk.msra.mxu1 %vm4298_vm5, %v4302_v8  ;;  %v1289_v7 = vsel %vm437_vm0, %v4590_v47, %v1068_v40 }
 0x121   : > { %1223 = vrot.lane.b32.xlu1 %v4578_v35, %s3937_s26  ;;  %v870_v34 = vsel %vm437_vm0, %v935_v11, %v649_v41 }
 0x122   : > { %1097 = vrot.lane.b32.xlu0 %v4580_v36, %s3936_s24 }
 0x123   : > { %v777_v45 = vpop.permute.xlu1 %776 }
 0x124   : > { %v651_v46 = vpop.permute.xlu0 %650  ;;  %v903_v49 = vsel %vm900_vm6, %v870_v34, %v777_v45 }
 0x125   : > { %2261 = vrot.lane.b32.xlu1 %v4352_v38, %s3937_s26  ;;  %3437 = vmatprep.mubr.msk.f32.mxu0 %vm1354_vm7, %v903_v49  ;;  %v871_v38 = vsel %vm437_vm0, %v936_v25, %v651_v46  ;;  %v4669_v46 = vld [vmem:[#allocation2 + $0x111] sm:$0xff] }
 0x126   : > { %2135 = vrot.lane.b32.xlu0 %v4354_v39, %s3936_s24 }
 0x127   : > { %v1196_v8 = vpop.permute.xlu1 %1195 }
 0x128   : > { %v1070_v53 = vpop.permute.xlu0 %1069  ;;  %v1321_v3 = vsel %vm900_vm6, %v1289_v7, %v1196_v8  ;;  %v4677_v8 = vld [vmem:[#allocation2 + $0x60] sm:$0xff] }
 0x129   : > { %2263 = vrot.lane.b32.xlu1 %v4364_v44, %s3937_s26  ;;  %3385 = vmatprep.mubr.msk.f32.mxu1 %vm1354_vm7, %v1321_v3  ;;  %v1290_v39 = vsel %vm437_vm0, %v4603_v55, %v1070_v53  ;;  %v4623_v44 = vld [vmem:[#allocation2 + $0xf2] sm:$0xff] }
 0x12a   : > { %1225 = vrot.lane.b32.xlu0 %v4600_v54, %s3937_s26 }
 0x12b   : > { %v1198_v56 = vpop.permute.xlu1 %1197 }
 0x12c   : > { %v779_v58 = vpop.permute.xlu0 %778  ;;  %v1322_v62 = vsel %vm900_vm6, %v1290_v39, %v1198_v56  ;;  %v4687_v56 = vld [vmem:[#allocation2 + $0x112] sm:$0xff] }
 0x12d   : > { %v904_v10 = vsel %vm900_vm6, %v871_v38, %v779_v58  ;;  %2137 = vrot.lane.b32.xlu1 %v4371_v48, %s3936_s24  ;;  %3386 = vmatmul.mubr.msk.f32.gmra.mrb[2].mxu1 %vm1354_vm7, %v1322_v62  ;;  %v4690_v62 = vld [vmem:[#allocation2 + $0x68] sm:$0xff] }
 0x12e   : > { %1099 = vrot.lane.b32.xlu0 %v4613_v61, %s3936_s24  ;;  %3438 = vmatmul.mubr.msk.f32.gmra.mrb[2].mxu0 %vm1354_vm7, %v904_v10 }
 0x12f   : > { %v1072_v1 = vpop.permute.xlu1 %1071 }
 0x130   : > { %v653_v2 = vpop.permute.xlu0 %652  ;;  %v1291_v19 = vsel %vm437_vm0, %v4633_v17, %v1072_v1 }
 0x131   : > { %1227 = vrot.lane.b32.xlu1 %v4623_v44, %s3937_s26  ;;  %v872_v48 = vsel %vm437_vm0, %v4590_v47, %v653_v2  ;;  %v4701_v2 = vld [vmem:[#allocation2 + $0x121] sm:$0xff] }
 0x132   : > { %1101 = vrot.lane.b32.xlu0 %v4625_v4, %s3936_s24 }
 0x133   : > { %v781_v11 = vpop.permute.xlu1 %780 }
 0x134   : > { %v655_v14 = vpop.permute.xlu0 %654  ;;  %v905_v18 = vsel %vm900_vm6, %v872_v48, %v781_v11 }
 0x135   : > { %2265 = vrot.lane.b32.xlu1 %v4384_v51, %s3937_s26  ;;  %3440 = vmatprep.mubr.msk.f32.mxu0 %vm1354_vm7, %v905_v18  ;;  %v873_v51 = vsel %vm437_vm0, %v4603_v55, %v655_v14 }
 0x136   : > { %2139 = vrot.lane.b32.xlu0 %v4386_v52, %s3936_s24 }
 0x137   : > { %v1200_v20 = vpop.permute.xlu1 %1199 }
 0x138   : > { %v1074_v22 = vpop.permute.xlu0 %1073  ;;  %v1323_v25 = vsel %vm900_vm6, %v1291_v19, %v1200_v20  ;;  %v4713_v19 = vld [vmem:[#allocation2 + $0x129] sm:$0xff] }
 0x139   : > { %2267 = vrot.lane.b32.xlu1 %v4395_v57, %s3937_s26  ;;  %3388 = vmatprep.mubr.msk.f32.mxu1 %vm1354_vm7, %v1323_v25  ;;  %v1292_v52 = vsel %vm437_vm0, %v4646_v29, %v1074_v22  ;;  %v4667_v57 = vld [vmem:[#allocation2 + $0x10a] sm:$0xff]  ;;  %v4721_v25 = vld [vmem:[#allocation2 + $0x78] sm:$0xff] }
 0x13a   : > { %1229 = vrot.lane.b32.xlu0 %v4643_v23, %s3937_s26 }
 0x13b   : > { %v1202_v30 = vpop.permute.xlu1 %1201 }
 0x13c   : > { %v783_v31 = vpop.permute.xlu0 %782  ;;  %v1324_v40 = vsel %vm900_vm6, %v1292_v52, %v1202_v30 }
 0x13d   : > { %v906_v41 = vsel %vm900_vm6, %v873_v51, %v783_v31  ;;  %2141 = vrot.lane.b32.xlu1 %v4403_v60, %s3936_s24  ;;  %3389 = vmatmul.mubr.msk.f32.gmra.mrb[4].mxu1 %vm1354_vm7, %v1324_v40  ;;  %v4731_v40 = vld [vmem:[#allocation2 + $0x12a] sm:$0xff] }
 0x13e   : > { %1103 = vrot.lane.b32.xlu0 %v4657_v32, %s3936_s24  ;;  %3441 = vmatmul.mubr.msk.f32.gmra.mrb[4].mxu0 %vm1354_vm7, %v906_v41 }
 0x13f   : > { %v1076_v34 = vpop.permute.xlu1 %1075 }
 0x140   : > { %v657_v45 = vpop.permute.xlu0 %656  ;;  %v1293_v3 = vsel %vm437_vm0, %v4677_v8, %v1076_v34  ;;  %v4734_v34 = vld [vmem:[#allocation2 + $0x80] sm:$0xff] }
 0x141   : > { %1231 = vrot.lane.b32.xlu1 %v4667_v57, %s3937_s26  ;;  %v874_v60 = vsel %vm437_vm0, %v4633_v17, %v657_v45 }
 0x142   : > { %1105 = vrot.lane.b32.xlu0 %v4669_v46, %s3936_s24 }
 0x143   : > { %v785_v49 = vpop.permute.xlu1 %784 }
 0x144   : > { %v659_v7 = vpop.permute.xlu0 %658  ;;  %v907_v53 = vsel %vm900_vm6, %v874_v60, %v785_v49  ;;  %v4745_v49 = vld [vmem:[#allocation2 + $0x139] sm:$0xff] }
 0x145   : > { %2269 = vrot.lane.b32.xlu1 %v4416_v63, %s3937_s26  ;;  %3443 = vmatprep.mubr.msk.f32.mxu0 %vm1354_vm7, %v907_v53  ;;  %v875_v63 = vsel %vm437_vm0, %v4646_v29, %v659_v7 }
 0x146   : > { %2143 = vrot.lane.b32.xlu0 %v4418_v0, %s3936_s24 }
 0x147   : > { %v1204_v38 = vpop.permute.xlu1 %1203 }
 0x148   : > { %v1078_v39 = vpop.permute.xlu0 %1077  ;;  %v1325_v58 = vsel %vm900_vm6, %v1293_v3, %v1204_v38 }
 0x149   : > { %2271 = vrot.lane.b32.xlu1 %v4427_v6, %s3937_s26  ;;  %3391 = vmatprep.mubr.msk.f32.mxu1 %vm1354_vm7, %v1325_v58  ;;  %v1294_v0 = vsel %vm437_vm0, %v4690_v62, %v1078_v39  ;;  %v4711_v6 = vld [vmem:[#allocation2 + $0x122] sm:$0xff] }
 0x14a   : > { %1233 = vrot.lane.b32.xlu0 %v4687_v56, %s3937_s26  ;;  %v4757_v39 = vld [vmem:[#allocation2 + $0x141] sm:$0xff] }
 0x14b   : > { %v1206_v10 = vpop.permute.xlu1 %1205 }
 0x14c   : > { %v787_v1 = vpop.permute.xlu0 %786  ;;  %v1326_v48 = vsel %vm900_vm6, %v1294_v0, %v1206_v10  ;;  %v4765_v0 = vld [vmem:[#allocation2 + $0x90] sm:$0xff] }
 0x14d   : > { %v908_v11 = vsel %vm900_vm6, %v875_v63, %v787_v1  ;;  %2145 = vrot.lane.b32.xlu1 %v4435_v12, %s3936_s24  ;;  %3392 = vmatmul.mubr.msk.f32.gmra.mrb[6].mxu1 %vm1354_vm7, %v1326_v48 }
 0x14e   : > { %1107 = vrot.lane.b32.xlu0 %v4701_v2, %s3936_s24  ;;  %3444 = vmatmul.mubr.msk.f32.gmra.mrb[6].mxu0 %vm1354_vm7, %v908_v11 }
 0x14f   : > { %v1080_v14 = vpop.permute.xlu1 %1079 }
 0x150   : > { %v661_v18 = vpop.permute.xlu0 %660  ;;  %v1295_v52 = vsel %vm437_vm0, %v4721_v25, %v1080_v14  ;;  %v4775_v14 = vld [vmem:[#allocation2 + $0x142] sm:$0xff] }
 0x151   : > { %1235 = vrot.lane.b32.xlu1 %v4711_v6, %s3937_s26  ;;  %v876_v12 = vsel %vm437_vm0, %v4677_v8, %v661_v18 }
 0x152   : > { %1109 = vrot.lane.b32.xlu0 %v4713_v19, %s3936_s24 }
 0x153   : > { %v789_v20 = vpop.permute.xlu1 %788 }
 0x154   : > { %v663_v22 = vpop.permute.xlu0 %662  ;;  %v909_v51 = vsel %vm900_vm6, %v876_v12, %v789_v20  ;;  %v4778_v12 = vld [vmem:[#allocation2 + $0x98] sm:$0xff] }
 0x155   : > { %2273 = vrot.lane.b32.xlu1 %v4448_v15, %s3937_s26  ;;  %3446 = vmatprep.mubr.msk.f32.mxu0 %vm1354_vm7, %v909_v51  ;;  %v877_v15 = vsel %vm437_vm0, %v4690_v62, %v663_v22  ;;  %v4789_v51 = vld [vmem:[#allocation2 + $0x151] sm:$0xff] }
 0x156   : > { %2147 = vrot.lane.b32.xlu0 %v4450_v16, %s3936_s24 }
 0x157   : > { %v1208_v30 = vpop.permute.xlu1 %1207 }
 0x158   : > { %v1082_v31 = vpop.permute.xlu0 %1081  ;;  %v1327_v41 = vsel %vm900_vm6, %v1295_v52, %v1208_v30 }
 0x159   : > { %2275 = vrot.lane.b32.xlu1 %v4459_v21, %s3937_s26  ;;  %3394 = vmatprep.mubr.msk.f32.mxu1 %vm1354_vm7, %v1327_v41  ;;  %v1296_v16 = vsel %vm437_vm0, %v4734_v34, %v1082_v31  ;;  %v4755_v21 = vld [vmem:[#allocation2 + $0x13a] sm:$0xff] }
 0x15a   : > { %1237 = vrot.lane.b32.xlu0 %v4731_v40, %s3937_s26 }
 0x15b   : > { %v1210_v45 = vpop.permute.xlu1 %1209 }
 0x15c   : > { %v791_v60 = vpop.permute.xlu0 %790  ;;  %v1328_v7 = vsel %vm900_vm6, %v1296_v16, %v1210_v45 }
 0x15d   : > { %v910_v53 = vsel %vm900_vm6, %v877_v15, %v791_v60  ;;  %2149 = vrot.lane.b32.xlu1 %v4467_v24, %s3936_s24  ;;  %3395 = vmatmul.mubr.msk.f32.gmra.mrb[8].mxu1 %vm1354_vm7, %v1328_v7  ;;  %v4801_v15 = vld [vmem:[#allocation2 + $0x159] sm:$0xff]  ;;  %v4809_v60 = vld [vmem:[#allocation2 + $0xa8] sm:$0xff] }
 0x15e   : > { %1111 = vrot.lane.b32.xlu0 %v4745_v49, %s3936_s24  ;;  %3447 = vmatmul.mubr.msk.f32.gmra.mrb[8].mxu0 %vm1354_vm7, %v910_v53 }
 0x15f   : > { %v1084_v3 = vpop.permute.xlu1 %1083 }
 0x160   : > { %v665_v38 = vpop.permute.xlu0 %664  ;;  %v1297_v1 = vsel %vm437_vm0, %v4765_v0, %v1084_v3 }
 0x161   : > { %1239 = vrot.lane.b32.xlu1 %v4755_v21, %s3937_s26  ;;  %v878_v24 = vsel %vm437_vm0, %v4721_v25, %v665_v38 }
 0x162   : > { %1113 = vrot.lane.b32.xlu0 %v4757_v39, %s3936_s24 }
 0x163   : > { %v793_v58 = vpop.permute.xlu1 %792 }
 0x164   : > { %v667_v63 = vpop.permute.xlu0 %666  ;;  %v911_v10 = vsel %vm900_vm6, %v878_v24, %v793_v58  ;;  %v4819_v24 = vld [vmem:[#allocation2 + $0x15a] sm:$0xff] }
 0x165   : > { %2277 = vrot.lane.b32.xlu1 %v4480_v27, %s3937_s26  ;;  %3449 = vmatprep.mubr.msk.f32.mxu0 %vm1354_vm7, %v911_v10  ;;  %v879_v27 = vsel %vm437_vm0, %v4734_v34, %v667_v63  ;;  %v4822_v63 = vld [vmem:[#allocation2 + $0xb0] sm:$0xff] }
 0x166   : > { %2151 = vrot.lane.b32.xlu0 %v4482_v28, %s3936_s24 }
 0x167   : > { %v1212_v48 = vpop.permute.xlu1 %1211 }
 0x168   : > { %v1086_v11 = vpop.permute.xlu0 %1085  ;;  %v1329_v18 = vsel %vm900_vm6, %v1297_v1, %v1212_v48  ;;  %v4833_v48 = vld [vmem:[#allocation2 + $0x169] sm:$0xff] }
 0x169   : > { %2279 = vrot.lane.b32.xlu1 %v4491_v33, %s3937_s26  ;;  %3397 = vmatprep.mubr.msk.f32.mxu1 %vm1354_vm7, %v1329_v18  ;;  %v1298_v28 = vsel %vm437_vm0, %v4778_v12, %v1086_v11  ;;  %v4799_v33 = vld [vmem:[#allocation2 + $0x152] sm:$0xff] }
 0x16a   : > { %1241 = vrot.lane.b32.xlu0 %v4775_v14, %s3937_s26 }
 0x16b   : > { %v1214_v20 = vpop.permute.xlu1 %1213 }
 0x16c   : > { %v795_v22 = vpop.permute.xlu0 %794  ;;  %v1330_v52 = vsel %vm900_vm6, %v1298_v28, %v1214_v20  ;;  %v4845_v20 = vld [vmem:[#allocation2 + $0x171] sm:$0xff] }
 0x16d   : > { %v912_v30 = vsel %vm900_vm6, %v879_v27, %v795_v22  ;;  %2153 = vrot.lane.b32.xlu1 %v4499_v37, %s3936_s24  ;;  %3398 = vmatmul.mubr.msk.f32.gmra.mrb[10].mxu1 %vm1354_vm7, %v1330_v52 }
 0x16e   : > { %1115 = vrot.lane.b32.xlu0 %v4789_v51, %s3936_s24  ;;  %3450 = vmatmul.mubr.msk.f32.gmra.mrb[10].mxu0 %vm1354_vm7, %v912_v30 }
 0x16f   : > { %v1088_v31 = vpop.permute.xlu1 %1087 }
 0x170   : > { %v669_v41 = vpop.permute.xlu0 %668  ;;  %v1299_v53 = vsel %vm437_vm0, %v4809_v60, %v1088_v31  ;;  %v4853_v31 = vld [vmem:[#allocation2 + $0xc0] sm:$0xff] }
 0x171   : > { %1243 = vrot.lane.b32.xlu1 %v4799_v33, %s3937_s26  ;;  %v880_v37 = vsel %vm437_vm0, %v4765_v0, %v669_v41 }
 0x172   : > { %1117 = vrot.lane.b32.xlu0 %v4801_v15, %s3936_s24 }
 0x173   : > { %v797_v16 = vpop.permute.xlu1 %796 }
 0x174   : > { %v671_v45 = vpop.permute.xlu0 %670  ;;  %v913_v7 = vsel %vm900_vm6, %v880_v37, %v797_v16 }
 0x175   : > { %2281 = vrot.lane.b32.xlu1 %v4512_v42, %s3937_s26  ;;  %3452 = vmatprep.mubr.msk.f32.mxu0 %vm1354_vm7, %v913_v7  ;;  %v881_v42 = vsel %vm437_vm0, %v4778_v12, %v671_v45  ;;  %v4863_v7 = vld [vmem:[#allocation2 + $0x172] sm:$0xff] }
 0x176   : > { %2155 = vrot.lane.b32.xlu0 %v4514_v43, %s3936_s24 }
 0x177   : > { %v1216_v3 = vpop.permute.xlu1 %1215 }
 0x178   : > { %v1090_v38 = vpop.permute.xlu0 %1089  ;;  %v1331_v58 = vsel %vm900_vm6, %v1299_v53, %v1216_v3  ;;  %v4866_v3 = vld [vmem:[#allocation2 + $0xc8] sm:$0xff] }
 0x179   : > { %2283 = vrot.lane.b32.xlu1 %v4523_v50, %s3937_s26  ;;  %3400 = vmatprep.mubr.msk.f32.mxu1 %vm1354_vm7, %v1331_v58  ;;  %v1300_v43 = vsel %vm437_vm0, %v4822_v63, %v1090_v38  ;;  %v4843_v50 = vld [vmem:[#allocation2 + $0x16a] sm:$0xff] }
 0x17a   : > { %1245 = vrot.lane.b32.xlu0 %v4819_v24, %s3937_s26 }
 0x17b   : > { %v1218_v10 = vpop.permute.xlu1 %1217 }
 0x17c   : > { %v799_v1 = vpop.permute.xlu0 %798  ;;  %v1332_v11 = vsel %vm900_vm6, %v1300_v43, %v1218_v10  ;;  %v4877_v10 = vld [vmem:[#allocation2 + $0x181] sm:$0xff] }
 0x17d   : > { %v914_v18 = vsel %vm900_vm6, %v881_v42, %v799_v1  ;;  %2157 = vrot.lane.b32.xlu1 %v4531_v59, %s3936_s24  ;;  %3401 = vmatmul.mubr.msk.f32.gmra.mrb[12].mxu1 %vm1354_vm7, %v1332_v11 }
 0x17e   : > { %1119 = vrot.lane.b32.xlu0 %v4833_v48, %s3936_s24  ;;  %3453 = vmatmul.mubr.msk.f32.gmra.mrb[12].mxu0 %vm1354_vm7, %v914_v18  ;;  %v4887_v18 = vld [vmem:[#allocation2 + $0x182] sm:$0xff] }
 0x17f   : > { %v1092_v27 = vpop.permute.xlu1 %1091 }
 0x180   : > { %v673_v28 = vpop.permute.xlu0 %672  ;;  %v1301_v37 = vsel %vm437_vm0, %v4853_v31, %v1092_v27 }
 0x181   : > { %1247 = vrot.lane.b32.xlu1 %v4843_v50, %s3937_s26  ;;  %v882_v22 = vsel %vm437_vm0, %v4809_v60, %v673_v28 }
 0x182   : > { %1121 = vrot.lane.b32.xlu0 %v4845_v20, %s3936_s24 }
 0x183   : > { %v801_v52 = vpop.permute.xlu1 %800 }
 0x184   : > { %v675_v30 = vpop.permute.xlu0 %674  ;;  %v915_v41 = vsel %vm900_vm6, %v882_v22, %v801_v52  ;;  %v4889_v22 = vld [vmem:[#allocation2 + $0x189] sm:$0xff]  ;;  %v4891_v52 = vld [vmem:[#allocation2 + $0xd8] sm:$0xff] }
 0x185   : > { %2285 = vrot.lane.b32.xlu1 %v4548_v5, %s3937_s26  ;;  %3455 = vmatprep.mubr.msk.f32.mxu0 %vm1354_vm7, %v915_v41  ;;  %v883_v38 = vsel %vm437_vm0, %v4822_v63, %v675_v30 }
 0x186   : > { %2159 = vrot.lane.b32.xlu0 %v4550_v9, %s3936_s24 }
 0x187   : > { %v1220_v16 = vpop.permute.xlu1 %1219 }
 0x188   : > { %v1094_v45 = vpop.permute.xlu0 %1093  ;;  %v1333_v53 = vsel %vm900_vm6, %v1301_v37, %v1220_v16 }
 0x189   : > { %2287 = vrot.lane.b32.xlu1 %v4556_v13, %s3937_s26  ;;  %3403 = vmatprep.mubr.msk.f32.mxu1 %vm1354_vm7, %v1333_v53  ;;  %v1302_v58 = vsel %vm437_vm0, %v4866_v3, %v1094_v45 }
 0x18a   : > { %1249 = vrot.lane.b32.xlu0 %v4863_v7, %s3937_s26 }
 0x18b   : > { %v1222_v42 = vpop.permute.xlu1 %1221 }
 0x18c   : > { %v803_v43 = vpop.permute.xlu0 %802  ;;  %v1334_v1 = vsel %vm900_vm6, %v1302_v58, %v1222_v42  ;;  %v4907_v58 = vld [vmem:[#allocation2 + $0x18a] sm:$0xff] }
 0x18d   : > { %v916_v11 = vsel %vm900_vm6, %v883_v38, %v803_v43  ;;  %2161 = vrot.lane.b32.xlu1 %v4565_v26, %s3936_s24  ;;  %3404 = vmatmul.mubr.msk.f32.gmra.mrb[14].mxu1 %vm1354_vm7, %v1334_v1  ;;  %v4910_v43 = vld [vmem:[#allocation2 + $0xe0] sm:$0xff] }
 0x18e   : > { %1123 = vrot.lane.b32.xlu0 %v4877_v10, %s3936_s24  ;;  %3456 = vmatmul.mubr.msk.f32.gmra.mrb[14].mxu0 %vm1354_vm7, %v916_v11 }
 0x18f   : > { %v2134_v27 = vpop.permute.xlu1 %2133 }
 0x190   : > { %v1096_v28 = vpop.permute.xlu0 %1095  ;;  %v2357_v45 = vsel %vm437_vm0, %v4590_v47, %v2134_v27 }
 0x191   : > { %1251 = vrot.lane.b32.xlu1 %v4887_v18, %s3937_s26  ;;  %v1303_v30 = vsel %vm437_vm0, %v4891_v52, %v1096_v28 }
 0x192   : > { %1125 = vrot.lane.b32.xlu0 %v4889_v22, %s3936_s24 }
 0x193   : > { %v1224_v41 = vpop.permute.xlu1 %1223 }
 0x194   : > { %v1098_v37 = vpop.permute.xlu0 %1097  ;;  %v1335_v16 = vsel %vm900_vm6, %v1303_v30, %v1224_v41  ;;  %v4929_v41 = vld [vmem:[#allocation2 + $0xf0] sm:$0xff] }
 0x195   : > { %2289 = vrot.lane.b32.xlu1 %v4578_v35, %s3937_s26  ;;  %3406 = vmatprep.mubr.msk.f32.mxu1 %vm1354_vm7, %v1335_v16  ;;  %v1304_v11 = vsel %vm437_vm0, %v4910_v43, %v1098_v37 }
 0x196   : > { %2163 = vrot.lane.b32.xlu0 %v4580_v36, %s3936_s24 }
 0x197   : > { %v2262_v53 = vpop.permute.xlu1 %2261 }
 0x198   : > { %v2136_v38 = vpop.permute.xlu0 %2135  ;;  %v2389_v42 = vsel %vm900_vm6, %v2357_v45, %v2262_v53 }
 0x199   : > { %2291 = vrot.lane.b32.xlu1 %v4600_v54, %s3937_s26  ;;  %3486 = vmatprep.mubr.msk.f32.mxu0 %vm1354_vm7, %v2389_v42  ;;  %v2358_v1 = vsel %vm437_vm0, %v4603_v55, %v2136_v38 }
 0x19a   : > { %1253 = vrot.lane.b32.xlu0 %v4907_v58, %s3937_s26 }
 0x19b   : > { %v2264_v47 = vpop.permute.xlu1 %2263 }
 0x19c   : > { %v2390_v27 = vsel %vm900_vm6, %v2358_v1, %v2264_v47  ;;  %v1226_v28 = vpop.permute.xlu0 %1225  ;;  %v4946_v1 = vld [vmem:[#allocation2 + $0xf8] sm:$0xff] }
 0x19d   : > { %v1336_v30 = vsel %vm900_vm6, %v1304_v11, %v1226_v28  ;;  %2165 = vrot.lane.b32.xlu1 %v4613_v61, %s3936_s24  ;;  %3487 = vmatmul.mubr.msk.f32.vlgmr.msra.gmra.mrb[0].mxu0 %vm1354_vm7, %v2390_v27 }
 0x19e   : > { %676 = vrot.lane.b32.xlu0 %v4531_v59, %s3936_s24  ;;  %3407 = vmatmul.mubr.msk.f32.gmra.mrb[16].mxu1 %vm1354_vm7, %v1336_v30 }
 0x19f   : > { %v2138_v55 = vpop.permute.xlu1 %2137 }
 0x1a0   : > { %v1100_v16 = vpop.permute.xlu0 %1099  ;;  %v2359_v59 = vsel %vm437_vm0, %v4633_v17, %v2138_v55 }
 0x1a1   : > { %804 = vrot.lane.b32.xlu1 %v4548_v5, %s3937_s26  ;;  %v1305_v37 = vsel %vm437_vm0, %v4929_v41, %v1100_v16 }
 0x1a2   : > { %678 = vrot.lane.b32.xlu0 %v4550_v9, %s3936_s24 }
 0x1a3   : > { %v1228_v45 = vpop.permute.xlu1 %1227 }
 0x1a4   : > { %v1337_v53 = vsel %vm900_vm6, %v1305_v37, %v1228_v45  ;;  %v1102_v38 = vpop.permute.xlu0 %1101 }
 0x1a5   : > { %2293 = vrot.lane.b32.xlu1 %v4623_v44, %s3937_s26  ;;  %3409 = vmatprep.mubr.msk.f32.mxu1 %vm1354_vm7, %v1337_v53  ;;  %v1306_v17 = vsel %vm437_vm0, %v4946_v1, %v1102_v38 }
 0x1a6   : > { %2167 = vrot.lane.b32.xlu0 %v4625_v4, %s3936_s24 }
 0x1a7   : > { %v2266_v5 = vpop.permute.xlu1 %2265 }
 0x1a8   : > { %v2391_v9 = vsel %vm900_vm6, %v2359_v59, %v2266_v5  ;;  %v2140_v42 = vpop.permute.xlu0 %2139  ;;  %v4982_v59 = vld [vmem:[#allocation2 + $0x110] sm:$0xff] }
 0x1a9   : > { %2295 = vrot.lane.b32.xlu1 %v4643_v23, %s3937_s26  ;;  %3489 = vmatprep.mubr.msk.f32.mxu0 %vm1354_vm7, %v2391_v9  ;;  %v2360_v47 = vsel %vm437_vm0, %v4646_v29, %v2140_v42  ;;  %v4965_v29 = vld [vmem:[#allocation2 + $0x108] sm:$0xff] }
 0x1aa   : > { %806 = vrot.lane.b32.xlu0 %v4556_v13, %s3937_s26 }
 0x1ab   : > { %v2268_v11 = vpop.permute.xlu1 %2267 }
 0x1ac   : > { %v2392_v27 = vsel %vm900_vm6, %v2360_v47, %v2268_v11  ;;  %v1230_v28 = vpop.permute.xlu0 %1229 }
 0x1ad   : > { %v1338_v30 = vsel %vm900_vm6, %v1306_v17, %v1230_v28  ;;  %2169 = vrot.lane.b32.xlu1 %v4657_v32, %s3936_s24  ;;  %3490 = vmatmul.mubr.msk.f32.gmra.mrb[2].mxu0 %vm1354_vm7, %v2392_v27 }
 0x1ae   : > { %680 = vrot.lane.b32.xlu0 %v4565_v26, %s3936_s24  ;;  %3410 = vmatmul.mubr.msk.f32.gmra.mrb[18].mxu1 %vm1354_vm7, %v1338_v30 }
 0x1af   : > { %v2142_v13 = vpop.permute.xlu1 %2141 }
 0x1b0   : > { %v1104_v55 = vpop.permute.xlu0 %1103  ;;  %v2361_v26 = vsel %vm437_vm0, %v4677_v8, %v2142_v13 }
 0x1b1   : > { %808 = vrot.lane.b32.xlu1 %v4578_v35, %s3937_s26  ;;  %v1307_v16 = vsel %vm437_vm0, %v4965_v29, %v1104_v55 }
 0x1b2   : > { %682 = vrot.lane.b32.xlu0 %v4580_v36, %s3936_s24 }
 0x1b3   : > { %v1232_v37 = vpop.permute.xlu1 %1231 }
 0x1b4   : > { %v1339_v45 = vsel %vm900_vm6, %v1307_v16, %v1232_v37  ;;  %v1106_v53 = vpop.permute.xlu0 %1105  ;;  %v5018_v16 = vld [vmem:[#allocation2 + $0x128] sm:$0xff] }
 0x1b5   : > { %2297 = vrot.lane.b32.xlu1 %v4667_v57, %s3937_s26  ;;  %3412 = vmatprep.mubr.msk.f32.mxu1 %vm1354_vm7, %v1339_v45  ;;  %v1308_v8 = vsel %vm437_vm0, %v4982_v59, %v1106_v53 }
 0x1b6   : > { %2171 = vrot.lane.b32.xlu0 %v4669_v46, %s3936_s24 }
 0x1b7   : > { %v2270_v35 = vpop.permute.xlu1 %2269 }
 0x1b8   : > { %v2393_v36 = vsel %vm900_vm6, %v2361_v26, %v2270_v35  ;;  %v2144_v38 = vpop.permute.xlu0 %2143 }
 0x1b9   : > { %2299 = vrot.lane.b32.xlu1 %v4687_v56, %s3937_s26  ;;  %3492 = vmatprep.mubr.msk.f32.mxu0 %vm1354_vm7, %v2393_v36  ;;  %v2362_v5 = vsel %vm437_vm0, %v4690_v62, %v2144_v38  ;;  %v5001_v62 = vld [vmem:[#allocation2 + $0x120] sm:$0xff] }
 0x1ba   : > { %810 = vrot.lane.b32.xlu0 %v4600_v54, %s3937_s26 }
 0x1bb   : > { %v2272_v9 = vpop.permute.xlu1 %2271 }
 0x1bc   : > { %v2394_v42 = vsel %vm900_vm6, %v2362_v5, %v2272_v9  ;;  %v1234_v47 = vpop.permute.xlu0 %1233 }
 0x1bd   : > { %v1340_v11 = vsel %vm900_vm6, %v1308_v8, %v1234_v47  ;;  %2173 = vrot.lane.b32.xlu1 %v4701_v2, %s3936_s24  ;;  %3493 = vmatmul.mubr.msk.f32.gmra.mrb[4].mxu0 %vm1354_vm7, %v2394_v42  ;;  %v5054_v47 = vld [vmem:[#allocation2 + $0x140] sm:$0xff] }
 0x1be   : > { %684 = vrot.lane.b32.xlu0 %v4613_v61, %s3936_s24  ;;  %3413 = vmatmul.mubr.msk.f32.gmra.mrb[20].mxu1 %vm1354_vm7, %v1340_v11 }
 0x1bf   : > { %v2146_v54 = vpop.permute.xlu1 %2145 }
 0x1c0   : > { %v1108_v17 = vpop.permute.xlu0 %1107  ;;  %v2363_v61 = vsel %vm437_vm0, %v4721_v25, %v2146_v54 }
 0x1c1   : > { %812 = vrot.lane.b32.xlu1 %v4623_v44, %s3937_s26  ;;  %v1309_v27 = vsel %vm437_vm0, %v5001_v62, %v1108_v17 }
 0x1c2   : > { %686 = vrot.lane.b32.xlu0 %v4625_v4, %s3936_s24 }
 0x1c3   : > { %v1236_v28 = vpop.permute.xlu1 %1235 }
 0x1c4   : > { %v1341_v30 = vsel %vm900_vm6, %v1309_v27, %v1236_v28  ;;  %v1110_v13 = vpop.permute.xlu0 %1109 }
 0x1c5   : > { %2301 = vrot.lane.b32.xlu1 %v4711_v6, %s3937_s26  ;;  %3415 = vmatprep.mubr.msk.f32.mxu1 %vm1354_vm7, %v1341_v30  ;;  %v1310_v25 = vsel %vm437_vm0, %v5018_v16, %v1110_v13 }
 0x1c6   : > { %2175 = vrot.lane.b32.xlu0 %v4713_v19, %s3936_s24 }
 0x1c7   : > { %v2274_v44 = vpop.permute.xlu1 %2273 }
 0x1c8   : > { %v2395_v4 = vsel %vm900_vm6, %v2363_v61, %v2274_v44  ;;  %v2148_v55 = vpop.permute.xlu0 %2147 }
 0x1c9   : > { %2303 = vrot.lane.b32.xlu1 %v4731_v40, %s3937_s26  ;;  %3495 = vmatprep.mubr.msk.f32.mxu0 %vm1354_vm7, %v2395_v4  ;;  %v2364_v37 = vsel %vm437_vm0, %v4734_v34, %v2148_v55  ;;  %v5037_v34 = vld [vmem:[#allocation2 + $0x138] sm:$0xff] }
 0x1ca   : > { %814 = vrot.lane.b32.xlu0 %v4643_v23, %s3937_s26 }
 0x1cb   : > { %v2276_v45 = vpop.permute.xlu1 %2275 }
 0x1cc   : > { %v2396_v53 = vsel %vm900_vm6, %v2364_v37, %v2276_v45  ;;  %v1238_v26 = vpop.permute.xlu0 %1237  ;;  %v5090_v37 = vld [vmem:[#allocation2 + $0x158] sm:$0xff] }
 0x1cd   : > { %v1342_v35 = vsel %vm900_vm6, %v1310_v25, %v1238_v26  ;;  %2177 = vrot.lane.b32.xlu1 %v4745_v49, %s3936_s24  ;;  %3496 = vmatmul.mubr.msk.f32.gmra.mrb[6].mxu0 %vm1354_vm7, %v2396_v53 }
 0x1ce   : > { %688 = vrot.lane.b32.xlu0 %v4657_v32, %s3936_s24  ;;  %3416 = vmatmul.mubr.msk.f32.gmra.mrb[22].mxu1 %vm1354_vm7, %v1342_v35 }
 0x1cf   : > { %v2150_v23 = vpop.permute.xlu1 %2149 }
 0x1d0   : > { %v1112_v36 = vpop.permute.xlu0 %1111  ;;  %v2365_v32 = vsel %vm437_vm0, %v4765_v0, %v2150_v23 }
 0x1d1   : > { %816 = vrot.lane.b32.xlu1 %v4667_v57, %s3937_s26  ;;  %v1311_v38 = vsel %vm437_vm0, %v5037_v34, %v1112_v36 }
 0x1d2   : > { %690 = vrot.lane.b32.xlu0 %v4669_v46, %s3936_s24 }
 0x1d3   : > { %v1240_v5 = vpop.permute.xlu1 %1239 }
 0x1d4   : > { %v1343_v9 = vsel %vm900_vm6, %v1311_v38, %v1240_v5  ;;  %v1114_v8 = vpop.permute.xlu0 %1113 }
 0x1d5   : > { %2305 = vrot.lane.b32.xlu1 %v4755_v21, %s3937_s26  ;;  %3418 = vmatprep.mubr.msk.f32.mxu1 %vm1354_vm7, %v1343_v9  ;;  %v1312_v0 = vsel %vm437_vm0, %v5054_v47, %v1114_v8 }
 0x1d6   : > { %2179 = vrot.lane.b32.xlu0 %v4757_v39, %s3936_s24 }
 0x1d7   : > { %v2278_v57 = vpop.permute.xlu1 %2277 }
 0x1d8   : > { %v2397_v46 = vsel %vm900_vm6, %v2365_v32, %v2278_v57  ;;  %v2152_v42 = vpop.permute.xlu0 %2151 }
 0x1d9   : > { %2307 = vrot.lane.b32.xlu1 %v4775_v14, %s3937_s26  ;;  %3498 = vmatprep.mubr.msk.f32.mxu0 %vm1354_vm7, %v2397_v46  ;;  %v2366_v11 = vsel %vm437_vm0, %v4778_v12, %v2152_v42  ;;  %v5073_v12 = vld [vmem:[#allocation2 + $0x150] sm:$0xff] }
 0x1da   : > { %818 = vrot.lane.b32.xlu0 %v4687_v56, %s3937_s26  ;;  %v5130_v46 = vld [vmem:[#allocation2 + $0x170] sm:$0xff] }
 0x1db   : > { %v2280_v54 = vpop.permute.xlu1 %2279 }
 0x1dc   : > { %v2398_v17 = vsel %vm900_vm6, %v2366_v11, %v2280_v54  ;;  %v1242_v27 = vpop.permute.xlu0 %1241 }
 0x1dd   : > { %v1344_v28 = vsel %vm900_vm6, %v1312_v0, %v1242_v27  ;;  %2181 = vrot.lane.b32.xlu1 %v4789_v51, %s3936_s24  ;;  %3499 = vmatmul.mubr.msk.f32.gmra.mrb[8].mxu0 %vm1354_vm7, %v2398_v17 }
 0x1de   : > { %692 = vrot.lane.b32.xlu0 %v4701_v2, %s3936_s24  ;;  %3419 = vmatmul.mubr.msk.f32.gmra.mrb[24].mxu1 %vm1354_vm7, %v1344_v28  ;;  %v5149_v28 = vld [vmem:[#allocation2 + $0x180] sm:$0xff] }
 0x1df   : > { %v2154_v56 = vpop.permute.xlu1 %2153 }
 0x1e0   : > { %v1116_v30 = vpop.permute.xlu0 %1115  ;;  %v2367_v2 = vsel %vm437_vm0, %v4809_v60, %v2154_v56 }
 0x1e1   : > { %820 = vrot.lane.b32.xlu1 %v4711_v6, %s3937_s26  ;;  %v1313_v13 = vsel %vm437_vm0, %v5073_v12, %v1116_v30 }
 0x1e2   : > { %694 = vrot.lane.b32.xlu0 %v4713_v19, %s3936_s24 }
 0x1e3   : > { %v1244_v61 = vpop.permute.xlu1 %1243 }
 0x1e4   : > { %v1345_v44 = vsel %vm900_vm6, %v1313_v13, %v1244_v61  ;;  %v1118_v4 = vpop.permute.xlu0 %1117 }
 0x1e5   : > { %2309 = vrot.lane.b32.xlu1 %v4799_v33, %s3937_s26  ;;  %3421 = vmatprep.mubr.msk.f32.mxu1 %vm1354_vm7, %v1345_v44  ;;  %v1314_v60 = vsel %vm437_vm0, %v5090_v37, %v1118_v4 }
 0x1e6   : > { %2183 = vrot.lane.b32.xlu0 %v4801_v15, %s3936_s24 }
 0x1e7   : > { %v2282_v6 = vpop.permute.xlu1 %2281 }
 0x1e8   : > { %v2399_v19 = vsel %vm900_vm6, %v2367_v2, %v2282_v6  ;;  %v2156_v55 = vpop.permute.xlu0 %2155  ;;  %v5170_v6 = vld [vmem:[#allocation2 + $0x188] sm:$0xff] }
 0x1e9   : > { %2311 = vrot.lane.b32.xlu1 %v4819_v24, %s3937_s26  ;;  %3501 = vmatprep.mubr.msk.f32.mxu0 %vm1354_vm7, %v2399_v19  ;;  %v2368_v45 = vsel %vm437_vm0, %v4822_v63, %v2156_v55  ;;  %v5109_v63 = vld [vmem:[#allocation2 + $0x168] sm:$0xff] }
 0x1ea   : > { %822 = vrot.lane.b32.xlu0 %v4731_v40, %s3937_s26 }
 0x1eb   : > { %v2284_v25 = vpop.permute.xlu1 %2283 }
 0x1ec   : > { %v2400_v53 = vsel %vm900_vm6, %v2368_v45, %v2284_v25  ;;  %v1246_v26 = vpop.permute.xlu0 %1245 }
 0x1ed   : > { %v1346_v35 = vsel %vm900_vm6, %v1314_v60, %v1246_v26  ;;  %2185 = vrot.lane.b32.xlu1 %v4833_v48, %s3936_s24  ;;  %3502 = vmatmul.mubr.msk.f32.gmra.mrb[10].mxu0 %vm1354_vm7, %v2400_v53 }
 0x1ee   : > { %696 = vrot.lane.b32.xlu0 %v4745_v49, %s3936_s24  ;;  %3422 = vmatmul.mubr.msk.f32.gmra.mrb[26].mxu1 %vm1354_vm7, %v1346_v35  ;;  %v2099_v35 = vld [vmem:[#allocation2 + $0x19a] sm:$0xff] }
 0x1ef   : > { %v2158_v40 = vpop.permute.xlu1 %2157 }
 0x1f0   : > { %v1120_v23 = vpop.permute.xlu0 %1119 }
 0x1f1   : > { %824 = vrot.lane.b32.xlu1 %v4755_v21, %s3937_s26  ;;  %v1315_v5 = vsel %vm437_vm0, %v5109_v63, %v1120_v23  ;;  %v2369_v21 = vsel %vm437_vm0, %v4853_v31, %v2158_v40 }
 0x1f2   : > { %v5111_v36 = vpop.f32.mrb[0].mxu1  ;;  %698 = vrot.lane.b32.xlu0 %v4757_v39, %s3936_s24 }
 0x1f3   : > { %v5117_v38 = vpop.f32.mrb[1].mxu1  ;;  %v1248_v49 = vpop.permute.xlu1 %1247 }
 0x1f4   : > { %v1347_v9 = vsel %vm900_vm6, %v1315_v5, %v1248_v49  ;;  %v1122_v8 = vpop.permute.xlu0 %1121 }
 0x1f5   : > { %2313 = vrot.lane.b32.xlu1 %v4843_v50, %s3937_s26  ;;  %3424 = vmatprep.mubr.msk.f32.mxu1 %vm1354_vm7, %v1347_v9  ;;  %v1316_v54 = vsel %vm437_vm0, %v5130_v46, %v1122_v8 }
 0x1f6   : > { %2187 = vrot.lane.b32.xlu0 %v4845_v20, %s3936_s24 }
 0x1f7   : > { %v2286_v39 = vpop.permute.xlu1 %2285 }
 0x1f8   : > { %v2401_v32 = vsel %vm900_vm6, %v2369_v21, %v2286_v39  ;;  %v2160_v57 = vpop.permute.xlu0 %2159 }
 0x1f9   : > { %2315 = vrot.lane.b32.xlu1 %v4863_v7, %s3937_s26  ;;  %3504 = vmatprep.mubr.msk.f32.mxu0 %vm1354_vm7, %v2401_v32  ;;  %v2370_v42 = vsel %vm437_vm0, %v4866_v3, %v2160_v57 }
 0x1fa   : > { %826 = vrot.lane.b32.xlu0 %v4775_v14, %s3937_s26 }
 0x1fb   : > { %v2288_v11 = vpop.permute.xlu1 %2287 }
 0x1fc   : > { %v2402_v0 = vsel %vm900_vm6, %v2370_v42, %v2288_v11  ;;  %v1250_v17 = vpop.permute.xlu0 %1249 }
 0x1fd   : > { %v1348_v27 = vsel %vm900_vm6, %v1316_v54, %v1250_v17  ;;  %2189 = vrot.lane.b32.xlu1 %v4877_v10, %s3936_s24  ;;  %3505 = vmatmul.mubr.msk.f32.gmra.mrb[12].mxu0 %vm1354_vm7, %v2402_v0 }
 0x1fe   : > { %700 = vrot.lane.b32.xlu0 %v4789_v51, %s3936_s24  ;;  %3425 = vmatmul.mubr.msk.f32.gmra.mrb[28].mxu1 %vm1354_vm7, %v1348_v27 }
 0x1ff   : > { %v2162_v14 = vpop.permute.xlu1 %2161 }
 0x200   : > { %v1124_v56 = vpop.permute.xlu0 %1123  ;;  %v5151_v30 = vpop.f32.mrb[2].mxu1 }
 0x201   : > { %828 = vrot.lane.b32.xlu1 %v4799_v33, %s3937_s26  ;;  %v5155_v13 = vpop.f32.mrb[3].mxu1  ;;  %v1317_v10 = vsel %vm437_vm0, %v5149_v28, %v1124_v56  ;;  %v2371_v33 = vsel %vm437_vm0, %v4891_v52, %v2162_v14 }
 0x202   : > { %702 = vrot.lane.b32.xlu0 %v4801_v15, %s3936_s24 }
 0x203   : > { %v1252_v51 = vpop.permute.xlu1 %1251 }
 0x204   : > { %v1349_v61 = vsel %vm900_vm6, %v1317_v10, %v1252_v51  ;;  %v1126_v44 = vpop.permute.xlu0 %1125 }
 0x205   : > { %2317 = vrot.lane.b32.xlu1 %v4887_v18, %s3937_s26  ;;  %3427 = vmatprep.mubr.msk.f32.mxu1 %vm1354_vm7, %v1349_v61  ;;  %v2067_v18 = vld [vmem:[#allocation2 + $0x199] sm:$0xff]  ;;  %v1318_v55 = vsel %vm437_vm0, %v5170_v6, %v1126_v44 }
 0x206   : > { %2191 = vrot.lane.b32.xlu0 %v4889_v22, %s3936_s24 }
 0x207   : > { %v2290_v4 = vpop.permute.xlu1 %2289 }
 0x208   : > { %v2403_v15 = vsel %vm900_vm6, %v2371_v33, %v2290_v4  ;;  %v2164_v2 = vpop.permute.xlu0 %2163 }
 0x209   : > { %2319 = vrot.lane.b32.xlu1 %v4907_v58, %s3937_s26  ;;  %3507 = vmatprep.mubr.msk.f32.mxu0 %vm1354_vm7, %v2403_v15  ;;  %v2372_v22 = vsel %vm437_vm0, %v4910_v43, %v2164_v2 }
 0x20a   : > { %830 = vrot.lane.b32.xlu0 %v4819_v24, %s3937_s26 }
 0x20b   : > { %v2292_v19 = vpop.permute.xlu1 %2291 }
 0x20c   : > { %v2404_v45 = vsel %vm900_vm6, %v2372_v22, %v2292_v19  ;;  %v1254_v25 = vpop.permute.xlu0 %1253 }
 0x20d   : > { %v1350_v60 = vsel %vm900_vm6, %v1318_v55, %v1254_v25  ;;  %2193 = vrot.lane.b32.xlu1 %v2067_v18, %s3936_s24  ;;  %3508 = vmatmul.mubr.msk.f32.gmra.mrb[14].mxu0 %vm1354_vm7, %v2404_v45 }
 0x20e   : > { %704 = vrot.lane.b32.xlu0 %v4833_v48, %s3936_s24  ;;  %3428 = vmatmul.mubr.msk.f32.gmra.mrb[30].mxu1 %vm1354_vm7, %v1350_v60  ;;  %v2068_v48 = vld [vmem:[#allocation2 + $0x1a1] sm:$0xff] }
 0x20f   : > { %v2166_v24 = vpop.permute.xlu1 %2165 }
 0x210   : > { %v677_v58 = vpop.permute.xlu0 %676  ;;  %v5188_v53 = vpop.f32.mrb[4].mxu1  ;;  %v2373_v9 = vsel %vm437_vm0, %v4929_v41, %v2166_v24 }
 0x211   : > { %832 = vrot.lane.b32.xlu1 %v4843_v50, %s3937_s26  ;;  %v5192_v26 = vpop.f32.mrb[5].mxu1  ;;  %v884_v40 = vsel %vm437_vm0, %v4853_v31, %v677_v58  ;;  %v2100_v50 = vld [vmem:[#allocation2 + $0x1a2] sm:$0xff] }
 0x212   : > { %706 = vrot.lane.b32.xlu0 %v4845_v20, %s3936_s24 }
 0x213   : > { %v805_v23 = vpop.permute.xlu1 %804 }
 0x214   : > { %v917_v5 = vsel %vm900_vm6, %v884_v40, %v805_v23  ;;  %v679_v49 = vpop.permute.xlu0 %678 }
 0x215   : > { %2321 = vrot.lane.b32.xlu1 %v2099_v35, %s3937_s26  ;;  %3458 = vmatprep.mubr.msk.f32.mxu1 %vm1354_vm7, %v917_v5  ;;  %v885_v32 = vsel %vm437_vm0, %v4866_v3, %v679_v49 }
 0x216   : > { %2195 = vrot.lane.b32.xlu0 %v2068_v48, %s3936_s24 }
 0x217   : > { %v2294_v20 = vpop.permute.xlu1 %2293 }
 0x218   : > { %v2405_v8 = vsel %vm900_vm6, %v2373_v9, %v2294_v20  ;;  %v2168_v21 = vpop.permute.xlu0 %2167 }
 0x219   : > { %2323 = vrot.lane.b32.xlu1 %v2100_v50, %s3937_s26  ;;  %3510 = vmatprep.mubr.msk.f32.mxu0 %vm1354_vm7, %v2405_v8  ;;  %v2374_v31 = vsel %vm437_vm0, %v4946_v1, %v2168_v21 }
 0x21a   : > { %834 = vrot.lane.b32.xlu0 %v4863_v7, %s3937_s26 }
 0x21b   : > { %v2296_v39 = vpop.permute.xlu1 %2295 }
 0x21c   : > { %v2406_v57 = vsel %vm900_vm6, %v2374_v31, %v2296_v39  ;;  %v807_v42 = vpop.permute.xlu0 %806 }
 0x21d   : > { %v918_v11 = vsel %vm900_vm6, %v885_v32, %v807_v42  ;;  %3511 = vmatmul.mubr.msk.f32.gmra.mrb[16].mxu0 %vm1354_vm7, %v2406_v57 }
 0x21e   : > { %3459 = vmatmul.mubr.msk.f32.vlgmr.msra.gmra.mrb[16].mxu1 %vm1354_vm7, %v918_v11 }
 0x21f   : > { %v2170_v54 = vpop.permute.xlu1 %2169 }
 0x220   : > { %v681_v0 = vpop.permute.xlu0 %680  ;;  %v5217_v17 = vpop.f32.mrb[6].mxu1  ;;  %v2375_v10 = vsel %vm437_vm0, %v4965_v29, %v2170_v54 }
 0x221   : > { %v5219_v7 = vpop.f32.mrb[7].mxu1  ;;  %v886_v27 = vsel %vm437_vm0, %v4891_v52, %v681_v0 }
 0x223   : > { %v809_v14 = vpop.permute.xlu1 %808 }
 0x224   : > { %v919_v3 = vsel %vm900_vm6, %v886_v27, %v809_v14  ;;  %v683_v56 = vpop.permute.xlu0 %682 }
 0x225   : > { %3461 = vmatprep.mubr.msk.f32.mxu1 %vm1354_vm7, %v919_v3  ;;  %v887_v52 = vsel %vm437_vm0, %v4910_v43, %v683_v56 }
 0x227   : > { %v2298_v51 = vpop.permute.xlu1 %2297 }
 0x228   : > { %v2407_v61 = vsel %vm900_vm6, %v2375_v10, %v2298_v51  ;;  %v2172_v44 = vpop.permute.xlu0 %2171 }
 0x229   : > { %3513 = vmatprep.mubr.msk.f32.mxu0 %vm1354_vm7, %v2407_v61  ;;  %v2376_v33 = vsel %vm437_vm0, %v4982_v59, %v2172_v44 }
 0x22b   : > { %v2300_v4 = vpop.permute.xlu1 %2299 }
 0x22c   : > { %v2408_v15 = vsel %vm900_vm6, %v2376_v33, %v2300_v4  ;;  %v811_v2 = vpop.permute.xlu0 %810 }
 0x22d   : > { %v920_v18 = vsel %vm900_vm6, %v887_v52, %v811_v2  ;;  %3514 = vmatmul.mubr.msk.f32.gmra.mrb[18].mxu0 %vm1354_vm7, %v2408_v15 }
 0x22e   : > { %3462 = vmatmul.mubr.msk.f32.gmra.mrb[18].mxu1 %vm1354_vm7, %v920_v18 }
 0x22f   : > { %v2174_v22 = vpop.permute.xlu1 %2173 }
 0x230   : > { %v685_v19 = vpop.permute.xlu0 %684  ;;  %v5237_v55 = vpop.f32.mrb[8].mxu1  ;;  %v2377_v58 = vsel %vm437_vm0, %v5001_v62, %v2174_v22 }
 0x231   : > { %v5239_v45 = vpop.f32.mrb[9].mxu1  ;;  %v888_v25 = vsel %vm437_vm0, %v4929_v41, %v685_v19 }
 0x233   : > { %v813_v60 = vpop.permute.xlu1 %812 }
 0x234   : > { %v921_v43 = vsel %vm900_vm6, %v888_v25, %v813_v60  ;;  %v687_v24 = vpop.permute.xlu0 %686 }
 0x235   : > { %3464 = vmatprep.mubr.msk.f32.mxu1 %vm1354_vm7, %v921_v43  ;;  %v889_v41 = vsel %vm437_vm0, %v4946_v1, %v687_v24 }
 0x237   : > { %v2302_v35 = vpop.permute.xlu1 %2301 }
 0x238   : > { %v2409_v40 = vsel %vm900_vm6, %v2377_v58, %v2302_v35  ;;  %v2176_v23 = vpop.permute.xlu0 %2175 }
 0x239   : > { %3516 = vmatprep.mubr.msk.f32.mxu0 %vm1354_vm7, %v2409_v40  ;;  %v2378_v48 = vsel %vm437_vm0, %v5018_v16, %v2176_v23 }
 0x23b   : > { %v2304_v5 = vpop.permute.xlu1 %2303 }
 0x23c   : > { %v2410_v49 = vsel %vm900_vm6, %v2378_v48, %v2304_v5  ;;  %v815_v50 = vpop.permute.xlu0 %814 }
 0x23d   : > { %v922_v9 = vsel %vm900_vm6, %v889_v41, %v815_v50  ;;  %3517 = vmatmul.mubr.msk.f32.gmra.mrb[20].mxu0 %vm1354_vm7, %v2410_v49 }
 0x23e   : > { %3465 = vmatmul.mubr.msk.f32.gmra.mrb[20].mxu1 %vm1354_vm7, %v922_v9 }
 0x23f   : > { %v2178_v20 = vpop.permute.xlu1 %2177 }
 0x240   : > { %v689_v8 = vpop.permute.xlu0 %688  ;;  %v5257_v21 = vpop.f32.mrb[10].mxu1  ;;  %v2379_v42 = vsel %vm437_vm0, %v5037_v34, %v2178_v20 }
 0x241   : > { %v5259_v31 = vpop.f32.mrb[11].mxu1  ;;  %v890_v39 = vsel %vm437_vm0, %v4965_v29, %v689_v8 }
 0x243   : > { %v817_v32 = vpop.permute.xlu1 %816 }
 0x244   : > { %v923_v1 = vsel %vm900_vm6, %v890_v39, %v817_v32  ;;  %v691_v57 = vpop.permute.xlu0 %690 }
 0x245   : > { %3467 = vmatprep.mubr.msk.f32.mxu1 %vm1354_vm7, %v923_v1  ;;  %v891_v29 = vsel %vm437_vm0, %v4982_v59, %v691_v57 }
 0x247   : > { %v2306_v11 = vpop.permute.xlu1 %2305 }
 0x248   : > { %v2411_v54 = vsel %vm900_vm6, %v2379_v42, %v2306_v11  ;;  %v2180_v0 = vpop.permute.xlu0 %2179 }
 0x249   : > { %3519 = vmatprep.mubr.msk.f32.mxu0 %vm1354_vm7, %v2411_v54  ;;  %v2380_v27 = vsel %vm437_vm0, %v5054_v47, %v2180_v0 }
 0x24b   : > { %v2308_v14 = vpop.permute.xlu1 %2307 }
 0x24c   : > { %v2412_v3 = vsel %vm900_vm6, %v2380_v27, %v2308_v14  ;;  %v819_v56 = vpop.permute.xlu0 %818 }
 0x24d   : > { %v924_v10 = vsel %vm900_vm6, %v891_v29, %v819_v56  ;;  %3520 = vmatmul.mubr.msk.f32.gmra.mrb[22].mxu0 %vm1354_vm7, %v2412_v3 }
 0x24e   : > { %3468 = vmatmul.mubr.msk.f32.gmra.mrb[22].mxu1 %vm1354_vm7, %v924_v10 }
 0x24f   : > { %v2182_v51 = vpop.permute.xlu1 %2181 }
 0x250   : > { %v693_v61 = vpop.permute.xlu0 %692  ;;  %v5277_v44 = vpop.f32.mrb[12].mxu1  ;;  %v2381_v2 = vsel %vm437_vm0, %v5073_v12, %v2182_v51 }
 0x251   : > { %v5279_v33 = vpop.f32.mrb[13].mxu1  ;;  %v892_v4 = vsel %vm437_vm0, %v5001_v62, %v693_v61 }
 0x253   : > { %v821_v52 = vpop.permute.xlu1 %820 }
 0x254   : > { %v925_v59 = vsel %vm900_vm6, %v892_v4, %v821_v52  ;;  %v695_v15 = vpop.permute.xlu0 %694 }
 0x255   : > { %3470 = vmatprep.mubr.msk.f32.mxu1 %vm1354_vm7, %v925_v59  ;;  %v893_v62 = vsel %vm437_vm0, %v5018_v16, %v695_v15 }
 0x257   : > { %v2310_v18 = vpop.permute.xlu1 %2309 }
 0x258   : > { %v2413_v22 = vsel %vm900_vm6, %v2381_v2, %v2310_v18  ;;  %v2184_v19 = vpop.permute.xlu0 %2183 }
 0x259   : > { %3522 = vmatprep.mubr.msk.f32.mxu0 %vm1354_vm7, %v2413_v22  ;;  %v2382_v25 = vsel %vm437_vm0, %v5090_v37, %v2184_v19 }
 0x25b   : > { %v2312_v60 = vpop.permute.xlu1 %2311 }
 0x25c   : > { %v2414_v43 = vsel %vm900_vm6, %v2382_v25, %v2312_v60  ;;  %v823_v24 = vpop.permute.xlu0 %822 }
 0x25d   : > { %v926_v58 = vsel %vm900_vm6, %v893_v62, %v823_v24  ;;  %3523 = vmatmul.mubr.msk.f32.gmra.mrb[24].mxu0 %vm1354_vm7, %v2414_v43 }
 0x25e   : > { %3471 = vmatmul.mubr.msk.f32.gmra.mrb[24].mxu1 %vm1354_vm7, %v926_v58 }
 0x25f   : > { %v2186_v35 = vpop.permute.xlu1 %2185 }
 0x260   : > { %v697_v40 = vpop.permute.xlu0 %696  ;;  %v5297_v23 = vpop.f32.mrb[14].mxu1  ;;  %v2383_v50 = vsel %vm437_vm0, %v5109_v63, %v2186_v35 }
 0x261   : > { %v5299_v48 = vpop.f32.mrb[15].mxu1  ;;  %v894_v5 = vsel %vm437_vm0, %v5037_v34, %v697_v40 }
 0x263   : > { %v825_v41 = vpop.permute.xlu1 %824 }
 0x264   : > { %v927_v16 = vsel %vm900_vm6, %v894_v5, %v825_v41  ;;  %v699_v49 = vpop.permute.xlu0 %698 }
 0x265   : > { %3473 = vmatprep.mubr.msk.f32.mxu1 %vm1354_vm7, %v927_v16  ;;  %v895_v32 = vsel %vm437_vm0, %v5054_v47, %v699_v49  ;;  %v2035_v16 = vld [vmem:[#allocation2 + $0x198] sm:$0xff] }
 0x267   : > { %v2314_v9 = vpop.permute.xlu1 %2313 }
 0x268   : > { %v2415_v20 = vsel %vm900_vm6, %v2383_v50, %v2314_v9  ;;  %v2188_v8 = vpop.permute.xlu0 %2187 }
 0x269   : > { %3525 = vmatprep.mubr.msk.f32.mxu0 %vm1354_vm7, %v2415_v20  ;;  %v2384_v39 = vsel %vm437_vm0, %v5130_v46, %v2188_v8 }
 0x26b   : > { %v2316_v34 = vpop.permute.xlu1 %2315 }
 0x26c   : > { %v2416_v1 = vsel %vm900_vm6, %v2384_v39, %v2316_v34  ;;  %v827_v57 = vpop.permute.xlu0 %826 }
 0x26d   : > { %v928_v42 = vsel %vm900_vm6, %v895_v32, %v827_v57  ;;  %3526 = vmatmul.mubr.msk.f32.gmra.mrb[26].mxu0 %vm1354_vm7, %v2416_v1 }
 0x26e   : > { %3474 = vmatmul.mubr.msk.f32.gmra.mrb[26].mxu1 %vm1354_vm7, %v928_v42 }
 0x26f   : > { %v2190_v11 = vpop.permute.xlu1 %2189 }
 0x270   : > { %v701_v54 = vpop.permute.xlu0 %700  ;;  %v3488_v0 = vpop.f32.mrb[0].mxu0  ;;  %v2385_v59 = vsel %vm437_vm0, %v5149_v28, %v2190_v11  ;;  %v2036_v11 = vld [vmem:[#allocation2 + $0x1a0] sm:$0xff] }
 0x271   : > { %v3554_v27 = vadd.f32 %v3488_v0, %v5111_v36  ;;  %v2589_v14 = vpop.f32.mrb[1].mxu0  ;;  %v896_v47 = vsel %vm437_vm0, %v5073_v12, %v701_v54 }
 0x272   : > { %v3555_v29 = vadd.f32 %v2589_v14, %v5117_v38 }
 0x273   : > { %2781 = vst.msk [vmem:[%s5323_s23 + $0x8] sm:$0xff] %vm437_vm0, %v3554_v27  ;;  %v2813_v3 = vsel %vm437_vm0, %v3554_v27, 0.0  ;;  %v2883_v56 = vmul.f32 %v3554_v27, %v3554_v27  ;;  %v829_v10 = vpop.permute.xlu1 %828 }
 0x274   : > { %2780 = vst.msk [vmem:[%s5323_s23] sm:$0xff] %vm437_vm0, %v3555_v29  ;;  %v2812_v36 = vsel %vm437_vm0, %v3555_v29, 0.0  ;;  %v2882_v51 = vmul.f32 %v3555_v29, %v3555_v29  ;;  %v929_v38 = vsel %vm900_vm6, %v896_v47, %v829_v10  ;;  %v703_v61 = vpop.permute.xlu0 %702 }
 0x275   : > { %v2915_v12 = vsel %vm437_vm0, %v2883_v56, 0.0  ;;  %v2814_v4 = vadd.f32 %v2813_v3, %v2812_v36  ;;  %3476 = vmatprep.mubr.msk.f32.mxu1 %vm1354_vm7, %v929_v38  ;;  %v897_v60 = vsel %vm437_vm0, %v5090_v37, %v703_v61 }
 0x276   : > { %v2914_v52 = vsel %vm437_vm0, %v2882_v51, 0.0 }
 0x277   : > { %v2916_v15 = vadd.f32 %v2915_v12, %v2914_v52  ;;  %v2318_v2 = vpop.permute.xlu1 %2317 }
 0x278   : > { %v2417_v18 = vsel %vm900_vm6, %v2385_v59, %v2318_v2  ;;  %v2192_v22 = vpop.permute.xlu0 %2191 }
 0x279   : > { %3528 = vmatprep.mubr.msk.f32.mxu0 %vm1354_vm7, %v2417_v18  ;;  %v2386_v19 = vsel %vm437_vm0, %v5170_v6, %v2192_v22 }
 0x27b   : > { %v2320_v25 = vpop.permute.xlu1 %2319 }
 0x27c   : > { %v2418_v62 = vsel %vm900_vm6, %v2386_v19, %v2320_v25  ;;  %v831_v43 = vpop.permute.xlu0 %830 }
 0x27d   : > { %v930_v28 = vsel %vm900_vm6, %v897_v60, %v831_v43  ;;  %3529 = vmatmul.mubr.msk.f32.gmra.mrb[28].mxu0 %vm1354_vm7, %v2418_v62 }
 0x27e   : > { %3477 = vmatmul.mubr.msk.f32.gmra.mrb[28].mxu1 %vm1354_vm7, %v930_v28 }
 0x27f   : > { %v2194_v24 = vpop.permute.xlu1 %2193 }
 0x280   : > { %v705_v58 = vpop.permute.xlu0 %704  ;;  %v3491_v35 = vpop.f32.mrb[2].mxu0  ;;  %v2387_v39 = vsel %vm437_vm0, %v2035_v16, %v2194_v24 }
 0x281   : > { %v3556_v40 = vadd.f32 %v3491_v35, %v5151_v30  ;;  %v2599_v6 = vpop.f32.mrb[3].mxu0  ;;  %v898_v37 = vsel %vm437_vm0, %v5109_v63, %v705_v58 }
 0x282   : > { %v3557_v5 = vadd.f32 %v2599_v6, %v5155_v13 }
 0x283   : > { %2783 = vst.msk [vmem:[%s5323_s23 + $0x18] sm:$0xff] %vm437_vm0, %v3556_v40  ;;  %v833_v41 = vpop.permute.xlu1 %832  ;;  %v2885_v49 = vmul.f32 %v3556_v40, %v3556_v40  ;;  %v2817_v13 = vsel %vm437_vm0, %v3556_v40, 0.0 }
 0x284   : > { %2782 = vst.msk [vmem:[%s5323_s23 + $0x10] sm:$0xff] %vm437_vm0, %v3557_v5  ;;  %v2815_v50 = vsel %vm437_vm0, %v3557_v5, 0.0  ;;  %v2884_v9 = vmul.f32 %v3557_v5, %v3557_v5  ;;  %v931_v20 = vsel %vm900_vm6, %v898_v37, %v833_v41  ;;  %v707_v8 = vpop.permute.xlu0 %706 }
 0x285   : > { %v2816_v30 = vadd.f32 %v2815_v50, %v2814_v4  ;;  %3479 = vmatprep.mubr.msk.f32.mxu1 %vm1354_vm7, %v931_v20  ;;  %v2919_v57 = vsel %vm437_vm0, %v2885_v49, 0.0  ;;  %v899_v29 = vsel %vm437_vm0, %v5130_v46, %v707_v8 }
 0x286   : > { %v2917_v63 = vsel %vm437_vm0, %v2884_v9, 0.0 }
 0x287   : > { %v2918_v34 = vadd.f32 %v2917_v63, %v2916_v15  ;;  %v2322_v32 = vpop.permute.xlu1 %2321  ;;  %v2818_v1 = vadd.f32 %v2817_v13, %v2816_v30 }
 0x288   : > { %v2419_v42 = vsel %vm900_vm6, %v2387_v39, %v2322_v32  ;;  %v2196_v54 = vpop.permute.xlu0 %2195 }
 0x289   : > { %3531 = vmatprep.mubr.msk.f32.mxu0 %vm1354_vm7, %v2419_v42  ;;  %v2920_v0 = vadd.f32 %v2919_v57, %v2918_v34  ;;  %v2388_v27 = vsel %vm437_vm0, %v2036_v11, %v2196_v54 }
 0x28b   : > { %v2324_v14 = vpop.permute.xlu1 %2323 }
 0x28c   : > { %v2420_v47 = vsel %vm900_vm6, %v2388_v27, %v2324_v14  ;;  %v835_v3 = vpop.permute.xlu0 %834 }
 0x28d   : > { %v932_v56 = vsel %vm900_vm6, %v899_v29, %v835_v3  ;;  %3532 = vmatmul.mubr.msk.f32.gmra.mrb[30].mxu0 %vm1354_vm7, %v2420_v47 }
 0x28e   : > { %3480 = vmatmul.mubr.msk.f32.gmra.mrb[30].mxu1 %vm1354_vm7, %v932_v56 }
 0x290   : > { %v3494_v10 = vpop.f32.mrb[4].mxu0 }
 0x291   : > { %v3558_v36 = vadd.f32 %v3494_v10, %v5188_v53  ;;  %v2609_v51 = vpop.f32.mrb[5].mxu0 }
 0x292   : > { %v3559_v38 = vadd.f32 %v2609_v51, %v5192_v26 }
 0x293   : > { %2785 = vst.msk [vmem:[%s5323_s23 + $0x28] sm:$0xff] %vm437_vm0, %v3558_v36  ;;  %v2887_v61 = vmul.f32 %v3558_v36, %v3558_v36  ;;  %v2821_v52 = vsel %vm437_vm0, %v3558_v36, 0.0 }
 0x294   : > { %2784 = vst.msk [vmem:[%s5323_s23 + $0x20] sm:$0xff] %vm437_vm0, %v3559_v38  ;;  %v2819_v46 = vsel %vm437_vm0, %v3559_v38, 0.0  ;;  %v2886_v12 = vmul.f32 %v3559_v38, %v3559_v38 }
 0x295   : > { %v2820_v4 = vadd.f32 %v2819_v46, %v2818_v1  ;;  %v2923_v2 = vsel %vm437_vm0, %v2887_v61, 0.0 }
 0x296   : > { %v2921_v59 = vsel %vm437_vm0, %v2886_v12, 0.0 }
 0x297   : > { %v2922_v15 = vadd.f32 %v2921_v59, %v2920_v0  ;;  %v2822_v53 = vadd.f32 %v2821_v52, %v2820_v4 }
 0x299   : > { %v2924_v26 = vadd.f32 %v2923_v2, %v2922_v15 }
 0x2a0   : > { %v3497_v18 = vpop.f32.mrb[6].mxu0 }
 0x2a1   : > { %v3560_v22 = vadd.f32 %v3497_v18, %v5217_v17  ;;  %v2619_v19 = vpop.f32.mrb[7].mxu0 }
 0x2a2   : > { %v3561_v25 = vadd.f32 %v2619_v19, %v5219_v7 }
 0x2a3   : > { %2787 = vst.msk [vmem:[%s5323_s23 + $0x38] sm:$0xff] %vm437_vm0, %v3560_v22  ;;  %v2889_v60 = vmul.f32 %v3560_v22, %v3560_v22  ;;  %v2825_v24 = vsel %vm437_vm0, %v3560_v22, 0.0 }
 0x2a4   : > { %2786 = vst.msk [vmem:[%s5323_s23 + $0x30] sm:$0xff] %vm437_vm0, %v3561_v25  ;;  %v2823_v62 = vsel %vm437_vm0, %v3561_v25, 0.0  ;;  %v2888_v43 = vmul.f32 %v3561_v25, %v3561_v25 }
 0x2a5   : > { %v2824_v28 = vadd.f32 %v2823_v62, %v2822_v53  ;;  %v2927_v40 = vsel %vm437_vm0, %v2889_v60, 0.0 }
 0x2a6   : > { %v2925_v58 = vsel %vm437_vm0, %v2888_v43, 0.0 }
 0x2a7   : > { %v2926_v35 = vadd.f32 %v2925_v58, %v2924_v26  ;;  %v2826_v17 = vadd.f32 %v2825_v24, %v2824_v28 }
 0x2a9   : > { %v2928_v7 = vadd.f32 %v2927_v40, %v2926_v35 }
 0x2b0   : > { %v3500_v6 = vpop.f32.mrb[8].mxu0 }
 0x2b1   : > { %v3562_v5 = vadd.f32 %v3500_v6, %v5237_v55  ;;  %v2629_v37 = vpop.f32.mrb[9].mxu0 }
 0x2b2   : > { %v3563_v41 = vadd.f32 %v2629_v37, %v5239_v45 }
 0x2b3   : > { %2789 = vst.msk [vmem:[%s5323_s23 + $0x48] sm:$0xff] %vm437_vm0, %v3562_v5  ;;  %v2891_v16 = vmul.f32 %v3562_v5, %v3562_v5  ;;  %v2829_v20 = vsel %vm437_vm0, %v3562_v5, 0.0 }
 0x2b4   : > { %2788 = vst.msk [vmem:[%s5323_s23 + $0x40] sm:$0xff] %vm437_vm0, %v3563_v41  ;;  %v2827_v49 = vsel %vm437_vm0, %v3563_v41, 0.0  ;;  %v2890_v50 = vmul.f32 %v3563_v41, %v3563_v41 }
 0x2b5   : > { %v2828_v9 = vadd.f32 %v2827_v49, %v2826_v17  ;;  %v2931_v13 = vsel %vm437_vm0, %v2891_v16, 0.0 }
 0x2b6   : > { %v2929_v8 = vsel %vm437_vm0, %v2890_v50, 0.0 }
 0x2b7   : > { %v2930_v30 = vadd.f32 %v2929_v8, %v2928_v7  ;;  %v2830_v55 = vadd.f32 %v2829_v20, %v2828_v9 }
 0x2b9   : > { %v2932_v45 = vadd.f32 %v2931_v13, %v2930_v30 }
 0x2c0   : > { %v3503_v63 = vpop.f32.mrb[10].mxu0 }
 0x2c1   : > { %v3564_v39 = vadd.f32 %v3503_v63, %v5257_v21  ;;  %v2639_v34 = vpop.f32.mrb[11].mxu0 }
 0x2c2   : > { %v3565_v32 = vadd.f32 %v2639_v34, %v5259_v31 }
 0x2c3   : > { %2791 = vst.msk [vmem:[%s5323_s23 + $0x58] sm:$0xff] %vm437_vm0, %v3564_v39  ;;  %v2893_v1 = vmul.f32 %v3564_v39, %v3564_v39  ;;  %v2833_v54 = vsel %vm437_vm0, %v3564_v39, 0.0 }
 0x2c4   : > { %2790 = vst.msk [vmem:[%s5323_s23 + $0x50] sm:$0xff] %vm437_vm0, %v3565_v32  ;;  %v2831_v57 = vsel %vm437_vm0, %v3565_v32, 0.0  ;;  %v2892_v42 = vmul.f32 %v3565_v32, %v3565_v32 }
 0x2c5   : > { %v2832_v11 = vadd.f32 %v2831_v57, %v2830_v55  ;;  %v2935_v14 = vsel %vm437_vm0, %v2893_v1, 0.0 }
 0x2c6   : > { %v2933_v0 = vsel %vm437_vm0, %v2892_v42, 0.0 }
 0x2c7   : > { %v2934_v27 = vadd.f32 %v2933_v0, %v2932_v45  ;;  %v2834_v21 = vadd.f32 %v2833_v54, %v2832_v11 }
 0x2c9   : > { %v2936_v31 = vadd.f32 %v2935_v14, %v2934_v27 }
 0x2d0   : > { %v3506_v29 = vpop.f32.mrb[12].mxu0 }
 0x2d1   : > { %v3566_v47 = vadd.f32 %v3506_v29, %v5277_v44  ;;  %v2649_v3 = vpop.f32.mrb[13].mxu0 }
 0x2d2   : > { %v3567_v56 = vadd.f32 %v2649_v3, %v5279_v33 }
 0x2d3   : > { %2793 = vst.msk [vmem:[%s5323_s23 + $0x68] sm:$0xff] %vm437_vm0, %v3566_v47  ;;  %v2895_v10 = vmul.f32 %v3566_v47, %v3566_v47  ;;  %v2837_v61 = vsel %vm437_vm0, %v3566_v47, 0.0 }
 0x2d4   : > { %2792 = vst.msk [vmem:[%s5323_s23 + $0x60] sm:$0xff] %vm437_vm0, %v3567_v56  ;;  %v2835_v36 = vsel %vm437_vm0, %v3567_v56, 0.0  ;;  %v2894_v51 = vmul.f32 %v3567_v56, %v3567_v56 }
 0x2d5   : > { %v2836_v38 = vadd.f32 %v2835_v36, %v2834_v21  ;;  %v2939_v4 = vsel %vm437_vm0, %v2895_v10, 0.0 }
 0x2d6   : > { %v2937_v46 = vsel %vm437_vm0, %v2894_v51, 0.0 }
 0x2d7   : > { %v2938_v12 = vadd.f32 %v2937_v46, %v2936_v31  ;;  %v2838_v44 = vadd.f32 %v2837_v61, %v2836_v38 }
 0x2d9   : > { %v2940_v33 = vadd.f32 %v2939_v4, %v2938_v12 }
 0x2e0   : > { %v3509_v52 = vpop.f32.mrb[14].mxu0 }
 0x2e1   : > { %v3568_v59 = vadd.f32 %v3509_v52, %v5297_v23  ;;  %v2659_v15 = vpop.f32.mrb[15].mxu0 }
 0x2e2   : > { %v3569_v53 = vadd.f32 %v2659_v15, %v5299_v48 }
 0x2e3   : > { %2795 = vst.msk [vmem:[%s5323_s23 + $0x78] sm:$0xff] %vm437_vm0, %v3568_v59  ;;  %v2897_v2 = vmul.f32 %v3568_v59, %v3568_v59  ;;  %v2841_v19 = vsel %vm437_vm0, %v3568_v59, 0.0 }
 0x2e4   : > { %2794 = vst.msk [vmem:[%s5323_s23 + $0x70] sm:$0xff] %vm437_vm0, %v3569_v53  ;;  %v2839_v26 = vsel %vm437_vm0, %v3569_v53, 0.0  ;;  %v2896_v18 = vmul.f32 %v3569_v53, %v3569_v53 }
 0x2e5   : > { %v2840_v22 = vadd.f32 %v2839_v26, %v2838_v44  ;;  %v2943_v62 = vsel %vm437_vm0, %v2897_v2, 0.0 }
 0x2e6   : > { %v2941_v25 = vsel %vm437_vm0, %v2896_v18, 0.0 }
 0x2e7   : > { %v2942_v60 = vadd.f32 %v2941_v25, %v2940_v33  ;;  %v2842_v23 = vadd.f32 %v2841_v19, %v2840_v22 }
 0x2e9   : > { %v2944_v48 = vadd.f32 %v2943_v62, %v2942_v60 }
 0x2f0   : > { %v3512_v43 = vpop.f32.mrb[16].mxu0 }
 0x2f1   : > { %v3460_v28 = vpop.f32.mrb[16].mxu1  ;;  %v2669_v24 = vpop.f32.mrb[17].mxu0 }
 0x2f2   : > { %v3570_v58 = vadd.f32 %v3512_v43, %v3460_v28  ;;  %v1925_v35 = vpop.f32.mrb[17].mxu1 }
 0x2f3   : > { %v3571_v17 = vadd.f32 %v2669_v24, %v1925_v35 }
 0x2f4   : > { %2797 = vst.msk [vmem:[%s5323_s23 + $0x88] sm:$0xff] %vm437_vm0, %v3570_v58  ;;  %v2899_v40 = vmul.f32 %v3570_v58, %v3570_v58  ;;  %v2845_v37 = vsel %vm437_vm0, %v3570_v58, 0.0 }
 0x2f5   : > { %2796 = vst.msk [vmem:[%s5323_s23 + $0x80] sm:$0xff] %vm437_vm0, %v3571_v17  ;;  %v2843_v7 = vsel %vm437_vm0, %v3571_v17, 0.0  ;;  %v2898_v6 = vmul.f32 %v3571_v17, %v3571_v17 }
 0x2f6   : > { %v2844_v5 = vadd.f32 %v2843_v7, %v2842_v23  ;;  %v2947_v50 = vsel %vm437_vm0, %v2899_v40, 0.0 }
 0x2f7   : > { %v2945_v41 = vsel %vm437_vm0, %v2898_v6, 0.0 }
 0x2f8   : > { %v2946_v16 = vadd.f32 %v2945_v41, %v2944_v48  ;;  %v2846_v49 = vadd.f32 %v2845_v37, %v2844_v5 }
 0x2fa   : > { %v2948_v9 = vadd.f32 %v2947_v50, %v2946_v16 }
 0x300   : > { %v3515_v20 = vpop.f32.mrb[18].mxu0 }
 0x301   : > { %v3463_v8 = vpop.f32.mrb[18].mxu1  ;;  %v2679_v30 = vpop.f32.mrb[19].mxu0 }
 0x302   : > { %v3572_v55 = vadd.f32 %v3515_v20, %v3463_v8  ;;  %v1935_v13 = vpop.f32.mrb[19].mxu1 }
 0x303   : > { %v3573_v45 = vadd.f32 %v2679_v30, %v1935_v13 }
 0x304   : > { %2799 = vst.msk [vmem:[%s5323_s23 + $0x98] sm:$0xff] %vm437_vm0, %v3572_v55  ;;  %v2901_v63 = vmul.f32 %v3572_v55, %v3572_v55  ;;  %v2849_v1 = vsel %vm437_vm0, %v3572_v55, 0.0 }
 0x305   : > { %2798 = vst.msk [vmem:[%s5323_s23 + $0x90] sm:$0xff] %vm437_vm0, %v3573_v45  ;;  %v2847_v39 = vsel %vm437_vm0, %v3573_v45, 0.0  ;;  %v2900_v34 = vmul.f32 %v3573_v45, %v3573_v45 }
 0x306   : > { %v2848_v32 = vadd.f32 %v2847_v39, %v2846_v49  ;;  %v2951_v54 = vsel %vm437_vm0, %v2901_v63, 0.0 }
 0x307   : > { %v2949_v57 = vsel %vm437_vm0, %v2900_v34, 0.0 }
 0x308   : > { %v2950_v42 = vadd.f32 %v2949_v57, %v2948_v9  ;;  %v2850_v11 = vadd.f32 %v2849_v1, %v2848_v32 }
 0x30a   : > { %v2952_v0 = vadd.f32 %v2951_v54, %v2950_v42 }
 0x310   : > { %v3518_v27 = vpop.f32.mrb[20].mxu0 }
 0x311   : > { %v3466_v21 = vpop.f32.mrb[20].mxu1  ;;  %v2689_v14 = vpop.f32.mrb[21].mxu0 }
 0x312   : > { %v3574_v31 = vadd.f32 %v3518_v27, %v3466_v21  ;;  %v1945_v29 = vpop.f32.mrb[21].mxu1 }
 0x313   : > { %v3575_v47 = vadd.f32 %v2689_v14, %v1945_v29 }
 0x314   : > { %2801 = vst.msk [vmem:[%s5323_s23 + $0xa8] sm:$0xff] %vm437_vm0, %v3574_v31  ;;  %v2903_v3 = vmul.f32 %v3574_v31, %v3574_v31  ;;  %v2853_v51 = vsel %vm437_vm0, %v3574_v31, 0.0 }
 0x315   : > { %2800 = vst.msk [vmem:[%s5323_s23 + $0xa0] sm:$0xff] %vm437_vm0, %v3575_v47  ;;  %v2851_v56 = vsel %vm437_vm0, %v3575_v47, 0.0  ;;  %v2902_v10 = vmul.f32 %v3575_v47, %v3575_v47 }
 0x316   : > { %v2852_v36 = vadd.f32 %v2851_v56, %v2850_v11  ;;  %v2955_v12 = vsel %vm437_vm0, %v2903_v3, 0.0 }
 0x317   : > { %v2953_v38 = vsel %vm437_vm0, %v2902_v10, 0.0 }
 0x318   : > { %v2954_v61 = vadd.f32 %v2953_v38, %v2952_v0  ;;  %v2854_v46 = vadd.f32 %v2853_v51, %v2852_v36 }
 0x31a   : > { %v2956_v44 = vadd.f32 %v2955_v12, %v2954_v61 }
 0x320   : > { %v3521_v4 = vpop.f32.mrb[22].mxu0 }
 0x321   : > { %v3469_v33 = vpop.f32.mrb[22].mxu1  ;;  %v2699_v52 = vpop.f32.mrb[23].mxu0 }
 0x322   : > { %v3576_v59 = vadd.f32 %v3521_v4, %v3469_v33  ;;  %v1955_v15 = vpop.f32.mrb[23].mxu1 }
 0x323   : > { %v3577_v53 = vadd.f32 %v2699_v52, %v1955_v15 }
 0x324   : > { %2803 = vst.msk [vmem:[%s5323_s23 + $0xb8] sm:$0xff] %vm437_vm0, %v3576_v59  ;;  %v2905_v2 = vmul.f32 %v3576_v59, %v3576_v59  ;;  %v2857_v19 = vsel %vm437_vm0, %v3576_v59, 0.0 }
 0x325   : > { %2802 = vst.msk [vmem:[%s5323_s23 + $0xb0] sm:$0xff] %vm437_vm0, %v3577_v53  ;;  %v2855_v26 = vsel %vm437_vm0, %v3577_v53, 0.0  ;;  %v2904_v18 = vmul.f32 %v3577_v53, %v3577_v53 }
 0x326   : > { %v2856_v22 = vadd.f32 %v2855_v26, %v2854_v46  ;;  %v2959_v62 = vsel %vm437_vm0, %v2905_v2, 0.0 }
 0x327   : > { %v2957_v25 = vsel %vm437_vm0, %v2904_v18, 0.0 }
 0x328   : > { %v2958_v60 = vadd.f32 %v2957_v25, %v2956_v44  ;;  %v2858_v23 = vadd.f32 %v2857_v19, %v2856_v22 }
 0x32a   : > { %v2960_v48 = vadd.f32 %v2959_v62, %v2958_v60 }
 0x330   : > { %v3524_v43 = vpop.f32.mrb[24].mxu0 }
 0x331   : > { %v3472_v28 = vpop.f32.mrb[24].mxu1  ;;  %v2709_v24 = vpop.f32.mrb[25].mxu0 }
 0x332   : > { %v3578_v58 = vadd.f32 %v3524_v43, %v3472_v28  ;;  %v1965_v35 = vpop.f32.mrb[25].mxu1 }
 0x333   : > { %v3579_v17 = vadd.f32 %v2709_v24, %v1965_v35 }
 0x334   : > { %2805 = vst.msk [vmem:[%s5323_s23 + $0xc8] sm:$0xff] %vm437_vm0, %v3578_v58  ;;  %v2907_v40 = vmul.f32 %v3578_v58, %v3578_v58  ;;  %v2861_v37 = vsel %vm437_vm0, %v3578_v58, 0.0 }
 0x335   : > { %2804 = vst.msk [vmem:[%s5323_s23 + $0xc0] sm:$0xff] %vm437_vm0, %v3579_v17  ;;  %v2859_v7 = vsel %vm437_vm0, %v3579_v17, 0.0  ;;  %v2906_v6 = vmul.f32 %v3579_v17, %v3579_v17 }
 0x336   : > { %v2860_v5 = vadd.f32 %v2859_v7, %v2858_v23  ;;  %v2963_v50 = vsel %vm437_vm0, %v2907_v40, 0.0 }
 0x337   : > { %v2961_v41 = vsel %vm437_vm0, %v2906_v6, 0.0 }
 0x338   : > { %v2962_v16 = vadd.f32 %v2961_v41, %v2960_v48  ;;  %v2862_v49 = vadd.f32 %v2861_v37, %v2860_v5 }
 0x33a   : > { %v2964_v9 = vadd.f32 %v2963_v50, %v2962_v16 }
 0x340   : > { %v3527_v20 = vpop.f32.mrb[26].mxu0 }
 0x341   : > { %v3475_v8 = vpop.f32.mrb[26].mxu1  ;;  %v2719_v30 = vpop.f32.mrb[27].mxu0 }
 0x342   : > { %v3580_v55 = vadd.f32 %v3527_v20, %v3475_v8  ;;  %v1975_v13 = vpop.f32.mrb[27].mxu1 }
 0x343   : > { %v3581_v45 = vadd.f32 %v2719_v30, %v1975_v13 }
 0x344   : > { %2807 = vst.msk [vmem:[%s5323_s23 + $0xd8] sm:$0xff] %vm437_vm0, %v3580_v55  ;;  %v2909_v63 = vmul.f32 %v3580_v55, %v3580_v55  ;;  %v2865_v1 = vsel %vm437_vm0, %v3580_v55, 0.0 }
 0x345   : > { %2806 = vst.msk [vmem:[%s5323_s23 + $0xd0] sm:$0xff] %vm437_vm0, %v3581_v45  ;;  %v2863_v39 = vsel %vm437_vm0, %v3581_v45, 0.0  ;;  %v2908_v34 = vmul.f32 %v3581_v45, %v3581_v45 }
 0x346   : > { %v2864_v32 = vadd.f32 %v2863_v39, %v2862_v49  ;;  %v2967_v54 = vsel %vm437_vm0, %v2909_v63, 0.0 }
 0x347   : > { %v2965_v57 = vsel %vm437_vm0, %v2908_v34, 0.0 }
 0x348   : > { %v2966_v42 = vadd.f32 %v2965_v57, %v2964_v9  ;;  %v2866_v11 = vadd.f32 %v2865_v1, %v2864_v32 }
 0x34a   : > { %v2968_v0 = vadd.f32 %v2967_v54, %v2966_v42 }
 0x350   : > { %v3530_v27 = vpop.f32.mrb[28].mxu0 }
 0x351   : > { %v3478_v21 = vpop.f32.mrb[28].mxu1  ;;  %v2729_v14 = vpop.f32.mrb[29].mxu0 }
 0x352   : > { %v3582_v31 = vadd.f32 %v3530_v27, %v3478_v21  ;;  %v1985_v29 = vpop.f32.mrb[29].mxu1 }
 0x353   : > { %v3583_v47 = vadd.f32 %v2729_v14, %v1985_v29 }
 0x354   : > { %2809 = vst.msk [vmem:[%s5323_s23 + $0xe8] sm:$0xff] %vm437_vm0, %v3582_v31  ;;  %v2911_v3 = vmul.f32 %v3582_v31, %v3582_v31  ;;  %v2869_v51 = vsel %vm437_vm0, %v3582_v31, 0.0 }
 0x355   : > { %2808 = vst.msk [vmem:[%s5323_s23 + $0xe0] sm:$0xff] %vm437_vm0, %v3583_v47  ;;  %v2867_v56 = vsel %vm437_vm0, %v3583_v47, 0.0  ;;  %v2910_v10 = vmul.f32 %v3583_v47, %v3583_v47 }
 0x356   : > { %v2868_v36 = vadd.f32 %v2867_v56, %v2866_v11  ;;  %v2971_v12 = vsel %vm437_vm0, %v2911_v3, 0.0 }
 0x357   : > { %v2969_v38 = vsel %vm437_vm0, %v2910_v10, 0.0 }
 0x358   : > { %v2970_v61 = vadd.f32 %v2969_v38, %v2968_v0  ;;  %v2870_v46 = vadd.f32 %v2869_v51, %v2868_v36 }
 0x35a   : > { %v2972_v44 = vadd.f32 %v2971_v12, %v2970_v61 }
 0x360   : > { %v3533_v4 = vpop.f32.mrb[30].mxu0 }
 0x361   : > { %v3481_v33 = vpop.f32.mrb[30].mxu1  ;;  %v2739_v52 = vpop.f32.mrb[31].mxu0 }
 0x362   : > { %v3584_v59 = vadd.f32 %v3533_v4, %v3481_v33  ;;  %v1995_v15 = vpop.f32.mrb[31].mxu1 }
 0x363   : > { %v3585_v53 = vadd.f32 %v2739_v52, %v1995_v15 }
 0x364   : > { %2811 = vst.msk [vmem:[%s5323_s23 + $0xf8] sm:$0xff] %vm437_vm0, %v3584_v59  ;;  %v2913_v2 = vmul.f32 %v3584_v59, %v3584_v59 }
 0x365   : > { %2810 = vst.msk [vmem:[%s5323_s23 + $0xf0] sm:$0xff] %vm437_vm0, %v3585_v53  ;;  %v2871_v26 = vsel %vm437_vm0, %v3585_v53, 0.0  ;;  %v2912_v18 = vmul.f32 %v3585_v53, %v3585_v53 }
 0x366   : > { %v2872_v22 = vadd.f32 %v2871_v26, %v2870_v46 }
 0x367   : > { %3834 = shalt.err (!%p3831_p4)
}
 0x368   : > { %s3835_s13 = scalar_lea.hbm %s5492_s15, 4096  ;;  %s3839_s23 = scalar_lea.hbm %s5584_s4, 8192 }
 0x369   : > { %p3836_p9 = scmp.ne.s32.totalorder %s5492_s15, %s3835_s13  ;;  %p3840_p8 = scmp.lt.u32.totalorder %s5492_s15, %s5584_s4 }
 0x36a   : > { %p3841_p13 = scmp.lt.u32.totalorder %s3839_s23, %s3835_s13  ;;  %p3843_p10 = scmp.lt.u32.totalorder %s3835_s13, %s5492_s15 }
 0x36b   : > { %p3837_p0 = pnand %p3836_p9, %p4121_p5 }
 0x36c   : > { %p3842_p6 = por %p3841_p13, %p3840_p8 }
 0x36d   : > { %p3838_p11 = pneg %p3837_p0 }
 0x36e   : > { %p3844_p3 = por %p3843_p10, %p3842_p6 }
 0x370   : > { %p3845_p7 = pnand %p3844_p3, %p3838_p11 }
 0x372   : > { %3848 = shalt.err (!%p3845_p7)
}
 0x373   : > { %s3940_s30 = smov 128   ;;  %v2873_v19 = vsel %vm437_vm0, %v3584_v59, 0.0  ;;  %v2973_v25 = vsel %vm437_vm0, %v2912_v18, 0.0  ;;  %v2975_v62 = vsel %vm437_vm0, %v2913_v2, 0.0  ;;  %s3165_s28 = sshll.u32 %s4172_s7, 1 }
 0x374   : > { %3632 = dma.vmem_to_hbm [thread:$0]  (%p4121_p5), %s5494_s16, 4096, %s5492_s15, %s2985_s11, %s3940_s30, %s3940_s30, %s3937_s26   ;;  %v2874_v60 = vadd.f32 %v2873_v19, %v2872_v22  ;;  %v2974_v23 = vadd.f32 %v2973_v25, %v2972_v44 }
 0x375   : > { %s3271_s26 = sshll.u32 %s3993_s22, 5  ;;  %s293_s16 = scalar_lea.vmem [#allocation12], %s3165_s28 }
 0x376   : > { %v2875_v48 = vrot.slane %v2874_v60, 4  ;;  %v2976_v43 = vadd.f32 %v2975_v62, %v2974_v23  ;;  %s3019_s15 = sshll.u32 %s293_s16, 4  ;;  %s5535_s12 = scalar_lea.hbm %s5585_s5, %s3271_s26  ;;  %s5537_s15 = int_to_ptr.vmem [resolvable:$true] %s3019_s15 }
 0x377   : > { %s2990_s22 = scalar_lea.sflag [#allocation13], %s4172_s7  ;;  %s3849_s8 = scalar_lea.vmem %s5537_s15, 32 }
 0x378   : > { %v2876_v28 = vadd.f32 %v2875_v48, %v2874_v60  ;;  %v2977_v24 = vrot.slane %v2976_v43, 4  ;;  %p3850_p12 = scmp.ne.s32.totalorder %s5537_s15, %s3849_s8  ;;  %s3941_s13 = smov [#allocation12]  }
 0x379   : > { %s3853_s17 = sshll.u32 %s3941_s13, 4  ;;  %s3854_s17 = int_to_ptr.vmem [resolvable:$false] %s3853_s17 }
 0x37a   : > { %v2877_v58 = vrot.slane %v2876_v28, 2  ;;  %v2978_v35 = vadd.f32 %v2977_v24, %v2976_v43  ;;  %p3851_p1 = pnand %p3850_p12, %p4121_p5  ;;  %s3855_s24 = scalar_lea.vmem %s3854_s17, 64 }
 0x37b   : > { %p3856_p4 = scmp.lt.s32.totalorder %s5537_s15, %s3854_s17  ;;  %p3857_p9 = scmp.lt.s32.totalorder %s3855_s24, %s3849_s8 }
 0x37c   : > { %v2878_v17 = vadd.f32 %v2877_v58, %v2876_v28  ;;  %v2979_v40 = vrot.slane %v2978_v35, 2  ;;  %p3852_p2 = pneg %p3851_p1 }
 0x37d   : > { %p3858_p0 = por %p3857_p9, %p3856_p4 }
 0x37e   : > { %v2879_v7 = vrot.slane %v2878_v17, 1  ;;  %v2980_v6 = vadd.f32 %v2979_v40, %v2978_v35 }
 0x37f   : > { %p3859_p11 = pnand %p3858_p0, %p3852_p2 }
 0x380   : > { %v2880_v5 = vadd.f32 %v2879_v7, %v2878_v17  ;;  %v2981_v37 = vrot.slane %v2980_v6, 1 }
 0x382   : > { %v2982_v41 = vadd.f32 %v2981_v37, %v2980_v6  ;;  %2881 = vst.msk [vmem:[%s293_s16] sm:$0x1] %vm446_vm2, %v2880_v5 }
 0x384   : > { %2983 = vst.msk [vmem:[%s293_s16 + $0x1] sm:$0x1] %vm446_vm2, %v2982_v41 }
 0x385   : > { %3862 = shalt.err (!%p3859_p11)
}
 0x386   : > { %s3863_s7 = scalar_lea.hbm %s5535_s12, 32  ;;  %s3867_s6 = scalar_lea.hbm %s5585_s5, 64 }
 0x387   : > { %p3864_p8 = scmp.ne.s32.totalorder %s5535_s12, %s3863_s7  ;;  %p3868_p10 = scmp.lt.u32.totalorder %s5535_s12, %s5585_s5 }
 0x388   : > { %p3869_p3 = scmp.lt.u32.totalorder %s3867_s6, %s3863_s7  ;;  %p3871_p12 = scmp.lt.u32.totalorder %s3863_s7, %s5535_s12 }
 0x389   : > { %p3865_p13 = pnand %p3864_p8, %p4121_p5 }
 0x38a   : > { %p3870_p7 = por %p3869_p3, %p3868_p10 }
 0x38b   : > { %p3866_p6 = pneg %p3865_p13 }
 0x38c   : > { %p3872_p1 = por %p3871_p12, %p3870_p7 }
 0x38e   : > { %p3873_p2 = pnand %p3872_p1, %p3866_p6 }
 0x390   : > { %3876 = shalt.err (!%p3873_p2)
}
 0x391   : > { %3633 = dma.vmem_to_hbm [thread:$0]  (%p4121_p5), %s5537_s15, 32, %s5535_s12, %s2990_s22  }
 0x392 PF: > { %s3031_s26 = sand.u32 1, %s3915_s18   ;;  %p5605_p4 = scmp.ne.s32.totalorder %s5590_s25, 0 }
 0x393   : > { %p5606_p9 = scmp.ge.s32.totalorder %s3927_s21, 2  ;;  %s3032_s16 = scalar_lea.sflag [#allocation5], %s3031_s26 }
 0x395   : > { %p3651_p0 = pnand %p5606_p9, %p5605_p4 }
 0x397   : > { %3906 = dma.done.wait (!%p3651_p0), %s3032_s16, 4096  }
 0x398   : > { %3908 = vsyncadd (!%p3651_p0), %s3032_s16, 4294963200  ;;  %s3041_s11 = scalar_lea.sflag [#allocation13], %s3031_s26 }
 0x399   : > { %3910 = dma.done.wait (!%p3651_p0), %s3041_s11, 32  }
 0x39a   : > { %3912 = vsyncadd (!%p3651_p0), %s3041_s11, 4294967264  ;;  %p24_p5 = scmp.ge.s32.totalorder %s4107_s14, 4   ;;  %s5607_s18 = smov %s3919_s19 }
 0x39b   : > { %s5608_s19 = smov %s3923_s20  ;;  %s5609_s20 = smov %s4117_s9 }
 0x39c   : > { %s5610_s21 = smov %s4107_s14  ;;  %26 = sbr.rel (!%p24_p5) target bundleno = 9 (0x9), region = 115 }
 0x3a3   :  { %3046 = vsyncpa [#allocation4], 1 }
 0x3a4   :  { %3048 = vsyncpa [#allocation4 + $0x1], 1 }
 0x3a5   :  { %3049 = vsyncpa [#allocation7], 1 }
 0x3a6   :  { %3050 = vsyncpa [#allocation10], 1 }
 0x3a7   :  { %3051 = vsyncpa [#allocation5], 1 }
 0x3a8   :  { %3053 = vsyncpa [#allocation5 + $0x1], 1 }
 0x3a9   :  { %3054 = vsyncpa [#allocation13], 1 }
 0x3aa   :  { %3056 = vsyncpa [#allocation13 + $0x1], 1 }

</bundles_post_ra>
